<compile_context>
chip_gen: v5e
topology: v5e:2x2
jax: 0.10.0
libtpu: 0.0.40
codegen_flags: <defaults>
</compile_context>

<pallas_src>
from functools import partial

import jax
import jax.numpy as jnp
from jax import lax
from jax.experimental import pallas as pl
from jax.experimental.pallas import tpu as pltpu

K7, D7 = 7, 5   # kernel 7, dilation 5  -> effective 31, pad 15
K5, D5 = 5, 3   # kernel 5, dilation 3  -> effective 13, pad 6
K3, D3 = 3, 1   # kernel 3, dilation 1  -> effective 3,  pad 1
PAD = (K7 // 2) * D7          # 15 = max "same" padding over the three branches
EPS = 1e-5                    # BatchNorm eps (PyTorch default)
CB = 128                      # channel block = lane width


def _mixspatial_kernel(w7_ref, w5_ref, w3_ref, off_ref, xp_ref, o_ref,
                       *, H, W, strip):
    """One (batch, channel-block) tile: 3 dilated depthwise convs + GELU + residual.

    xp_ref : (1, H+2*PAD, W+2*PAD, CB)  zero-padded input (channels on lanes)
    w*_ref : (k*k, CB)                  folded conv*BN weights, one row per tap
    off_ref: (1, CB)                    folded bias/BN offset (sum of branches)
    o_ref  : (1, H, W, CB)
    """
    off = off_ref[0]                                  # (CB,) hoisted once

    def accumulate(h0, w_ref, ksize, dil, t_lo, t_hi):
        """Sum taps [t_lo, t_hi) of one branch for output rows [h0, h0+strip)."""
        half = (ksize // 2) * dil
        acc = jnp.zeros((strip, W, CB), jnp.float32)
        for t in range(t_lo, t_hi):                   # static unroll over taps
            ki, kj = divmod(t, ksize)
            dy = ki * dil - half
            dx = kj * dil - half
            tap = xp_ref[0, pl.ds(h0 + PAD + dy, strip),
                         PAD + dx:PAD + dx + W, :]
            acc = acc + w_ref[t] * tap.astype(jnp.float32)   # per-lane FMA
        return acc

    def row_body(i, carry):
        h0 = i * strip
        # Four independent accumulators (7x7 split in two, 5x5, 3x3) so the
        # 83-tap sum is not one serial dependency chain on the VALU.
        a0 = accumulate(h0, w7_ref, K7, D7, 0, 25)
        a1 = accumulate(h0, w7_ref, K7, D7, 25, K7 * K7)
        a2 = accumulate(h0, w5_ref, K5, D5, 0, K5 * K5)
        a3 = accumulate(h0, w3_ref, K3, D3, 0, K3 * K3)
        y = (a0 + a1) + (a2 + a3) + off

        # exact GELU (erf form), matching torch.nn.GELU() default.
        g = 0.5 * y * (1.0 + lax.erf(y * jnp.float32(0.7071067811865476)))

        x_res = xp_ref[0, pl.ds(h0 + PAD, strip), PAD:PAD + W, :]
        o_ref[0, pl.ds(h0, strip), :, :] = (
            x_res.astype(jnp.float32) + g).astype(o_ref.dtype)
        return carry

    lax.fori_loop(0, H // strip, row_body, 0)


def mix_spatial_pallas(x, params):
    N, C, H, W = x.shape
    Cp = ((C + CB - 1) // CB) * CB
    Hp, Wp = H + 2 * PAD, W + 2 * PAD
    strip = 2 if H % 2 == 0 else 1

    def fold(w, b, bn):
        gamma, beta, mean, var = bn
        scale = gamma / jnp.sqrt(var + EPS)                         # (C,)
        wk = (w[:, 0] * scale[:, None, None]).reshape(C, -1).T      # (k*k, C)
        wk = jnp.pad(wk, ((0, 0), (0, Cp - C))).astype(jnp.float32)  # lanes
        offset = scale * (b - mean) + beta                          # (C,)
        return wk, offset

    w7f, off7 = fold(params["w7"], params["b7"], params["bn7"])
    w5f, off5 = fold(params["w5"], params["b5"], params["bn5"])
    w3f, off3 = fold(params["w3"], params["b3"], params["bn3"])
    off = jnp.pad(off7 + off5 + off3, (0, Cp - C)).astype(jnp.float32)
    off = off.reshape(1, Cp)

    # channels-last + halo padding (wrapper glue, XLA).
    # TODO(synk): for very large H/W, replace the padded HBM copy with an
    #             in-kernel halo DMA / row-tiled grid to cut HBM traffic.
    xl = jnp.transpose(x, (0, 2, 3, 1))                             # (N,H,W,C)
    xp = jnp.pad(xl, ((0, 0), (PAD, PAD), (PAD, PAD), (0, Cp - C)))

    # VMEM budget: 2x double-buffered input + output blocks + weight tables.
    in_block = Hp * Wp * CB * 4
    out_block = H * W * CB * 4
    need = 2 * (in_block + out_block) \
        + 4 * (K7 * K7 + K5 * K5 + K3 * K3 + 1) * CB + (2 << 20)
    cp_kwargs = dict(dimension_semantics=("parallel", "parallel"))
    if need > (24 << 20):
        # raise the scoped limit, but stay under v7x's 64 MiB physical VMEM
        cp_kwargs["vmem_limit_bytes"] = int(min(need, 60 << 20))

    kernel = partial(_mixspatial_kernel, H=H, W=W, strip=strip)
    out_nhwc = pl.pallas_call(
        kernel,
        out_shape=jax.ShapeDtypeStruct((N, H, W, Cp), x.dtype),
        grid=(N, Cp // CB),
        in_specs=[
            pl.BlockSpec((K7 * K7, CB), lambda n, cb: (0, cb)),     # w7f
            pl.BlockSpec((K5 * K5, CB), lambda n, cb: (0, cb)),     # w5f
            pl.BlockSpec((K3 * K3, CB), lambda n, cb: (0, cb)),     # w3f
            pl.BlockSpec((1, CB), lambda n, cb: (0, cb)),           # off
            pl.BlockSpec((1, Hp, Wp, CB), lambda n, cb: (n, 0, 0, cb)),
        ],
        out_specs=pl.BlockSpec((1, H, W, CB), lambda n, cb: (n, 0, 0, cb)),
        compiler_params=pltpu.CompilerParams(**cp_kwargs),
    )(w7f, w5f, w3f, off, xp)

    return jnp.transpose(out_nhwc[..., :C], (0, 3, 1, 2))           # back to NCHW


def mix_spatial_ref(x, params):
    """Pure-JAX reference (eval-mode MixSpatial) for correctness checking."""
    C = x.shape[1]

    def branch(w, b, bn, dil):
        gamma, beta, mean, var = bn
        y = jax.lax.conv_general_dilated(
            x, w, window_strides=(1, 1), padding="SAME",
            rhs_dilation=(dil, dil), feature_group_count=C,
            dimension_numbers=("NCHW", "OIHW", "NCHW"))
        y = y + b[None, :, None, None]
        scale = (gamma / jnp.sqrt(var + EPS))[None, :, None, None]
        return (y - mean[None, :, None, None]) * scale + beta[None, :, None, None]

    y = (branch(params["w7"], params["b7"], params["bn7"], D7)
         + branch(params["w5"], params["b5"], params["bn5"], D5)
         + branch(params["w3"], params["b3"], params["bn3"], D3))
    g = 0.5 * y * (1.0 + jax.lax.erf(y * jnp.float32(0.7071067811865476)))
    return x + g


def make_params(key, C):
    ks = jax.random.split(key, 18)

    def bn(k0, k1, k2, k3):
        gamma = 1.0 + 0.1 * jax.random.normal(k0, (C,), jnp.float32)
        beta = 0.1 * jax.random.normal(k1, (C,), jnp.float32)
        mean = 0.1 * jax.random.normal(k2, (C,), jnp.float32)
        var = 1.0 + 0.1 * jnp.abs(jax.random.normal(k3, (C,), jnp.float32))
        return (gamma, beta, mean, var)

    return {
        "w7": 0.1 * jax.random.normal(ks[0], (C, 1, K7, K7), jnp.float32),
        "b7": 0.1 * jax.random.normal(ks[1], (C,), jnp.float32),
        "bn7": bn(ks[2], ks[3], ks[4], ks[5]),
        "w5": 0.1 * jax.random.normal(ks[6], (C, 1, K5, K5), jnp.float32),
        "b5": 0.1 * jax.random.normal(ks[7], (C,), jnp.float32),
        "bn5": bn(ks[8], ks[9], ks[10], ks[11]),
        "w3": 0.1 * jax.random.normal(ks[12], (C, 1, K3, K3), jnp.float32),
        "b3": 0.1 * jax.random.normal(ks[13], (C,), jnp.float32),
        "bn3": bn(ks[14], ks[15], ks[16], ks[17]),
    }


if __name__ == "__main__":
    key = jax.random.PRNGKey(0)
    k_x, k_p = jax.random.split(key)

    N, C, H, W = 2, 4, 16, 16
    x = jax.random.normal(k_x, (N, C, H, W), jnp.float32)
    params = make_params(k_p, C)

    out = jax.block_until_ready(mix_spatial_pallas(x, params))
    ref = jax.block_until_ready(mix_spatial_ref(x, params))

    assert out.shape == (N, C, H, W) and out.dtype == jnp.float32
    if not jnp.allclose(out, ref, rtol=1e-4, atol=1e-4):
        raise AssertionError(
            f"mismatch: max abs err = {jnp.max(jnp.abs(out - ref))}")
    print("KERNEL_OK")
</pallas_src>

<mosaic_0001>
module attributes {stable_mosaic.version = 11 : i64} {
  func.func @_mixspatial_kernel(%arg0: i32, %arg1: i32, %arg2: memref<49x128xf32, #tpu.memory_space<vmem>>, %arg3: memref<25x128xf32, #tpu.memory_space<vmem>>, %arg4: memref<9x128xf32, #tpu.memory_space<vmem>>, %arg5: memref<1x128xf32, #tpu.memory_space<vmem>>, %arg6: memref<1x46x46x128xf32, #tpu.memory_space<vmem>>, %arg7: memref<1x16x16x128xf32, #tpu.memory_space<vmem>>) attributes {dimension_semantics = [#tpu.dimension_semantics<parallel>, #tpu.dimension_semantics<parallel>], iteration_bounds = array<i64: 2, 1>, scalar_prefetch = 0 : i64, scratch_operands = 0 : i64, tpu.core_type = #tpu.core_type<tc>, window_params = [{transform_indices = @transform_0, window_bounds = array<i64: 49, 128>}, {transform_indices = @transform_1, window_bounds = array<i64: 25, 128>}, {transform_indices = @transform_2, window_bounds = array<i64: 9, 128>}, {transform_indices = @transform_3, window_bounds = array<i64: 1, 128>}, {transform_indices = @transform_4, window_bounds = array<i64: 1, 46, 46, 128>}, {transform_indices = @transform_5, window_bounds = array<i64: 1, 16, 16, 128>}]} {
    %c0 = arith.constant 0 : index
    %c0_0 = arith.constant 0 : index
    %0 = vector.load %arg5[%c0, %c0_0] : memref<1x128xf32, #tpu.memory_space<vmem>>, vector<1x128xf32>
    %1 = vector.shape_cast %0 : vector<1x128xf32> to vector<128xf32>
    %c0_i32 = arith.constant 0 : i32
    %c8_i32 = arith.constant 8 : i32
    %2 = arith.addi %c0_i32, %c8_i32 : i32
    %c1_i32 = arith.constant 1 : i32
    scf.for %arg8 = %c0_i32 to %2 step %c1_i32  : i32 {
      %c2_i32 = arith.constant 2 : i32
      %3 = arith.muli %arg8, %c2_i32 : i32
      %cst = arith.constant 0.000000e+00 : f32
      %4 = vector.broadcast %cst : f32 to vector<2x16x128xf32>
      %c15_i32 = arith.constant 15 : i32
      %5 = arith.addi %3, %c15_i32 : i32
      %c-15_i32 = arith.constant -15 : i32
      %6 = arith.addi %5, %c-15_i32 : i32
      %c0_2 = arith.constant 0 : index
      %7 = arith.index_cast %6 : i32 to index
      %c0_3 = arith.constant 0 : index
      %c0_4 = arith.constant 0 : index
      %8 = vector.load %arg6[%c0_2, %7, %c0_3, %c0_4] : memref<1x46x46x128xf32, #tpu.memory_space<vmem>>, vector<1x2x16x128xf32>
      %9 = vector.shape_cast %8 : vector<1x2x16x128xf32> to vector<2x16x128xf32>
      %c0_5 = arith.constant 0 : index
      %c0_6 = arith.constant 0 : index
      %10 = vector.load %arg2[%c0_5, %c0_6] : memref<49x128xf32, #tpu.memory_space<vmem>>, vector<1x128xf32>
      %11 = vector.shape_cast %10 : vector<1x128xf32> to vector<128xf32>
      %12 = vector.shape_cast %11 : vector<128xf32> to vector<1x1x128xf32>
      %13 = vector.broadcast %12 : vector<1x1x128xf32> to vector<2x16x128xf32>
      %14 = arith.mulf %13, %9 : vector<2x16x128xf32>
      %15 = arith.addf %4, %14 : vector<2x16x128xf32>
      %c15_i32_7 = arith.constant 15 : i32
      %16 = arith.addi %3, %c15_i32_7 : i32
      %c-15_i32_8 = arith.constant -15 : i32
      %17 = arith.addi %16, %c-15_i32_8 : i32
      %c0_9 = arith.constant 0 : index
      %18 = arith.index_cast %17 : i32 to index
      %c5 = arith.constant 5 : index
      %c0_10 = arith.constant 0 : index
      %19 = vector.load %arg6[%c0_9, %18, %c5, %c0_10] : memref<1x46x46x128xf32, #tpu.memory_space<vmem>>, vector<1x2x16x128xf32>
      %20 = vector.shape_cast %19 : vector<1x2x16x128xf32> to vector<2x16x128xf32>
      %c1 = arith.constant 1 : index
      %c0_11 = arith.constant 0 : index
      %21 = vector.load %arg2[%c1, %c0_11] : memref<49x128xf32, #tpu.memory_space<vmem>>, vector<1x128xf32>
      %22 = vector.shape_cast %21 : vector<1x128xf32> to vector<128xf32>
      %23 = vector.shape_cast %22 : vector<128xf32> to vector<1x1x128xf32>
      %24 = vector.broadcast %23 : vector<1x1x128xf32> to vector<2x16x128xf32>
      %25 = arith.mulf %24, %20 : vector<2x16x128xf32>
      %26 = arith.addf %15, %25 : vector<2x16x128xf32>
      %c15_i32_12 = arith.constant 15 : i32
      %27 = arith.addi %3, %c15_i32_12 : i32
      %c-15_i32_13 = arith.constant -15 : i32
      %28 = arith.addi %27, %c-15_i32_13 : i32
      %c0_14 = arith.constant 0 : index
      %29 = arith.index_cast %28 : i32 to index
      %c10 = arith.constant 10 : index
      %c0_15 = arith.constant 0 : index
      %30 = vector.load %arg6[%c0_14, %29, %c10, %c0_15] : memref<1x46x46x128xf32, #tpu.memory_space<vmem>>, vector<1x2x16x128xf32>
      %31 = vector.shape_cast %30 : vector<1x2x16x128xf32> to vector<2x16x128xf32>
      %c2 = arith.constant 2 : index
      %c0_16 = arith.constant 0 : index
      %32 = vector.load %arg2[%c2, %c0_16] : memref<49x128xf32, #tpu.memory_space<vmem>>, vector<1x128xf32>
      %33 = vector.shape_cast %32 : vector<1x128xf32> to vector<128xf32>
      %34 = vector.shape_cast %33 : vector<128xf32> to vector<1x1x128xf32>
      %35 = vector.broadcast %34 : vector<1x1x128xf32> to vector<2x16x128xf32>
      %36 = arith.mulf %35, %31 : vector<2x16x128xf32>
      %37 = arith.addf %26, %36 : vector<2x16x128xf32>
      %c15_i32_17 = arith.constant 15 : i32
      %38 = arith.addi %3, %c15_i32_17 : i32
      %c-15_i32_18 = arith.constant -15 : i32
      %39 = arith.addi %38, %c-15_i32_18 : i32
      %c0_19 = arith.constant 0 : index
      %40 = arith.index_cast %39 : i32 to index
      %c15 = arith.constant 15 : index
      %c0_20 = arith.constant 0 : index
      %41 = vector.load %arg6[%c0_19, %40, %c15, %c0_20] : memref<1x46x46x128xf32, #tpu.memory_space<vmem>>, vector<1x2x16x128xf32>
      %42 = vector.shape_cast %41 : vector<1x2x16x128xf32> to vector<2x16x128xf32>
      %c3 = arith.constant 3 : index
      %c0_21 = arith.constant 0 : index
      %43 = vector.load %arg2[%c3, %c0_21] : memref<49x128xf32, #tpu.memory_space<vmem>>, vector<1x128xf32>
      %44 = vector.shape_cast %43 : vector<1x128xf32> to vector<128xf32>
      %45 = vector.shape_cast %44 : vector<128xf32> to vector<1x1x128xf32>
      %46 = vector.broadcast %45 : vector<1x1x128xf32> to vector<2x16x128xf32>
      %47 = arith.mulf %46, %42 : vector<2x16x128xf32>
      %48 = arith.addf %37, %47 : vector<2x16x128xf32>
      %c15_i32_22 = arith.constant 15 : i32
      %49 = arith.addi %3, %c15_i32_22 : i32
      %c-15_i32_23 = arith.constant -15 : i32
      %50 = arith.addi %49, %c-15_i32_23 : i32
      %c0_24 = arith.constant 0 : index
      %51 = arith.index_cast %50 : i32 to index
      %c20 = arith.constant 20 : index
      %c0_25 = arith.constant 0 : index
      %52 = vector.load %arg6[%c0_24, %51, %c20, %c0_25] : memref<1x46x46x128xf32, #tpu.memory_space<vmem>>, vector<1x2x16x128xf32>
      %53 = vector.shape_cast %52 : vector<1x2x16x128xf32> to vector<2x16x128xf32>
      %c4 = arith.constant 4 : index
      %c0_26 = arith.constant 0 : index
      %54 = vector.load %arg2[%c4, %c0_26] : memref<49x128xf32, #tpu.memory_space<vmem>>, vector<1x128xf32>
      %55 = vector.shape_cast %54 : vector<1x128xf32> to vector<128xf32>
      %56 = vector.shape_cast %55 : vector<128xf32> to vector<1x1x128xf32>
      %57 = vector.broadcast %56 : vector<1x1x128xf32> to vector<2x16x128xf32>
      %58 = arith.mulf %57, %53 : vector<2x16x128xf32>
      %59 = arith.addf %48, %58 : vector<2x16x128xf32>
      %c15_i32_27 = arith.constant 15 : i32
      %60 = arith.addi %3, %c15_i32_27 : i32
      %c-15_i32_28 = arith.constant -15 : i32
      %61 = arith.addi %60, %c-15_i32_28 : i32
      %c0_29 = arith.constant 0 : index
      %62 = arith.index_cast %61 : i32 to index
      %c25 = arith.constant 25 : index
      %c0_30 = arith.constant 0 : index
      %63 = vector.load %arg6[%c0_29, %62, %c25, %c0_30] : memref<1x46x46x128xf32, #tpu.memory_space<vmem>>, vector<1x2x16x128xf32>
      %64 = vector.shape_cast %63 : vector<1x2x16x128xf32> to vector<2x16x128xf32>
      %c5_31 = arith.constant 5 : index
      %c0_32 = arith.constant 0 : index
      %65 = vector.load %arg2[%c5_31, %c0_32] : memref<49x128xf32, #tpu.memory_space<vmem>>, vector<1x128xf32>
      %66 = vector.shape_cast %65 : vector<1x128xf32> to vector<128xf32>
      %67 = vector.shape_cast %66 : vector<128xf32> to vector<1x1x128xf32>
      %68 = vector.broadcast %67 : vector<1x1x128xf32> to vector<2x16x128xf32>
      %69 = arith.mulf %68, %64 : vector<2x16x128xf32>
      %70 = arith.addf %59, %69 : vector<2x16x128xf32>
      %c15_i32_33 = arith.constant 15 : i32
      %71 = arith.addi %3, %c15_i32_33 : i32
      %c-15_i32_34 = arith.constant -15 : i32
      %72 = arith.addi %71, %c-15_i32_34 : i32
      %c0_35 = arith.constant 0 : index
      %73 = arith.index_cast %72 : i32 to index
      %c30 = arith.constant 30 : index
      %c0_36 = arith.constant 0 : index
      %74 = vector.load %arg6[%c0_35, %73, %c30, %c0_36] : memref<1x46x46x128xf32, #tpu.memory_space<vmem>>, vector<1x2x16x128xf32>
      %75 = vector.shape_cast %74 : vector<1x2x16x128xf32> to vector<2x16x128xf32>
      %c6 = arith.constant 6 : index
      %c0_37 = arith.constant 0 : index
      %76 = vector.load %arg2[%c6, %c0_37] : memref<49x128xf32, #tpu.memory_space<vmem>>, vector<1x128xf32>
      %77 = vector.shape_cast %76 : vector<1x128xf32> to vector<128xf32>
      %78 = vector.shape_cast %77 : vector<128xf32> to vector<1x1x128xf32>
      %79 = vector.broadcast %78 : vector<1x1x128xf32> to vector<2x16x128xf32>
      %80 = arith.mulf %79, %75 : vector<2x16x128xf32>
      %81 = arith.addf %70, %80 : vector<2x16x128xf32>
      %c15_i32_38 = arith.constant 15 : i32
      %82 = arith.addi %3, %c15_i32_38 : i32
      %c-10_i32 = arith.constant -10 : i32
      %83 = arith.addi %82, %c-10_i32 : i32
      %c0_39 = arith.constant 0 : index
      %84 = arith.index_cast %83 : i32 to index
      %c0_40 = arith.constant 0 : index
      %c0_41 = arith.constant 0 : index
      %85 = vector.load %arg6[%c0_39, %84, %c0_40, %c0_41] : memref<1x46x46x128xf32, #tpu.memory_space<vmem>>, vector<1x2x16x128xf32>
      %86 = vector.shape_cast %85 : vector<1x2x16x128xf32> to vector<2x16x128xf32>
      %c7 = arith.constant 7 : index
      %c0_42 = arith.constant 0 : index
      %87 = vector.load %arg2[%c7, %c0_42] : memref<49x128xf32, #tpu.memory_space<vmem>>, vector<1x128xf32>
      %88 = vector.shape_cast %87 : vector<1x128xf32> to vector<128xf32>
      %89 = vector.shape_cast %88 : vector<128xf32> to vector<1x1x128xf32>
      %90 = vector.broadcast %89 : vector<1x1x128xf32> to vector<2x16x128xf32>
      %91 = arith.mulf %90, %86 : vector<2x16x128xf32>
      %92 = arith.addf %81, %91 : vector<2x16x128xf32>
      %c15_i32_43 = arith.constant 15 : i32
      %93 = arith.addi %3, %c15_i32_43 : i32
      %c-10_i32_44 = arith.constant -10 : i32
      %94 = arith.addi %93, %c-10_i32_44 : i32
      %c0_45 = arith.constant 0 : index
      %95 = arith.index_cast %94 : i32 to index
      %c5_46 = arith.constant 5 : index
      %c0_47 = arith.constant 0 : index
      %96 = vector.load %arg6[%c0_45, %95, %c5_46, %c0_47] : memref<1x46x46x128xf32, #tpu.memory_space<vmem>>, vector<1x2x16x128xf32>
      %97 = vector.shape_cast %96 : vector<1x2x16x128xf32> to vector<2x16x128xf32>
      %c8 = arith.constant 8 : index
      %c0_48 = arith.constant 0 : index
      %98 = vector.load %arg2[%c8, %c0_48] : memref<49x128xf32, #tpu.memory_space<vmem>>, vector<1x128xf32>
      %99 = vector.shape_cast %98 : vector<1x128xf32> to vector<128xf32>
      %100 = vector.shape_cast %99 : vector<128xf32> to vector<1x1x128xf32>
      %101 = vector.broadcast %100 : vector<1x1x128xf32> to vector<2x16x128xf32>
      %102 = arith.mulf %101, %97 : vector<2x16x128xf32>
      %103 = arith.addf %92, %102 : vector<2x16x128xf32>
      %c15_i32_49 = arith.constant 15 : i32
      %104 = arith.addi %3, %c15_i32_49 : i32
      %c-10_i32_50 = arith.constant -10 : i32
      %105 = arith.addi %104, %c-10_i32_50 : i32
      %c0_51 = arith.constant 0 : index
      %106 = arith.index_cast %105 : i32 to index
      %c10_52 = arith.constant 10 : index
      %c0_53 = arith.constant 0 : index
      %107 = vector.load %arg6[%c0_51, %106, %c10_52, %c0_53] : memref<1x46x46x128xf32, #tpu.memory_space<vmem>>, vector<1x2x16x128xf32>
      %108 = vector.shape_cast %107 : vector<1x2x16x128xf32> to vector<2x16x128xf32>
      %c9 = arith.constant 9 : index
      %c0_54 = arith.constant 0 : index
      %109 = vector.load %arg2[%c9, %c0_54] : memref<49x128xf32, #tpu.memory_space<vmem>>, vector<1x128xf32>
      %110 = vector.shape_cast %109 : vector<1x128xf32> to vector<128xf32>
      %111 = vector.shape_cast %110 : vector<128xf32> to vector<1x1x128xf32>
      %112 = vector.broadcast %111 : vector<1x1x128xf32> to vector<2x16x128xf32>
      %113 = arith.mulf %112, %108 : vector<2x16x128xf32>
      %114 = arith.addf %103, %113 : vector<2x16x128xf32>
      %c15_i32_55 = arith.constant 15 : i32
      %115 = arith.addi %3, %c15_i32_55 : i32
      %c-10_i32_56 = arith.constant -10 : i32
      %116 = arith.addi %115, %c-10_i32_56 : i32
      %c0_57 = arith.constant 0 : index
      %117 = arith.index_cast %116 : i32 to index
      %c15_58 = arith.constant 15 : index
      %c0_59 = arith.constant 0 : index
      %118 = vector.load %arg6[%c0_57, %117, %c15_58, %c0_59] : memref<1x46x46x128xf32, #tpu.memory_space<vmem>>, vector<1x2x16x128xf32>
      %119 = vector.shape_cast %118 : vector<1x2x16x128xf32> to vector<2x16x128xf32>
      %c10_60 = arith.constant 10 : index
      %c0_61 = arith.constant 0 : index
      %120 = vector.load %arg2[%c10_60, %c0_61] : memref<49x128xf32, #tpu.memory_space<vmem>>, vector<1x128xf32>
      %121 = vector.shape_cast %120 : vector<1x128xf32> to vector<128xf32>
      %122 = vector.shape_cast %121 : vector<128xf32> to vector<1x1x128xf32>
      %123 = vector.broadcast %122 : vector<1x1x128xf32> to vector<2x16x128xf32>
      %124 = arith.mulf %123, %119 : vector<2x16x128xf32>
      %125 = arith.addf %114, %124 : vector<2x16x128xf32>
      %c15_i32_62 = arith.constant 15 : i32
      %126 = arith.addi %3, %c15_i32_62 : i32
      %c-10_i32_63 = arith.constant -10 : i32
      %127 = arith.addi %126, %c-10_i32_63 : i32
      %c0_64 = arith.constant 0 : index
      %128 = arith.index_cast %127 : i32 to index
      %c20_65 = arith.constant 20 : index
      %c0_66 = arith.constant 0 : index
      %129 = vector.load %arg6[%c0_64, %128, %c20_65, %c0_66] : memref<1x46x46x128xf32, #tpu.memory_space<vmem>>, vector<1x2x16x128xf32>
      %130 = vector.shape_cast %129 : vector<1x2x16x128xf32> to vector<2x16x128xf32>
      %c11 = arith.constant 11 : index
      %c0_67 = arith.constant 0 : index
      %131 = vector.load %arg2[%c11, %c0_67] : memref<49x128xf32, #tpu.memory_space<vmem>>, vector<1x128xf32>
      %132 = vector.shape_cast %131 : vector<1x128xf32> to vector<128xf32>
      %133 = vector.shape_cast %132 : vector<128xf32> to vector<1x1x128xf32>
      %134 = vector.broadcast %133 : vector<1x1x128xf32> to vector<2x16x128xf32>
      %135 = arith.mulf %134, %130 : vector<2x16x128xf32>
      %136 = arith.addf %125, %135 : vector<2x16x128xf32>
      %c15_i32_68 = arith.constant 15 : i32
      %137 = arith.addi %3, %c15_i32_68 : i32
      %c-10_i32_69 = arith.constant -10 : i32
      %138 = arith.addi %137, %c-10_i32_69 : i32
      %c0_70 = arith.constant 0 : index
      %139 = arith.index_cast %138 : i32 to index
      %c25_71 = arith.constant 25 : index
      %c0_72 = arith.constant 0 : index
      %140 = vector.load %arg6[%c0_70, %139, %c25_71, %c0_72] : memref<1x46x46x128xf32, #tpu.memory_space<vmem>>, vector<1x2x16x128xf32>
      %141 = vector.shape_cast %140 : vector<1x2x16x128xf32> to vector<2x16x128xf32>
      %c12 = arith.constant 12 : index
      %c0_73 = arith.constant 0 : index
      %142 = vector.load %arg2[%c12, %c0_73] : memref<49x128xf32, #tpu.memory_space<vmem>>, vector<1x128xf32>
      %143 = vector.shape_cast %142 : vector<1x128xf32> to vector<128xf32>
      %144 = vector.shape_cast %143 : vector<128xf32> to vector<1x1x128xf32>
      %145 = vector.broadcast %144 : vector<1x1x128xf32> to vector<2x16x128xf32>
      %146 = arith.mulf %145, %141 : vector<2x16x128xf32>
      %147 = arith.addf %136, %146 : vector<2x16x128xf32>
      %c15_i32_74 = arith.constant 15 : i32
      %148 = arith.addi %3, %c15_i32_74 : i32
      %c-10_i32_75 = arith.constant -10 : i32
      %149 = arith.addi %148, %c-10_i32_75 : i32
      %c0_76 = arith.constant 0 : index
      %150 = arith.index_cast %149 : i32 to index
      %c30_77 = arith.constant 30 : index
      %c0_78 = arith.constant 0 : index
      %151 = vector.load %arg6[%c0_76, %150, %c30_77, %c0_78] : memref<1x46x46x128xf32, #tpu.memory_space<vmem>>, vector<1x2x16x128xf32>
      %152 = vector.shape_cast %151 : vector<1x2x16x128xf32> to vector<2x16x128xf32>
      %c13 = arith.constant 13 : index
      %c0_79 = arith.constant 0 : index
      %153 = vector.load %arg2[%c13, %c0_79] : memref<49x128xf32, #tpu.memory_space<vmem>>, vector<1x128xf32>
      %154 = vector.shape_cast %153 : vector<1x128xf32> to vector<128xf32>
      %155 = vector.shape_cast %154 : vector<128xf32> to vector<1x1x128xf32>
      %156 = vector.broadcast %155 : vector<1x1x128xf32> to vector<2x16x128xf32>
      %157 = arith.mulf %156, %152 : vector<2x16x128xf32>
      %158 = arith.addf %147, %157 : vector<2x16x128xf32>
      %c15_i32_80 = arith.constant 15 : i32
      %159 = arith.addi %3, %c15_i32_80 : i32
      %c-5_i32 = arith.constant -5 : i32
      %160 = arith.addi %159, %c-5_i32 : i32
      %c0_81 = arith.constant 0 : index
      %161 = arith.index_cast %160 : i32 to index
      %c0_82 = arith.constant 0 : index
      %c0_83 = arith.constant 0 : index
      %162 = vector.load %arg6[%c0_81, %161, %c0_82, %c0_83] : memref<1x46x46x128xf32, #tpu.memory_space<vmem>>, vector<1x2x16x128xf32>
      %163 = vector.shape_cast %162 : vector<1x2x16x128xf32> to vector<2x16x128xf32>
      %c14 = arith.constant 14 : index
      %c0_84 = arith.constant 0 : index
      %164 = vector.load %arg2[%c14, %c0_84] : memref<49x128xf32, #tpu.memory_space<vmem>>, vector<1x128xf32>
      %165 = vector.shape_cast %164 : vector<1x128xf32> to vector<128xf32>
      %166 = vector.shape_cast %165 : vector<128xf32> to vector<1x1x128xf32>
      %167 = vector.broadcast %166 : vector<1x1x128xf32> to vector<2x16x128xf32>
      %168 = arith.mulf %167, %163 : vector<2x16x128xf32>
      %169 = arith.addf %158, %168 : vector<2x16x128xf32>
      %c15_i32_85 = arith.constant 15 : i32
      %170 = arith.addi %3, %c15_i32_85 : i32
      %c-5_i32_86 = arith.constant -5 : i32
      %171 = arith.addi %170, %c-5_i32_86 : i32
      %c0_87 = arith.constant 0 : index
      %172 = arith.index_cast %171 : i32 to index
      %c5_88 = arith.constant 5 : index
      %c0_89 = arith.constant 0 : index
      %173 = vector.load %arg6[%c0_87, %172, %c5_88, %c0_89] : memref<1x46x46x128xf32, #tpu.memory_space<vmem>>, vector<1x2x16x128xf32>
      %174 = vector.shape_cast %173 : vector<1x2x16x128xf32> to vector<2x16x128xf32>
      %c15_90 = arith.constant 15 : index
      %c0_91 = arith.constant 0 : index
      %175 = vector.load %arg2[%c15_90, %c0_91] : memref<49x128xf32, #tpu.memory_space<vmem>>, vector<1x128xf32>
      %176 = vector.shape_cast %175 : vector<1x128xf32> to vector<128xf32>
      %177 = vector.shape_cast %176 : vector<128xf32> to vector<1x1x128xf32>
      %178 = vector.broadcast %177 : vector<1x1x128xf32> to vector<2x16x128xf32>
      %179 = arith.mulf %178, %174 : vector<2x16x128xf32>
      %180 = arith.addf %169, %179 : vector<2x16x128xf32>
      %c15_i32_92 = arith.constant 15 : i32
      %181 = arith.addi %3, %c15_i32_92 : i32
      %c-5_i32_93 = arith.constant -5 : i32
      %182 = arith.addi %181, %c-5_i32_93 : i32
      %c0_94 = arith.constant 0 : index
      %183 = arith.index_cast %182 : i32 to index
      %c10_95 = arith.constant 10 : index
      %c0_96 = arith.constant 0 : index
      %184 = vector.load %arg6[%c0_94, %183, %c10_95, %c0_96] : memref<1x46x46x128xf32, #tpu.memory_space<vmem>>, vector<1x2x16x128xf32>
      %185 = vector.shape_cast %184 : vector<1x2x16x128xf32> to vector<2x16x128xf32>
      %c16 = arith.constant 16 : index
      %c0_97 = arith.constant 0 : index
      %186 = vector.load %arg2[%c16, %c0_97] : memref<49x128xf32, #tpu.memory_space<vmem>>, vector<1x128xf32>
      %187 = vector.shape_cast %186 : vector<1x128xf32> to vector<128xf32>
      %188 = vector.shape_cast %187 : vector<128xf32> to vector<1x1x128xf32>
      %189 = vector.broadcast %188 : vector<1x1x128xf32> to vector<2x16x128xf32>
      %190 = arith.mulf %189, %185 : vector<2x16x128xf32>
      %191 = arith.addf %180, %190 : vector<2x16x128xf32>
      %c15_i32_98 = arith.constant 15 : i32
      %192 = arith.addi %3, %c15_i32_98 : i32
      %c-5_i32_99 = arith.constant -5 : i32
      %193 = arith.addi %192, %c-5_i32_99 : i32
      %c0_100 = arith.constant 0 : index
      %194 = arith.index_cast %193 : i32 to index
      %c15_101 = arith.constant 15 : index
      %c0_102 = arith.constant 0 : index
      %195 = vector.load %arg6[%c0_100, %194, %c15_101, %c0_102] : memref<1x46x46x128xf32, #tpu.memory_space<vmem>>, vector<1x2x16x128xf32>
      %196 = vector.shape_cast %195 : vector<1x2x16x128xf32> to vector<2x16x128xf32>
      %c17 = arith.constant 17 : index
      %c0_103 = arith.constant 0 : index
      %197 = vector.load %arg2[%c17, %c0_103] : memref<49x128xf32, #tpu.memory_space<vmem>>, vector<1x128xf32>
      %198 = vector.shape_cast %197 : vector<1x128xf32> to vector<128xf32>
      %199 = vector.shape_cast %198 : vector<128xf32> to vector<1x1x128xf32>
      %200 = vector.broadcast %199 : vector<1x1x128xf32> to vector<2x16x128xf32>
      %201 = arith.mulf %200, %196 : vector<2x16x128xf32>
      %202 = arith.addf %191, %201 : vector<2x16x128xf32>
      %c15_i32_104 = arith.constant 15 : i32
      %203 = arith.addi %3, %c15_i32_104 : i32
      %c-5_i32_105 = arith.constant -5 : i32
      %204 = arith.addi %203, %c-5_i32_105 : i32
      %c0_106 = arith.constant 0 : index
      %205 = arith.index_cast %204 : i32 to index
      %c20_107 = arith.constant 20 : index
      %c0_108 = arith.constant 0 : index
      %206 = vector.load %arg6[%c0_106, %205, %c20_107, %c0_108] : memref<1x46x46x128xf32, #tpu.memory_space<vmem>>, vector<1x2x16x128xf32>
      %207 = vector.shape_cast %206 : vector<1x2x16x128xf32> to vector<2x16x128xf32>
      %c18 = arith.constant 18 : index
      %c0_109 = arith.constant 0 : index
      %208 = vector.load %arg2[%c18, %c0_109] : memref<49x128xf32, #tpu.memory_space<vmem>>, vector<1x128xf32>
      %209 = vector.shape_cast %208 : vector<1x128xf32> to vector<128xf32>
      %210 = vector.shape_cast %209 : vector<128xf32> to vector<1x1x128xf32>
      %211 = vector.broadcast %210 : vector<1x1x128xf32> to vector<2x16x128xf32>
      %212 = arith.mulf %211, %207 : vector<2x16x128xf32>
      %213 = arith.addf %202, %212 : vector<2x16x128xf32>
      %c15_i32_110 = arith.constant 15 : i32
      %214 = arith.addi %3, %c15_i32_110 : i32
      %c-5_i32_111 = arith.constant -5 : i32
      %215 = arith.addi %214, %c-5_i32_111 : i32
      %c0_112 = arith.constant 0 : index
      %216 = arith.index_cast %215 : i32 to index
      %c25_113 = arith.constant 25 : index
      %c0_114 = arith.constant 0 : index
      %217 = vector.load %arg6[%c0_112, %216, %c25_113, %c0_114] : memref<1x46x46x128xf32, #tpu.memory_space<vmem>>, vector<1x2x16x128xf32>
      %218 = vector.shape_cast %217 : vector<1x2x16x128xf32> to vector<2x16x128xf32>
      %c19 = arith.constant 19 : index
      %c0_115 = arith.constant 0 : index
      %219 = vector.load %arg2[%c19, %c0_115] : memref<49x128xf32, #tpu.memory_space<vmem>>, vector<1x128xf32>
      %220 = vector.shape_cast %219 : vector<1x128xf32> to vector<128xf32>
      %221 = vector.shape_cast %220 : vector<128xf32> to vector<1x1x128xf32>
      %222 = vector.broadcast %221 : vector<1x1x128xf32> to vector<2x16x128xf32>
      %223 = arith.mulf %222, %218 : vector<2x16x128xf32>
      %224 = arith.addf %213, %223 : vector<2x16x128xf32>
      %c15_i32_116 = arith.constant 15 : i32
      %225 = arith.addi %3, %c15_i32_116 : i32
      %c-5_i32_117 = arith.constant -5 : i32
      %226 = arith.addi %225, %c-5_i32_117 : i32
      %c0_118 = arith.constant 0 : index
      %227 = arith.index_cast %226 : i32 to index
      %c30_119 = arith.constant 30 : index
      %c0_120 = arith.constant 0 : index
      %228 = vector.load %arg6[%c0_118, %227, %c30_119, %c0_120] : memref<1x46x46x128xf32, #tpu.memory_space<vmem>>, vector<1x2x16x128xf32>
      %229 = vector.shape_cast %228 : vector<1x2x16x128xf32> to vector<2x16x128xf32>
      %c20_121 = arith.constant 20 : index
      %c0_122 = arith.constant 0 : index
      %230 = vector.load %arg2[%c20_121, %c0_122] : memref<49x128xf32, #tpu.memory_space<vmem>>, vector<1x128xf32>
      %231 = vector.shape_cast %230 : vector<1x128xf32> to vector<128xf32>
      %232 = vector.shape_cast %231 : vector<128xf32> to vector<1x1x128xf32>
      %233 = vector.broadcast %232 : vector<1x1x128xf32> to vector<2x16x128xf32>
      %234 = arith.mulf %233, %229 : vector<2x16x128xf32>
      %235 = arith.addf %224, %234 : vector<2x16x128xf32>
      %c15_i32_123 = arith.constant 15 : i32
      %236 = arith.addi %3, %c15_i32_123 : i32
      %c0_i32_124 = arith.constant 0 : i32
      %237 = arith.addi %236, %c0_i32_124 : i32
      %c0_125 = arith.constant 0 : index
      %238 = arith.index_cast %237 : i32 to index
      %c0_126 = arith.constant 0 : index
      %c0_127 = arith.constant 0 : index
      %239 = vector.load %arg6[%c0_125, %238, %c0_126, %c0_127] : memref<1x46x46x128xf32, #tpu.memory_space<vmem>>, vector<1x2x16x128xf32>
      %240 = vector.shape_cast %239 : vector<1x2x16x128xf32> to vector<2x16x128xf32>
      %c21 = arith.constant 21 : index
      %c0_128 = arith.constant 0 : index
      %241 = vector.load %arg2[%c21, %c0_128] : memref<49x128xf32, #tpu.memory_space<vmem>>, vector<1x128xf32>
      %242 = vector.shape_cast %241 : vector<1x128xf32> to vector<128xf32>
      %243 = vector.shape_cast %242 : vector<128xf32> to vector<1x1x128xf32>
      %244 = vector.broadcast %243 : vector<1x1x128xf32> to vector<2x16x128xf32>
      %245 = arith.mulf %244, %240 : vector<2x16x128xf32>
      %246 = arith.addf %235, %245 : vector<2x16x128xf32>
      %c15_i32_129 = arith.constant 15 : i32
      %247 = arith.addi %3, %c15_i32_129 : i32
      %c0_i32_130 = arith.constant 0 : i32
      %248 = arith.addi %247, %c0_i32_130 : i32
      %c0_131 = arith.constant 0 : index
      %249 = arith.index_cast %248 : i32 to index
      %c5_132 = arith.constant 5 : index
      %c0_133 = arith.constant 0 : index
      %250 = vector.load %arg6[%c0_131, %249, %c5_132, %c0_133] : memref<1x46x46x128xf32, #tpu.memory_space<vmem>>, vector<1x2x16x128xf32>
      %251 = vector.shape_cast %250 : vector<1x2x16x128xf32> to vector<2x16x128xf32>
      %c22 = arith.constant 22 : index
      %c0_134 = arith.constant 0 : index
      %252 = vector.load %arg2[%c22, %c0_134] : memref<49x128xf32, #tpu.memory_space<vmem>>, vector<1x128xf32>
      %253 = vector.shape_cast %252 : vector<1x128xf32> to vector<128xf32>
      %254 = vector.shape_cast %253 : vector<128xf32> to vector<1x1x128xf32>
      %255 = vector.broadcast %254 : vector<1x1x128xf32> to vector<2x16x128xf32>
      %256 = arith.mulf %255, %251 : vector<2x16x128xf32>
      %257 = arith.addf %246, %256 : vector<2x16x128xf32>
      %c15_i32_135 = arith.constant 15 : i32
      %258 = arith.addi %3, %c15_i32_135 : i32
      %c0_i32_136 = arith.constant 0 : i32
      %259 = arith.addi %258, %c0_i32_136 : i32
      %c0_137 = arith.constant 0 : index
      %260 = arith.index_cast %259 : i32 to index
      %c10_138 = arith.constant 10 : index
      %c0_139 = arith.constant 0 : index
      %261 = vector.load %arg6[%c0_137, %260, %c10_138, %c0_139] : memref<1x46x46x128xf32, #tpu.memory_space<vmem>>, vector<1x2x16x128xf32>
      %262 = vector.shape_cast %261 : vector<1x2x16x128xf32> to vector<2x16x128xf32>
      %c23 = arith.constant 23 : index
      %c0_140 = arith.constant 0 : index
      %263 = vector.load %arg2[%c23, %c0_140] : memref<49x128xf32, #tpu.memory_space<vmem>>, vector<1x128xf32>
      %264 = vector.shape_cast %263 : vector<1x128xf32> to vector<128xf32>
      %265 = vector.shape_cast %264 : vector<128xf32> to vector<1x1x128xf32>
      %266 = vector.broadcast %265 : vector<1x1x128xf32> to vector<2x16x128xf32>
      %267 = arith.mulf %266, %262 : vector<2x16x128xf32>
      %268 = arith.addf %257, %267 : vector<2x16x128xf32>
      %c15_i32_141 = arith.constant 15 : i32
      %269 = arith.addi %3, %c15_i32_141 : i32
      %c0_i32_142 = arith.constant 0 : i32
      %270 = arith.addi %269, %c0_i32_142 : i32
      %c0_143 = arith.constant 0 : index
      %271 = arith.index_cast %270 : i32 to index
      %c15_144 = arith.constant 15 : index
      %c0_145 = arith.constant 0 : index
      %272 = vector.load %arg6[%c0_143, %271, %c15_144, %c0_145] : memref<1x46x46x128xf32, #tpu.memory_space<vmem>>, vector<1x2x16x128xf32>
      %273 = vector.shape_cast %272 : vector<1x2x16x128xf32> to vector<2x16x128xf32>
      %c24 = arith.constant 24 : index
      %c0_146 = arith.constant 0 : index
      %274 = vector.load %arg2[%c24, %c0_146] : memref<49x128xf32, #tpu.memory_space<vmem>>, vector<1x128xf32>
      %275 = vector.shape_cast %274 : vector<1x128xf32> to vector<128xf32>
      %276 = vector.shape_cast %275 : vector<128xf32> to vector<1x1x128xf32>
      %277 = vector.broadcast %276 : vector<1x1x128xf32> to vector<2x16x128xf32>
      %278 = arith.mulf %277, %273 : vector<2x16x128xf32>
      %279 = arith.addf %268, %278 : vector<2x16x128xf32>
      %cst_147 = arith.constant 0.000000e+00 : f32
      %280 = vector.broadcast %cst_147 : f32 to vector<2x16x128xf32>
      %c15_i32_148 = arith.constant 15 : i32
      %281 = arith.addi %3, %c15_i32_148 : i32
      %c0_i32_149 = arith.constant 0 : i32
      %282 = arith.addi %281, %c0_i32_149 : i32
      %c0_150 = arith.constant 0 : index
      %283 = arith.index_cast %282 : i32 to index
      %c20_151 = arith.constant 20 : index
      %c0_152 = arith.constant 0 : index
      %284 = vector.load %arg6[%c0_150, %283, %c20_151, %c0_152] : memref<1x46x46x128xf32, #tpu.memory_space<vmem>>, vector<1x2x16x128xf32>
      %285 = vector.shape_cast %284 : vector<1x2x16x128xf32> to vector<2x16x128xf32>
      %c25_153 = arith.constant 25 : index
      %c0_154 = arith.constant 0 : index
      %286 = vector.load %arg2[%c25_153, %c0_154] : memref<49x128xf32, #tpu.memory_space<vmem>>, vector<1x128xf32>
      %287 = vector.shape_cast %286 : vector<1x128xf32> to vector<128xf32>
      %288 = vector.shape_cast %287 : vector<128xf32> to vector<1x1x128xf32>
      %289 = vector.broadcast %288 : vector<1x1x128xf32> to vector<2x16x128xf32>
      %290 = arith.mulf %289, %285 : vector<2x16x128xf32>
      %291 = arith.addf %280, %290 : vector<2x16x128xf32>
      %c15_i32_155 = arith.constant 15 : i32
      %292 = arith.addi %3, %c15_i32_155 : i32
      %c0_i32_156 = arith.constant 0 : i32
      %293 = arith.addi %292, %c0_i32_156 : i32
      %c0_157 = arith.constant 0 : index
      %294 = arith.index_cast %293 : i32 to index
      %c25_158 = arith.constant 25 : index
      %c0_159 = arith.constant 0 : index
      %295 = vector.load %arg6[%c0_157, %294, %c25_158, %c0_159] : memref<1x46x46x128xf32, #tpu.memory_space<vmem>>, vector<1x2x16x128xf32>
      %296 = vector.shape_cast %295 : vector<1x2x16x128xf32> to vector<2x16x128xf32>
      %c26 = arith.constant 26 : index
      %c0_160 = arith.constant 0 : index
      %297 = vector.load %arg2[%c26, %c0_160] : memref<49x128xf32, #tpu.memory_space<vmem>>, vector<1x128xf32>
      %298 = vector.shape_cast %297 : vector<1x128xf32> to vector<128xf32>
      %299 = vector.shape_cast %298 : vector<128xf32> to vector<1x1x128xf32>
      %300 = vector.broadcast %299 : vector<1x1x128xf32> to vector<2x16x128xf32>
      %301 = arith.mulf %300, %296 : vector<2x16x128xf32>
      %302 = arith.addf %291, %301 : vector<2x16x128xf32>
      %c15_i32_161 = arith.constant 15 : i32
      %303 = arith.addi %3, %c15_i32_161 : i32
      %c0_i32_162 = arith.constant 0 : i32
      %304 = arith.addi %303, %c0_i32_162 : i32
      %c0_163 = arith.constant 0 : index
      %305 = arith.index_cast %304 : i32 to index
      %c30_164 = arith.constant 30 : index
      %c0_165 = arith.constant 0 : index
      %306 = vector.load %arg6[%c0_163, %305, %c30_164, %c0_165] : memref<1x46x46x128xf32, #tpu.memory_space<vmem>>, vector<1x2x16x128xf32>
      %307 = vector.shape_cast %306 : vector<1x2x16x128xf32> to vector<2x16x128xf32>
      %c27 = arith.constant 27 : index
      %c0_166 = arith.constant 0 : index
      %308 = vector.load %arg2[%c27, %c0_166] : memref<49x128xf32, #tpu.memory_space<vmem>>, vector<1x128xf32>
      %309 = vector.shape_cast %308 : vector<1x128xf32> to vector<128xf32>
      %310 = vector.shape_cast %309 : vector<128xf32> to vector<1x1x128xf32>
      %311 = vector.broadcast %310 : vector<1x1x128xf32> to vector<2x16x128xf32>
      %312 = arith.mulf %311, %307 : vector<2x16x128xf32>
      %313 = arith.addf %302, %312 : vector<2x16x128xf32>
      %c15_i32_167 = arith.constant 15 : i32
      %314 = arith.addi %3, %c15_i32_167 : i32
      %c5_i32 = arith.constant 5 : i32
      %315 = arith.addi %314, %c5_i32 : i32
      %c0_168 = arith.constant 0 : index
      %316 = arith.index_cast %315 : i32 to index
      %c0_169 = arith.constant 0 : index
      %c0_170 = arith.constant 0 : index
      %317 = vector.load %arg6[%c0_168, %316, %c0_169, %c0_170] : memref<1x46x46x128xf32, #tpu.memory_space<vmem>>, vector<1x2x16x128xf32>
      %318 = vector.shape_cast %317 : vector<1x2x16x128xf32> to vector<2x16x128xf32>
      %c28 = arith.constant 28 : index
      %c0_171 = arith.constant 0 : index
      %319 = vector.load %arg2[%c28, %c0_171] : memref<49x128xf32, #tpu.memory_space<vmem>>, vector<1x128xf32>
      %320 = vector.shape_cast %319 : vector<1x128xf32> to vector<128xf32>
      %321 = vector.shape_cast %320 : vector<128xf32> to vector<1x1x128xf32>
      %322 = vector.broadcast %321 : vector<1x1x128xf32> to vector<2x16x128xf32>
      %323 = arith.mulf %322, %318 : vector<2x16x128xf32>
      %324 = arith.addf %313, %323 : vector<2x16x128xf32>
      %c15_i32_172 = arith.constant 15 : i32
      %325 = arith.addi %3, %c15_i32_172 : i32
      %c5_i32_173 = arith.constant 5 : i32
      %326 = arith.addi %325, %c5_i32_173 : i32
      %c0_174 = arith.constant 0 : index
      %327 = arith.index_cast %326 : i32 to index
      %c5_175 = arith.constant 5 : index
      %c0_176 = arith.constant 0 : index
      %328 = vector.load %arg6[%c0_174, %327, %c5_175, %c0_176] : memref<1x46x46x128xf32, #tpu.memory_space<vmem>>, vector<1x2x16x128xf32>
      %329 = vector.shape_cast %328 : vector<1x2x16x128xf32> to vector<2x16x128xf32>
      %c29 = arith.constant 29 : index
      %c0_177 = arith.constant 0 : index
      %330 = vector.load %arg2[%c29, %c0_177] : memref<49x128xf32, #tpu.memory_space<vmem>>, vector<1x128xf32>
      %331 = vector.shape_cast %330 : vector<1x128xf32> to vector<128xf32>
      %332 = vector.shape_cast %331 : vector<128xf32> to vector<1x1x128xf32>
      %333 = vector.broadcast %332 : vector<1x1x128xf32> to vector<2x16x128xf32>
      %334 = arith.mulf %333, %329 : vector<2x16x128xf32>
      %335 = arith.addf %324, %334 : vector<2x16x128xf32>
      %c15_i32_178 = arith.constant 15 : i32
      %336 = arith.addi %3, %c15_i32_178 : i32
      %c5_i32_179 = arith.constant 5 : i32
      %337 = arith.addi %336, %c5_i32_179 : i32
      %c0_180 = arith.constant 0 : index
      %338 = arith.index_cast %337 : i32 to index
      %c10_181 = arith.constant 10 : index
      %c0_182 = arith.constant 0 : index
      %339 = vector.load %arg6[%c0_180, %338, %c10_181, %c0_182] : memref<1x46x46x128xf32, #tpu.memory_space<vmem>>, vector<1x2x16x128xf32>
      %340 = vector.shape_cast %339 : vector<1x2x16x128xf32> to vector<2x16x128xf32>
      %c30_183 = arith.constant 30 : index
      %c0_184 = arith.constant 0 : index
      %341 = vector.load %arg2[%c30_183, %c0_184] : memref<49x128xf32, #tpu.memory_space<vmem>>, vector<1x128xf32>
      %342 = vector.shape_cast %341 : vector<1x128xf32> to vector<128xf32>
      %343 = vector.shape_cast %342 : vector<128xf32> to vector<1x1x128xf32>
      %344 = vector.broadcast %343 : vector<1x1x128xf32> to vector<2x16x128xf32>
      %345 = arith.mulf %344, %340 : vector<2x16x128xf32>
      %346 = arith.addf %335, %345 : vector<2x16x128xf32>
      %c15_i32_185 = arith.constant 15 : i32
      %347 = arith.addi %3, %c15_i32_185 : i32
      %c5_i32_186 = arith.constant 5 : i32
      %348 = arith.addi %347, %c5_i32_186 : i32
      %c0_187 = arith.constant 0 : index
      %349 = arith.index_cast %348 : i32 to index
      %c15_188 = arith.constant 15 : index
      %c0_189 = arith.constant 0 : index
      %350 = vector.load %arg6[%c0_187, %349, %c15_188, %c0_189] : memref<1x46x46x128xf32, #tpu.memory_space<vmem>>, vector<1x2x16x128xf32>
      %351 = vector.shape_cast %350 : vector<1x2x16x128xf32> to vector<2x16x128xf32>
      %c31 = arith.constant 31 : index
      %c0_190 = arith.constant 0 : index
      %352 = vector.load %arg2[%c31, %c0_190] : memref<49x128xf32, #tpu.memory_space<vmem>>, vector<1x128xf32>
      %353 = vector.shape_cast %352 : vector<1x128xf32> to vector<128xf32>
      %354 = vector.shape_cast %353 : vector<128xf32> to vector<1x1x128xf32>
      %355 = vector.broadcast %354 : vector<1x1x128xf32> to vector<2x16x128xf32>
      %356 = arith.mulf %355, %351 : vector<2x16x128xf32>
      %357 = arith.addf %346, %356 : vector<2x16x128xf32>
      %c15_i32_191 = arith.constant 15 : i32
      %358 = arith.addi %3, %c15_i32_191 : i32
      %c5_i32_192 = arith.constant 5 : i32
      %359 = arith.addi %358, %c5_i32_192 : i32
      %c0_193 = arith.constant 0 : index
      %360 = arith.index_cast %359 : i32 to index
      %c20_194 = arith.constant 20 : index
      %c0_195 = arith.constant 0 : index
      %361 = vector.load %arg6[%c0_193, %360, %c20_194, %c0_195] : memref<1x46x46x128xf32, #tpu.memory_space<vmem>>, vector<1x2x16x128xf32>
      %362 = vector.shape_cast %361 : vector<1x2x16x128xf32> to vector<2x16x128xf32>
      %c32 = arith.constant 32 : index
      %c0_196 = arith.constant 0 : index
      %363 = vector.load %arg2[%c32, %c0_196] : memref<49x128xf32, #tpu.memory_space<vmem>>, vector<1x128xf32>
      %364 = vector.shape_cast %363 : vector<1x128xf32> to vector<128xf32>
      %365 = vector.shape_cast %364 : vector<128xf32> to vector<1x1x128xf32>
      %366 = vector.broadcast %365 : vector<1x1x128xf32> to vector<2x16x128xf32>
      %367 = arith.mulf %366, %362 : vector<2x16x128xf32>
      %368 = arith.addf %357, %367 : vector<2x16x128xf32>
      %c15_i32_197 = arith.constant 15 : i32
      %369 = arith.addi %3, %c15_i32_197 : i32
      %c5_i32_198 = arith.constant 5 : i32
      %370 = arith.addi %369, %c5_i32_198 : i32
      %c0_199 = arith.constant 0 : index
      %371 = arith.index_cast %370 : i32 to index
      %c25_200 = arith.constant 25 : index
      %c0_201 = arith.constant 0 : index
      %372 = vector.load %arg6[%c0_199, %371, %c25_200, %c0_201] : memref<1x46x46x128xf32, #tpu.memory_space<vmem>>, vector<1x2x16x128xf32>
      %373 = vector.shape_cast %372 : vector<1x2x16x128xf32> to vector<2x16x128xf32>
      %c33 = arith.constant 33 : index
      %c0_202 = arith.constant 0 : index
      %374 = vector.load %arg2[%c33, %c0_202] : memref<49x128xf32, #tpu.memory_space<vmem>>, vector<1x128xf32>
      %375 = vector.shape_cast %374 : vector<1x128xf32> to vector<128xf32>
      %376 = vector.shape_cast %375 : vector<128xf32> to vector<1x1x128xf32>
      %377 = vector.broadcast %376 : vector<1x1x128xf32> to vector<2x16x128xf32>
      %378 = arith.mulf %377, %373 : vector<2x16x128xf32>
      %379 = arith.addf %368, %378 : vector<2x16x128xf32>
      %c15_i32_203 = arith.constant 15 : i32
      %380 = arith.addi %3, %c15_i32_203 : i32
      %c5_i32_204 = arith.constant 5 : i32
      %381 = arith.addi %380, %c5_i32_204 : i32
      %c0_205 = arith.constant 0 : index
      %382 = arith.index_cast %381 : i32 to index
      %c30_206 = arith.constant 30 : index
      %c0_207 = arith.constant 0 : index
      %383 = vector.load %arg6[%c0_205, %382, %c30_206, %c0_207] : memref<1x46x46x128xf32, #tpu.memory_space<vmem>>, vector<1x2x16x128xf32>
      %384 = vector.shape_cast %383 : vector<1x2x16x128xf32> to vector<2x16x128xf32>
      %c34 = arith.constant 34 : index
      %c0_208 = arith.constant 0 : index
      %385 = vector.load %arg2[%c34, %c0_208] : memref<49x128xf32, #tpu.memory_space<vmem>>, vector<1x128xf32>
      %386 = vector.shape_cast %385 : vector<1x128xf32> to vector<128xf32>
      %387 = vector.shape_cast %386 : vector<128xf32> to vector<1x1x128xf32>
      %388 = vector.broadcast %387 : vector<1x1x128xf32> to vector<2x16x128xf32>
      %389 = arith.mulf %388, %384 : vector<2x16x128xf32>
      %390 = arith.addf %379, %389 : vector<2x16x128xf32>
      %c15_i32_209 = arith.constant 15 : i32
      %391 = arith.addi %3, %c15_i32_209 : i32
      %c10_i32 = arith.constant 10 : i32
      %392 = arith.addi %391, %c10_i32 : i32
      %c0_210 = arith.constant 0 : index
      %393 = arith.index_cast %392 : i32 to index
      %c0_211 = arith.constant 0 : index
      %c0_212 = arith.constant 0 : index
      %394 = vector.load %arg6[%c0_210, %393, %c0_211, %c0_212] : memref<1x46x46x128xf32, #tpu.memory_space<vmem>>, vector<1x2x16x128xf32>
      %395 = vector.shape_cast %394 : vector<1x2x16x128xf32> to vector<2x16x128xf32>
      %c35 = arith.constant 35 : index
      %c0_213 = arith.constant 0 : index
      %396 = vector.load %arg2[%c35, %c0_213] : memref<49x128xf32, #tpu.memory_space<vmem>>, vector<1x128xf32>
      %397 = vector.shape_cast %396 : vector<1x128xf32> to vector<128xf32>
      %398 = vector.shape_cast %397 : vector<128xf32> to vector<1x1x128xf32>
      %399 = vector.broadcast %398 : vector<1x1x128xf32> to vector<2x16x128xf32>
      %400 = arith.mulf %399, %395 : vector<2x16x128xf32>
      %401 = arith.addf %390, %400 : vector<2x16x128xf32>
      %c15_i32_214 = arith.constant 15 : i32
      %402 = arith.addi %3, %c15_i32_214 : i32
      %c10_i32_215 = arith.constant 10 : i32
      %403 = arith.addi %402, %c10_i32_215 : i32
      %c0_216 = arith.constant 0 : index
      %404 = arith.index_cast %403 : i32 to index
      %c5_217 = arith.constant 5 : index
      %c0_218 = arith.constant 0 : index
      %405 = vector.load %arg6[%c0_216, %404, %c5_217, %c0_218] : memref<1x46x46x128xf32, #tpu.memory_space<vmem>>, vector<1x2x16x128xf32>
      %406 = vector.shape_cast %405 : vector<1x2x16x128xf32> to vector<2x16x128xf32>
      %c36 = arith.constant 36 : index
      %c0_219 = arith.constant 0 : index
      %407 = vector.load %arg2[%c36, %c0_219] : memref<49x128xf32, #tpu.memory_space<vmem>>, vector<1x128xf32>
      %408 = vector.shape_cast %407 : vector<1x128xf32> to vector<128xf32>
      %409 = vector.shape_cast %408 : vector<128xf32> to vector<1x1x128xf32>
      %410 = vector.broadcast %409 : vector<1x1x128xf32> to vector<2x16x128xf32>
      %411 = arith.mulf %410, %406 : vector<2x16x128xf32>
      %412 = arith.addf %401, %411 : vector<2x16x128xf32>
      %c15_i32_220 = arith.constant 15 : i32
      %413 = arith.addi %3, %c15_i32_220 : i32
      %c10_i32_221 = arith.constant 10 : i32
      %414 = arith.addi %413, %c10_i32_221 : i32
      %c0_222 = arith.constant 0 : index
      %415 = arith.index_cast %414 : i32 to index
      %c10_223 = arith.constant 10 : index
      %c0_224 = arith.constant 0 : index
      %416 = vector.load %arg6[%c0_222, %415, %c10_223, %c0_224] : memref<1x46x46x128xf32, #tpu.memory_space<vmem>>, vector<1x2x16x128xf32>
      %417 = vector.shape_cast %416 : vector<1x2x16x128xf32> to vector<2x16x128xf32>
      %c37 = arith.constant 37 : index
      %c0_225 = arith.constant 0 : index
      %418 = vector.load %arg2[%c37, %c0_225] : memref<49x128xf32, #tpu.memory_space<vmem>>, vector<1x128xf32>
      %419 = vector.shape_cast %418 : vector<1x128xf32> to vector<128xf32>
      %420 = vector.shape_cast %419 : vector<128xf32> to vector<1x1x128xf32>
      %421 = vector.broadcast %420 : vector<1x1x128xf32> to vector<2x16x128xf32>
      %422 = arith.mulf %421, %417 : vector<2x16x128xf32>
      %423 = arith.addf %412, %422 : vector<2x16x128xf32>
      %c15_i32_226 = arith.constant 15 : i32
      %424 = arith.addi %3, %c15_i32_226 : i32
      %c10_i32_227 = arith.constant 10 : i32
      %425 = arith.addi %424, %c10_i32_227 : i32
      %c0_228 = arith.constant 0 : index
      %426 = arith.index_cast %425 : i32 to index
      %c15_229 = arith.constant 15 : index
      %c0_230 = arith.constant 0 : index
      %427 = vector.load %arg6[%c0_228, %426, %c15_229, %c0_230] : memref<1x46x46x128xf32, #tpu.memory_space<vmem>>, vector<1x2x16x128xf32>
      %428 = vector.shape_cast %427 : vector<1x2x16x128xf32> to vector<2x16x128xf32>
      %c38 = arith.constant 38 : index
      %c0_231 = arith.constant 0 : index
      %429 = vector.load %arg2[%c38, %c0_231] : memref<49x128xf32, #tpu.memory_space<vmem>>, vector<1x128xf32>
      %430 = vector.shape_cast %429 : vector<1x128xf32> to vector<128xf32>
      %431 = vector.shape_cast %430 : vector<128xf32> to vector<1x1x128xf32>
      %432 = vector.broadcast %431 : vector<1x1x128xf32> to vector<2x16x128xf32>
      %433 = arith.mulf %432, %428 : vector<2x16x128xf32>
      %434 = arith.addf %423, %433 : vector<2x16x128xf32>
      %c15_i32_232 = arith.constant 15 : i32
      %435 = arith.addi %3, %c15_i32_232 : i32
      %c10_i32_233 = arith.constant 10 : i32
      %436 = arith.addi %435, %c10_i32_233 : i32
      %c0_234 = arith.constant 0 : index
      %437 = arith.index_cast %436 : i32 to index
      %c20_235 = arith.constant 20 : index
      %c0_236 = arith.constant 0 : index
      %438 = vector.load %arg6[%c0_234, %437, %c20_235, %c0_236] : memref<1x46x46x128xf32, #tpu.memory_space<vmem>>, vector<1x2x16x128xf32>
      %439 = vector.shape_cast %438 : vector<1x2x16x128xf32> to vector<2x16x128xf32>
      %c39 = arith.constant 39 : index
      %c0_237 = arith.constant 0 : index
      %440 = vector.load %arg2[%c39, %c0_237] : memref<49x128xf32, #tpu.memory_space<vmem>>, vector<1x128xf32>
      %441 = vector.shape_cast %440 : vector<1x128xf32> to vector<128xf32>
      %442 = vector.shape_cast %441 : vector<128xf32> to vector<1x1x128xf32>
      %443 = vector.broadcast %442 : vector<1x1x128xf32> to vector<2x16x128xf32>
      %444 = arith.mulf %443, %439 : vector<2x16x128xf32>
      %445 = arith.addf %434, %444 : vector<2x16x128xf32>
      %c15_i32_238 = arith.constant 15 : i32
      %446 = arith.addi %3, %c15_i32_238 : i32
      %c10_i32_239 = arith.constant 10 : i32
      %447 = arith.addi %446, %c10_i32_239 : i32
      %c0_240 = arith.constant 0 : index
      %448 = arith.index_cast %447 : i32 to index
      %c25_241 = arith.constant 25 : index
      %c0_242 = arith.constant 0 : index
      %449 = vector.load %arg6[%c0_240, %448, %c25_241, %c0_242] : memref<1x46x46x128xf32, #tpu.memory_space<vmem>>, vector<1x2x16x128xf32>
      %450 = vector.shape_cast %449 : vector<1x2x16x128xf32> to vector<2x16x128xf32>
      %c40 = arith.constant 40 : index
      %c0_243 = arith.constant 0 : index
      %451 = vector.load %arg2[%c40, %c0_243] : memref<49x128xf32, #tpu.memory_space<vmem>>, vector<1x128xf32>
      %452 = vector.shape_cast %451 : vector<1x128xf32> to vector<128xf32>
      %453 = vector.shape_cast %452 : vector<128xf32> to vector<1x1x128xf32>
      %454 = vector.broadcast %453 : vector<1x1x128xf32> to vector<2x16x128xf32>
      %455 = arith.mulf %454, %450 : vector<2x16x128xf32>
      %456 = arith.addf %445, %455 : vector<2x16x128xf32>
      %c15_i32_244 = arith.constant 15 : i32
      %457 = arith.addi %3, %c15_i32_244 : i32
      %c10_i32_245 = arith.constant 10 : i32
      %458 = arith.addi %457, %c10_i32_245 : i32
      %c0_246 = arith.constant 0 : index
      %459 = arith.index_cast %458 : i32 to index
      %c30_247 = arith.constant 30 : index
      %c0_248 = arith.constant 0 : index
      %460 = vector.load %arg6[%c0_246, %459, %c30_247, %c0_248] : memref<1x46x46x128xf32, #tpu.memory_space<vmem>>, vector<1x2x16x128xf32>
      %461 = vector.shape_cast %460 : vector<1x2x16x128xf32> to vector<2x16x128xf32>
      %c41 = arith.constant 41 : index
      %c0_249 = arith.constant 0 : index
      %462 = vector.load %arg2[%c41, %c0_249] : memref<49x128xf32, #tpu.memory_space<vmem>>, vector<1x128xf32>
      %463 = vector.shape_cast %462 : vector<1x128xf32> to vector<128xf32>
      %464 = vector.shape_cast %463 : vector<128xf32> to vector<1x1x128xf32>
      %465 = vector.broadcast %464 : vector<1x1x128xf32> to vector<2x16x128xf32>
      %466 = arith.mulf %465, %461 : vector<2x16x128xf32>
      %467 = arith.addf %456, %466 : vector<2x16x128xf32>
      %c15_i32_250 = arith.constant 15 : i32
      %468 = arith.addi %3, %c15_i32_250 : i32
      %c15_i32_251 = arith.constant 15 : i32
      %469 = arith.addi %468, %c15_i32_251 : i32
      %c0_252 = arith.constant 0 : index
      %470 = arith.index_cast %469 : i32 to index
      %c0_253 = arith.constant 0 : index
      %c0_254 = arith.constant 0 : index
      %471 = vector.load %arg6[%c0_252, %470, %c0_253, %c0_254] : memref<1x46x46x128xf32, #tpu.memory_space<vmem>>, vector<1x2x16x128xf32>
      %472 = vector.shape_cast %471 : vector<1x2x16x128xf32> to vector<2x16x128xf32>
      %c42 = arith.constant 42 : index
      %c0_255 = arith.constant 0 : index
      %473 = vector.load %arg2[%c42, %c0_255] : memref<49x128xf32, #tpu.memory_space<vmem>>, vector<1x128xf32>
      %474 = vector.shape_cast %473 : vector<1x128xf32> to vector<128xf32>
      %475 = vector.shape_cast %474 : vector<128xf32> to vector<1x1x128xf32>
      %476 = vector.broadcast %475 : vector<1x1x128xf32> to vector<2x16x128xf32>
      %477 = arith.mulf %476, %472 : vector<2x16x128xf32>
      %478 = arith.addf %467, %477 : vector<2x16x128xf32>
      %c15_i32_256 = arith.constant 15 : i32
      %479 = arith.addi %3, %c15_i32_256 : i32
      %c15_i32_257 = arith.constant 15 : i32
      %480 = arith.addi %479, %c15_i32_257 : i32
      %c0_258 = arith.constant 0 : index
      %481 = arith.index_cast %480 : i32 to index
      %c5_259 = arith.constant 5 : index
      %c0_260 = arith.constant 0 : index
      %482 = vector.load %arg6[%c0_258, %481, %c5_259, %c0_260] : memref<1x46x46x128xf32, #tpu.memory_space<vmem>>, vector<1x2x16x128xf32>
      %483 = vector.shape_cast %482 : vector<1x2x16x128xf32> to vector<2x16x128xf32>
      %c43 = arith.constant 43 : index
      %c0_261 = arith.constant 0 : index
      %484 = vector.load %arg2[%c43, %c0_261] : memref<49x128xf32, #tpu.memory_space<vmem>>, vector<1x128xf32>
      %485 = vector.shape_cast %484 : vector<1x128xf32> to vector<128xf32>
      %486 = vector.shape_cast %485 : vector<128xf32> to vector<1x1x128xf32>
      %487 = vector.broadcast %486 : vector<1x1x128xf32> to vector<2x16x128xf32>
      %488 = arith.mulf %487, %483 : vector<2x16x128xf32>
      %489 = arith.addf %478, %488 : vector<2x16x128xf32>
      %c15_i32_262 = arith.constant 15 : i32
      %490 = arith.addi %3, %c15_i32_262 : i32
      %c15_i32_263 = arith.constant 15 : i32
      %491 = arith.addi %490, %c15_i32_263 : i32
      %c0_264 = arith.constant 0 : index
      %492 = arith.index_cast %491 : i32 to index
      %c10_265 = arith.constant 10 : index
      %c0_266 = arith.constant 0 : index
      %493 = vector.load %arg6[%c0_264, %492, %c10_265, %c0_266] : memref<1x46x46x128xf32, #tpu.memory_space<vmem>>, vector<1x2x16x128xf32>
      %494 = vector.shape_cast %493 : vector<1x2x16x128xf32> to vector<2x16x128xf32>
      %c44 = arith.constant 44 : index
      %c0_267 = arith.constant 0 : index
      %495 = vector.load %arg2[%c44, %c0_267] : memref<49x128xf32, #tpu.memory_space<vmem>>, vector<1x128xf32>
      %496 = vector.shape_cast %495 : vector<1x128xf32> to vector<128xf32>
      %497 = vector.shape_cast %496 : vector<128xf32> to vector<1x1x128xf32>
      %498 = vector.broadcast %497 : vector<1x1x128xf32> to vector<2x16x128xf32>
      %499 = arith.mulf %498, %494 : vector<2x16x128xf32>
      %500 = arith.addf %489, %499 : vector<2x16x128xf32>
      %c15_i32_268 = arith.constant 15 : i32
      %501 = arith.addi %3, %c15_i32_268 : i32
      %c15_i32_269 = arith.constant 15 : i32
      %502 = arith.addi %501, %c15_i32_269 : i32
      %c0_270 = arith.constant 0 : index
      %503 = arith.index_cast %502 : i32 to index
      %c15_271 = arith.constant 15 : index
      %c0_272 = arith.constant 0 : index
      %504 = vector.load %arg6[%c0_270, %503, %c15_271, %c0_272] : memref<1x46x46x128xf32, #tpu.memory_space<vmem>>, vector<1x2x16x128xf32>
      %505 = vector.shape_cast %504 : vector<1x2x16x128xf32> to vector<2x16x128xf32>
      %c45 = arith.constant 45 : index
      %c0_273 = arith.constant 0 : index
      %506 = vector.load %arg2[%c45, %c0_273] : memref<49x128xf32, #tpu.memory_space<vmem>>, vector<1x128xf32>
      %507 = vector.shape_cast %506 : vector<1x128xf32> to vector<128xf32>
      %508 = vector.shape_cast %507 : vector<128xf32> to vector<1x1x128xf32>
      %509 = vector.broadcast %508 : vector<1x1x128xf32> to vector<2x16x128xf32>
      %510 = arith.mulf %509, %505 : vector<2x16x128xf32>
      %511 = arith.addf %500, %510 : vector<2x16x128xf32>
      %c15_i32_274 = arith.constant 15 : i32
      %512 = arith.addi %3, %c15_i32_274 : i32
      %c15_i32_275 = arith.constant 15 : i32
      %513 = arith.addi %512, %c15_i32_275 : i32
      %c0_276 = arith.constant 0 : index
      %514 = arith.index_cast %513 : i32 to index
      %c20_277 = arith.constant 20 : index
      %c0_278 = arith.constant 0 : index
      %515 = vector.load %arg6[%c0_276, %514, %c20_277, %c0_278] : memref<1x46x46x128xf32, #tpu.memory_space<vmem>>, vector<1x2x16x128xf32>
      %516 = vector.shape_cast %515 : vector<1x2x16x128xf32> to vector<2x16x128xf32>
      %c46 = arith.constant 46 : index
      %c0_279 = arith.constant 0 : index
      %517 = vector.load %arg2[%c46, %c0_279] : memref<49x128xf32, #tpu.memory_space<vmem>>, vector<1x128xf32>
      %518 = vector.shape_cast %517 : vector<1x128xf32> to vector<128xf32>
      %519 = vector.shape_cast %518 : vector<128xf32> to vector<1x1x128xf32>
      %520 = vector.broadcast %519 : vector<1x1x128xf32> to vector<2x16x128xf32>
      %521 = arith.mulf %520, %516 : vector<2x16x128xf32>
      %522 = arith.addf %511, %521 : vector<2x16x128xf32>
      %c15_i32_280 = arith.constant 15 : i32
      %523 = arith.addi %3, %c15_i32_280 : i32
      %c15_i32_281 = arith.constant 15 : i32
      %524 = arith.addi %523, %c15_i32_281 : i32
      %c0_282 = arith.constant 0 : index
      %525 = arith.index_cast %524 : i32 to index
      %c25_283 = arith.constant 25 : index
      %c0_284 = arith.constant 0 : index
      %526 = vector.load %arg6[%c0_282, %525, %c25_283, %c0_284] : memref<1x46x46x128xf32, #tpu.memory_space<vmem>>, vector<1x2x16x128xf32>
      %527 = vector.shape_cast %526 : vector<1x2x16x128xf32> to vector<2x16x128xf32>
      %c47 = arith.constant 47 : index
      %c0_285 = arith.constant 0 : index
      %528 = vector.load %arg2[%c47, %c0_285] : memref<49x128xf32, #tpu.memory_space<vmem>>, vector<1x128xf32>
      %529 = vector.shape_cast %528 : vector<1x128xf32> to vector<128xf32>
      %530 = vector.shape_cast %529 : vector<128xf32> to vector<1x1x128xf32>
      %531 = vector.broadcast %530 : vector<1x1x128xf32> to vector<2x16x128xf32>
      %532 = arith.mulf %531, %527 : vector<2x16x128xf32>
      %533 = arith.addf %522, %532 : vector<2x16x128xf32>
      %c15_i32_286 = arith.constant 15 : i32
      %534 = arith.addi %3, %c15_i32_286 : i32
      %c15_i32_287 = arith.constant 15 : i32
      %535 = arith.addi %534, %c15_i32_287 : i32
      %c0_288 = arith.constant 0 : index
      %536 = arith.index_cast %535 : i32 to index
      %c30_289 = arith.constant 30 : index
      %c0_290 = arith.constant 0 : index
      %537 = vector.load %arg6[%c0_288, %536, %c30_289, %c0_290] : memref<1x46x46x128xf32, #tpu.memory_space<vmem>>, vector<1x2x16x128xf32>
      %538 = vector.shape_cast %537 : vector<1x2x16x128xf32> to vector<2x16x128xf32>
      %c48 = arith.constant 48 : index
      %c0_291 = arith.constant 0 : index
      %539 = vector.load %arg2[%c48, %c0_291] : memref<49x128xf32, #tpu.memory_space<vmem>>, vector<1x128xf32>
      %540 = vector.shape_cast %539 : vector<1x128xf32> to vector<128xf32>
      %541 = vector.shape_cast %540 : vector<128xf32> to vector<1x1x128xf32>
      %542 = vector.broadcast %541 : vector<1x1x128xf32> to vector<2x16x128xf32>
      %543 = arith.mulf %542, %538 : vector<2x16x128xf32>
      %544 = arith.addf %533, %543 : vector<2x16x128xf32>
      %cst_292 = arith.constant 0.000000e+00 : f32
      %545 = vector.broadcast %cst_292 : f32 to vector<2x16x128xf32>
      %c15_i32_293 = arith.constant 15 : i32
      %546 = arith.addi %3, %c15_i32_293 : i32
      %c-6_i32 = arith.constant -6 : i32
      %547 = arith.addi %546, %c-6_i32 : i32
      %c0_294 = arith.constant 0 : index
      %548 = arith.index_cast %547 : i32 to index
      %c9_295 = arith.constant 9 : index
      %c0_296 = arith.constant 0 : index
      %549 = vector.load %arg6[%c0_294, %548, %c9_295, %c0_296] : memref<1x46x46x128xf32, #tpu.memory_space<vmem>>, vector<1x2x16x128xf32>
      %550 = vector.shape_cast %549 : vector<1x2x16x128xf32> to vector<2x16x128xf32>
      %c0_297 = arith.constant 0 : index
      %c0_298 = arith.constant 0 : index
      %551 = vector.load %arg3[%c0_297, %c0_298] : memref<25x128xf32, #tpu.memory_space<vmem>>, vector<1x128xf32>
      %552 = vector.shape_cast %551 : vector<1x128xf32> to vector<128xf32>
      %553 = vector.shape_cast %552 : vector<128xf32> to vector<1x1x128xf32>
      %554 = vector.broadcast %553 : vector<1x1x128xf32> to vector<2x16x128xf32>
      %555 = arith.mulf %554, %550 : vector<2x16x128xf32>
      %556 = arith.addf %545, %555 : vector<2x16x128xf32>
      %c15_i32_299 = arith.constant 15 : i32
      %557 = arith.addi %3, %c15_i32_299 : i32
      %c-6_i32_300 = arith.constant -6 : i32
      %558 = arith.addi %557, %c-6_i32_300 : i32
      %c0_301 = arith.constant 0 : index
      %559 = arith.index_cast %558 : i32 to index
      %c12_302 = arith.constant 12 : index
      %c0_303 = arith.constant 0 : index
      %560 = vector.load %arg6[%c0_301, %559, %c12_302, %c0_303] : memref<1x46x46x128xf32, #tpu.memory_space<vmem>>, vector<1x2x16x128xf32>
      %561 = vector.shape_cast %560 : vector<1x2x16x128xf32> to vector<2x16x128xf32>
      %c1_304 = arith.constant 1 : index
      %c0_305 = arith.constant 0 : index
      %562 = vector.load %arg3[%c1_304, %c0_305] : memref<25x128xf32, #tpu.memory_space<vmem>>, vector<1x128xf32>
      %563 = vector.shape_cast %562 : vector<1x128xf32> to vector<128xf32>
      %564 = vector.shape_cast %563 : vector<128xf32> to vector<1x1x128xf32>
      %565 = vector.broadcast %564 : vector<1x1x128xf32> to vector<2x16x128xf32>
      %566 = arith.mulf %565, %561 : vector<2x16x128xf32>
      %567 = arith.addf %556, %566 : vector<2x16x128xf32>
      %c15_i32_306 = arith.constant 15 : i32
      %568 = arith.addi %3, %c15_i32_306 : i32
      %c-6_i32_307 = arith.constant -6 : i32
      %569 = arith.addi %568, %c-6_i32_307 : i32
      %c0_308 = arith.constant 0 : index
      %570 = arith.index_cast %569 : i32 to index
      %c15_309 = arith.constant 15 : index
      %c0_310 = arith.constant 0 : index
      %571 = vector.load %arg6[%c0_308, %570, %c15_309, %c0_310] : memref<1x46x46x128xf32, #tpu.memory_space<vmem>>, vector<1x2x16x128xf32>
      %572 = vector.shape_cast %571 : vector<1x2x16x128xf32> to vector<2x16x128xf32>
      %c2_311 = arith.constant 2 : index
      %c0_312 = arith.constant 0 : index
      %573 = vector.load %arg3[%c2_311, %c0_312] : memref<25x128xf32, #tpu.memory_space<vmem>>, vector<1x128xf32>
      %574 = vector.shape_cast %573 : vector<1x128xf32> to vector<128xf32>
      %575 = vector.shape_cast %574 : vector<128xf32> to vector<1x1x128xf32>
      %576 = vector.broadcast %575 : vector<1x1x128xf32> to vector<2x16x128xf32>
      %577 = arith.mulf %576, %572 : vector<2x16x128xf32>
      %578 = arith.addf %567, %577 : vector<2x16x128xf32>
      %c15_i32_313 = arith.constant 15 : i32
      %579 = arith.addi %3, %c15_i32_313 : i32
      %c-6_i32_314 = arith.constant -6 : i32
      %580 = arith.addi %579, %c-6_i32_314 : i32
      %c0_315 = arith.constant 0 : index
      %581 = arith.index_cast %580 : i32 to index
      %c18_316 = arith.constant 18 : index
      %c0_317 = arith.constant 0 : index
      %582 = vector.load %arg6[%c0_315, %581, %c18_316, %c0_317] : memref<1x46x46x128xf32, #tpu.memory_space<vmem>>, vector<1x2x16x128xf32>
      %583 = vector.shape_cast %582 : vector<1x2x16x128xf32> to vector<2x16x128xf32>
      %c3_318 = arith.constant 3 : index
      %c0_319 = arith.constant 0 : index
      %584 = vector.load %arg3[%c3_318, %c0_319] : memref<25x128xf32, #tpu.memory_space<vmem>>, vector<1x128xf32>
      %585 = vector.shape_cast %584 : vector<1x128xf32> to vector<128xf32>
      %586 = vector.shape_cast %585 : vector<128xf32> to vector<1x1x128xf32>
      %587 = vector.broadcast %586 : vector<1x1x128xf32> to vector<2x16x128xf32>
      %588 = arith.mulf %587, %583 : vector<2x16x128xf32>
      %589 = arith.addf %578, %588 : vector<2x16x128xf32>
      %c15_i32_320 = arith.constant 15 : i32
      %590 = arith.addi %3, %c15_i32_320 : i32
      %c-6_i32_321 = arith.constant -6 : i32
      %591 = arith.addi %590, %c-6_i32_321 : i32
      %c0_322 = arith.constant 0 : index
      %592 = arith.index_cast %591 : i32 to index
      %c21_323 = arith.constant 21 : index
      %c0_324 = arith.constant 0 : index
      %593 = vector.load %arg6[%c0_322, %592, %c21_323, %c0_324] : memref<1x46x46x128xf32, #tpu.memory_space<vmem>>, vector<1x2x16x128xf32>
      %594 = vector.shape_cast %593 : vector<1x2x16x128xf32> to vector<2x16x128xf32>
      %c4_325 = arith.constant 4 : index
      %c0_326 = arith.constant 0 : index
      %595 = vector.load %arg3[%c4_325, %c0_326] : memref<25x128xf32, #tpu.memory_space<vmem>>, vector<1x128xf32>
      %596 = vector.shape_cast %595 : vector<1x128xf32> to vector<128xf32>
      %597 = vector.shape_cast %596 : vector<128xf32> to vector<1x1x128xf32>
      %598 = vector.broadcast %597 : vector<1x1x128xf32> to vector<2x16x128xf32>
      %599 = arith.mulf %598, %594 : vector<2x16x128xf32>
      %600 = arith.addf %589, %599 : vector<2x16x128xf32>
      %c15_i32_327 = arith.constant 15 : i32
      %601 = arith.addi %3, %c15_i32_327 : i32
      %c-3_i32 = arith.constant -3 : i32
      %602 = arith.addi %601, %c-3_i32 : i32
      %c0_328 = arith.constant 0 : index
      %603 = arith.index_cast %602 : i32 to index
      %c9_329 = arith.constant 9 : index
      %c0_330 = arith.constant 0 : index
      %604 = vector.load %arg6[%c0_328, %603, %c9_329, %c0_330] : memref<1x46x46x128xf32, #tpu.memory_space<vmem>>, vector<1x2x16x128xf32>
      %605 = vector.shape_cast %604 : vector<1x2x16x128xf32> to vector<2x16x128xf32>
      %c5_331 = arith.constant 5 : index
      %c0_332 = arith.constant 0 : index
      %606 = vector.load %arg3[%c5_331, %c0_332] : memref<25x128xf32, #tpu.memory_space<vmem>>, vector<1x128xf32>
      %607 = vector.shape_cast %606 : vector<1x128xf32> to vector<128xf32>
      %608 = vector.shape_cast %607 : vector<128xf32> to vector<1x1x128xf32>
      %609 = vector.broadcast %608 : vector<1x1x128xf32> to vector<2x16x128xf32>
      %610 = arith.mulf %609, %605 : vector<2x16x128xf32>
      %611 = arith.addf %600, %610 : vector<2x16x128xf32>
      %c15_i32_333 = arith.constant 15 : i32
      %612 = arith.addi %3, %c15_i32_333 : i32
      %c-3_i32_334 = arith.constant -3 : i32
      %613 = arith.addi %612, %c-3_i32_334 : i32
      %c0_335 = arith.constant 0 : index
      %614 = arith.index_cast %613 : i32 to index
      %c12_336 = arith.constant 12 : index
      %c0_337 = arith.constant 0 : index
      %615 = vector.load %arg6[%c0_335, %614, %c12_336, %c0_337] : memref<1x46x46x128xf32, #tpu.memory_space<vmem>>, vector<1x2x16x128xf32>
      %616 = vector.shape_cast %615 : vector<1x2x16x128xf32> to vector<2x16x128xf32>
      %c6_338 = arith.constant 6 : index
      %c0_339 = arith.constant 0 : index
      %617 = vector.load %arg3[%c6_338, %c0_339] : memref<25x128xf32, #tpu.memory_space<vmem>>, vector<1x128xf32>
      %618 = vector.shape_cast %617 : vector<1x128xf32> to vector<128xf32>
      %619 = vector.shape_cast %618 : vector<128xf32> to vector<1x1x128xf32>
      %620 = vector.broadcast %619 : vector<1x1x128xf32> to vector<2x16x128xf32>
      %621 = arith.mulf %620, %616 : vector<2x16x128xf32>
      %622 = arith.addf %611, %621 : vector<2x16x128xf32>
      %c15_i32_340 = arith.constant 15 : i32
      %623 = arith.addi %3, %c15_i32_340 : i32
      %c-3_i32_341 = arith.constant -3 : i32
      %624 = arith.addi %623, %c-3_i32_341 : i32
      %c0_342 = arith.constant 0 : index
      %625 = arith.index_cast %624 : i32 to index
      %c15_343 = arith.constant 15 : index
      %c0_344 = arith.constant 0 : index
      %626 = vector.load %arg6[%c0_342, %625, %c15_343, %c0_344] : memref<1x46x46x128xf32, #tpu.memory_space<vmem>>, vector<1x2x16x128xf32>
      %627 = vector.shape_cast %626 : vector<1x2x16x128xf32> to vector<2x16x128xf32>
      %c7_345 = arith.constant 7 : index
      %c0_346 = arith.constant 0 : index
      %628 = vector.load %arg3[%c7_345, %c0_346] : memref<25x128xf32, #tpu.memory_space<vmem>>, vector<1x128xf32>
      %629 = vector.shape_cast %628 : vector<1x128xf32> to vector<128xf32>
      %630 = vector.shape_cast %629 : vector<128xf32> to vector<1x1x128xf32>
      %631 = vector.broadcast %630 : vector<1x1x128xf32> to vector<2x16x128xf32>
      %632 = arith.mulf %631, %627 : vector<2x16x128xf32>
      %633 = arith.addf %622, %632 : vector<2x16x128xf32>
      %c15_i32_347 = arith.constant 15 : i32
      %634 = arith.addi %3, %c15_i32_347 : i32
      %c-3_i32_348 = arith.constant -3 : i32
      %635 = arith.addi %634, %c-3_i32_348 : i32
      %c0_349 = arith.constant 0 : index
      %636 = arith.index_cast %635 : i32 to index
      %c18_350 = arith.constant 18 : index
      %c0_351 = arith.constant 0 : index
      %637 = vector.load %arg6[%c0_349, %636, %c18_350, %c0_351] : memref<1x46x46x128xf32, #tpu.memory_space<vmem>>, vector<1x2x16x128xf32>
      %638 = vector.shape_cast %637 : vector<1x2x16x128xf32> to vector<2x16x128xf32>
      %c8_352 = arith.constant 8 : index
      %c0_353 = arith.constant 0 : index
      %639 = vector.load %arg3[%c8_352, %c0_353] : memref<25x128xf32, #tpu.memory_space<vmem>>, vector<1x128xf32>
      %640 = vector.shape_cast %639 : vector<1x128xf32> to vector<128xf32>
      %641 = vector.shape_cast %640 : vector<128xf32> to vector<1x1x128xf32>
      %642 = vector.broadcast %641 : vector<1x1x128xf32> to vector<2x16x128xf32>
      %643 = arith.mulf %642, %638 : vector<2x16x128xf32>
      %644 = arith.addf %633, %643 : vector<2x16x128xf32>
      %c15_i32_354 = arith.constant 15 : i32
      %645 = arith.addi %3, %c15_i32_354 : i32
      %c-3_i32_355 = arith.constant -3 : i32
      %646 = arith.addi %645, %c-3_i32_355 : i32
      %c0_356 = arith.constant 0 : index
      %647 = arith.index_cast %646 : i32 to index
      %c21_357 = arith.constant 21 : index
      %c0_358 = arith.constant 0 : index
      %648 = vector.load %arg6[%c0_356, %647, %c21_357, %c0_358] : memref<1x46x46x128xf32, #tpu.memory_space<vmem>>, vector<1x2x16x128xf32>
      %649 = vector.shape_cast %648 : vector<1x2x16x128xf32> to vector<2x16x128xf32>
      %c9_359 = arith.constant 9 : index
      %c0_360 = arith.constant 0 : index
      %650 = vector.load %arg3[%c9_359, %c0_360] : memref<25x128xf32, #tpu.memory_space<vmem>>, vector<1x128xf32>
      %651 = vector.shape_cast %650 : vector<1x128xf32> to vector<128xf32>
      %652 = vector.shape_cast %651 : vector<128xf32> to vector<1x1x128xf32>
      %653 = vector.broadcast %652 : vector<1x1x128xf32> to vector<2x16x128xf32>
      %654 = arith.mulf %653, %649 : vector<2x16x128xf32>
      %655 = arith.addf %644, %654 : vector<2x16x128xf32>
      %c15_i32_361 = arith.constant 15 : i32
      %656 = arith.addi %3, %c15_i32_361 : i32
      %c0_i32_362 = arith.constant 0 : i32
      %657 = arith.addi %656, %c0_i32_362 : i32
      %c0_363 = arith.constant 0 : index
      %658 = arith.index_cast %657 : i32 to index
      %c9_364 = arith.constant 9 : index
      %c0_365 = arith.constant 0 : index
      %659 = vector.load %arg6[%c0_363, %658, %c9_364, %c0_365] : memref<1x46x46x128xf32, #tpu.memory_space<vmem>>, vector<1x2x16x128xf32>
      %660 = vector.shape_cast %659 : vector<1x2x16x128xf32> to vector<2x16x128xf32>
      %c10_366 = arith.constant 10 : index
      %c0_367 = arith.constant 0 : index
      %661 = vector.load %arg3[%c10_366, %c0_367] : memref<25x128xf32, #tpu.memory_space<vmem>>, vector<1x128xf32>
      %662 = vector.shape_cast %661 : vector<1x128xf32> to vector<128xf32>
      %663 = vector.shape_cast %662 : vector<128xf32> to vector<1x1x128xf32>
      %664 = vector.broadcast %663 : vector<1x1x128xf32> to vector<2x16x128xf32>
      %665 = arith.mulf %664, %660 : vector<2x16x128xf32>
      %666 = arith.addf %655, %665 : vector<2x16x128xf32>
      %c15_i32_368 = arith.constant 15 : i32
      %667 = arith.addi %3, %c15_i32_368 : i32
      %c0_i32_369 = arith.constant 0 : i32
      %668 = arith.addi %667, %c0_i32_369 : i32
      %c0_370 = arith.constant 0 : index
      %669 = arith.index_cast %668 : i32 to index
      %c12_371 = arith.constant 12 : index
      %c0_372 = arith.constant 0 : index
      %670 = vector.load %arg6[%c0_370, %669, %c12_371, %c0_372] : memref<1x46x46x128xf32, #tpu.memory_space<vmem>>, vector<1x2x16x128xf32>
      %671 = vector.shape_cast %670 : vector<1x2x16x128xf32> to vector<2x16x128xf32>
      %c11_373 = arith.constant 11 : index
      %c0_374 = arith.constant 0 : index
      %672 = vector.load %arg3[%c11_373, %c0_374] : memref<25x128xf32, #tpu.memory_space<vmem>>, vector<1x128xf32>
      %673 = vector.shape_cast %672 : vector<1x128xf32> to vector<128xf32>
      %674 = vector.shape_cast %673 : vector<128xf32> to vector<1x1x128xf32>
      %675 = vector.broadcast %674 : vector<1x1x128xf32> to vector<2x16x128xf32>
      %676 = arith.mulf %675, %671 : vector<2x16x128xf32>
      %677 = arith.addf %666, %676 : vector<2x16x128xf32>
      %c15_i32_375 = arith.constant 15 : i32
      %678 = arith.addi %3, %c15_i32_375 : i32
      %c0_i32_376 = arith.constant 0 : i32
      %679 = arith.addi %678, %c0_i32_376 : i32
      %c0_377 = arith.constant 0 : index
      %680 = arith.index_cast %679 : i32 to index
      %c15_378 = arith.constant 15 : index
      %c0_379 = arith.constant 0 : index
      %681 = vector.load %arg6[%c0_377, %680, %c15_378, %c0_379] : memref<1x46x46x128xf32, #tpu.memory_space<vmem>>, vector<1x2x16x128xf32>
      %682 = vector.shape_cast %681 : vector<1x2x16x128xf32> to vector<2x16x128xf32>
      %c12_380 = arith.constant 12 : index
      %c0_381 = arith.constant 0 : index
      %683 = vector.load %arg3[%c12_380, %c0_381] : memref<25x128xf32, #tpu.memory_space<vmem>>, vector<1x128xf32>
      %684 = vector.shape_cast %683 : vector<1x128xf32> to vector<128xf32>
      %685 = vector.shape_cast %684 : vector<128xf32> to vector<1x1x128xf32>
      %686 = vector.broadcast %685 : vector<1x1x128xf32> to vector<2x16x128xf32>
      %687 = arith.mulf %686, %682 : vector<2x16x128xf32>
      %688 = arith.addf %677, %687 : vector<2x16x128xf32>
      %c15_i32_382 = arith.constant 15 : i32
      %689 = arith.addi %3, %c15_i32_382 : i32
      %c0_i32_383 = arith.constant 0 : i32
      %690 = arith.addi %689, %c0_i32_383 : i32
      %c0_384 = arith.constant 0 : index
      %691 = arith.index_cast %690 : i32 to index
      %c18_385 = arith.constant 18 : index
      %c0_386 = arith.constant 0 : index
      %692 = vector.load %arg6[%c0_384, %691, %c18_385, %c0_386] : memref<1x46x46x128xf32, #tpu.memory_space<vmem>>, vector<1x2x16x128xf32>
      %693 = vector.shape_cast %692 : vector<1x2x16x128xf32> to vector<2x16x128xf32>
      %c13_387 = arith.constant 13 : index
      %c0_388 = arith.constant 0 : index
      %694 = vector.load %arg3[%c13_387, %c0_388] : memref<25x128xf32, #tpu.memory_space<vmem>>, vector<1x128xf32>
      %695 = vector.shape_cast %694 : vector<1x128xf32> to vector<128xf32>
      %696 = vector.shape_cast %695 : vector<128xf32> to vector<1x1x128xf32>
      %697 = vector.broadcast %696 : vector<1x1x128xf32> to vector<2x16x128xf32>
      %698 = arith.mulf %697, %693 : vector<2x16x128xf32>
      %699 = arith.addf %688, %698 : vector<2x16x128xf32>
      %c15_i32_389 = arith.constant 15 : i32
      %700 = arith.addi %3, %c15_i32_389 : i32
      %c0_i32_390 = arith.constant 0 : i32
      %701 = arith.addi %700, %c0_i32_390 : i32
      %c0_391 = arith.constant 0 : index
      %702 = arith.index_cast %701 : i32 to index
      %c21_392 = arith.constant 21 : index
      %c0_393 = arith.constant 0 : index
      %703 = vector.load %arg6[%c0_391, %702, %c21_392, %c0_393] : memref<1x46x46x128xf32, #tpu.memory_space<vmem>>, vector<1x2x16x128xf32>
      %704 = vector.shape_cast %703 : vector<1x2x16x128xf32> to vector<2x16x128xf32>
      %c14_394 = arith.constant 14 : index
      %c0_395 = arith.constant 0 : index
      %705 = vector.load %arg3[%c14_394, %c0_395] : memref<25x128xf32, #tpu.memory_space<vmem>>, vector<1x128xf32>
      %706 = vector.shape_cast %705 : vector<1x128xf32> to vector<128xf32>
      %707 = vector.shape_cast %706 : vector<128xf32> to vector<1x1x128xf32>
      %708 = vector.broadcast %707 : vector<1x1x128xf32> to vector<2x16x128xf32>
      %709 = arith.mulf %708, %704 : vector<2x16x128xf32>
      %710 = arith.addf %699, %709 : vector<2x16x128xf32>
      %c15_i32_396 = arith.constant 15 : i32
      %711 = arith.addi %3, %c15_i32_396 : i32
      %c3_i32 = arith.constant 3 : i32
      %712 = arith.addi %711, %c3_i32 : i32
      %c0_397 = arith.constant 0 : index
      %713 = arith.index_cast %712 : i32 to index
      %c9_398 = arith.constant 9 : index
      %c0_399 = arith.constant 0 : index
      %714 = vector.load %arg6[%c0_397, %713, %c9_398, %c0_399] : memref<1x46x46x128xf32, #tpu.memory_space<vmem>>, vector<1x2x16x128xf32>
      %715 = vector.shape_cast %714 : vector<1x2x16x128xf32> to vector<2x16x128xf32>
      %c15_400 = arith.constant 15 : index
      %c0_401 = arith.constant 0 : index
      %716 = vector.load %arg3[%c15_400, %c0_401] : memref<25x128xf32, #tpu.memory_space<vmem>>, vector<1x128xf32>
      %717 = vector.shape_cast %716 : vector<1x128xf32> to vector<128xf32>
      %718 = vector.shape_cast %717 : vector<128xf32> to vector<1x1x128xf32>
      %719 = vector.broadcast %718 : vector<1x1x128xf32> to vector<2x16x128xf32>
      %720 = arith.mulf %719, %715 : vector<2x16x128xf32>
      %721 = arith.addf %710, %720 : vector<2x16x128xf32>
      %c15_i32_402 = arith.constant 15 : i32
      %722 = arith.addi %3, %c15_i32_402 : i32
      %c3_i32_403 = arith.constant 3 : i32
      %723 = arith.addi %722, %c3_i32_403 : i32
      %c0_404 = arith.constant 0 : index
      %724 = arith.index_cast %723 : i32 to index
      %c12_405 = arith.constant 12 : index
      %c0_406 = arith.constant 0 : index
      %725 = vector.load %arg6[%c0_404, %724, %c12_405, %c0_406] : memref<1x46x46x128xf32, #tpu.memory_space<vmem>>, vector<1x2x16x128xf32>
      %726 = vector.shape_cast %725 : vector<1x2x16x128xf32> to vector<2x16x128xf32>
      %c16_407 = arith.constant 16 : index
      %c0_408 = arith.constant 0 : index
      %727 = vector.load %arg3[%c16_407, %c0_408] : memref<25x128xf32, #tpu.memory_space<vmem>>, vector<1x128xf32>
      %728 = vector.shape_cast %727 : vector<1x128xf32> to vector<128xf32>
      %729 = vector.shape_cast %728 : vector<128xf32> to vector<1x1x128xf32>
      %730 = vector.broadcast %729 : vector<1x1x128xf32> to vector<2x16x128xf32>
      %731 = arith.mulf %730, %726 : vector<2x16x128xf32>
      %732 = arith.addf %721, %731 : vector<2x16x128xf32>
      %c15_i32_409 = arith.constant 15 : i32
      %733 = arith.addi %3, %c15_i32_409 : i32
      %c3_i32_410 = arith.constant 3 : i32
      %734 = arith.addi %733, %c3_i32_410 : i32
      %c0_411 = arith.constant 0 : index
      %735 = arith.index_cast %734 : i32 to index
      %c15_412 = arith.constant 15 : index
      %c0_413 = arith.constant 0 : index
      %736 = vector.load %arg6[%c0_411, %735, %c15_412, %c0_413] : memref<1x46x46x128xf32, #tpu.memory_space<vmem>>, vector<1x2x16x128xf32>
      %737 = vector.shape_cast %736 : vector<1x2x16x128xf32> to vector<2x16x128xf32>
      %c17_414 = arith.constant 17 : index
      %c0_415 = arith.constant 0 : index
      %738 = vector.load %arg3[%c17_414, %c0_415] : memref<25x128xf32, #tpu.memory_space<vmem>>, vector<1x128xf32>
      %739 = vector.shape_cast %738 : vector<1x128xf32> to vector<128xf32>
      %740 = vector.shape_cast %739 : vector<128xf32> to vector<1x1x128xf32>
      %741 = vector.broadcast %740 : vector<1x1x128xf32> to vector<2x16x128xf32>
      %742 = arith.mulf %741, %737 : vector<2x16x128xf32>
      %743 = arith.addf %732, %742 : vector<2x16x128xf32>
      %c15_i32_416 = arith.constant 15 : i32
      %744 = arith.addi %3, %c15_i32_416 : i32
      %c3_i32_417 = arith.constant 3 : i32
      %745 = arith.addi %744, %c3_i32_417 : i32
      %c0_418 = arith.constant 0 : index
      %746 = arith.index_cast %745 : i32 to index
      %c18_419 = arith.constant 18 : index
      %c0_420 = arith.constant 0 : index
      %747 = vector.load %arg6[%c0_418, %746, %c18_419, %c0_420] : memref<1x46x46x128xf32, #tpu.memory_space<vmem>>, vector<1x2x16x128xf32>
      %748 = vector.shape_cast %747 : vector<1x2x16x128xf32> to vector<2x16x128xf32>
      %c18_421 = arith.constant 18 : index
      %c0_422 = arith.constant 0 : index
      %749 = vector.load %arg3[%c18_421, %c0_422] : memref<25x128xf32, #tpu.memory_space<vmem>>, vector<1x128xf32>
      %750 = vector.shape_cast %749 : vector<1x128xf32> to vector<128xf32>
      %751 = vector.shape_cast %750 : vector<128xf32> to vector<1x1x128xf32>
      %752 = vector.broadcast %751 : vector<1x1x128xf32> to vector<2x16x128xf32>
      %753 = arith.mulf %752, %748 : vector<2x16x128xf32>
      %754 = arith.addf %743, %753 : vector<2x16x128xf32>
      %c15_i32_423 = arith.constant 15 : i32
      %755 = arith.addi %3, %c15_i32_423 : i32
      %c3_i32_424 = arith.constant 3 : i32
      %756 = arith.addi %755, %c3_i32_424 : i32
      %c0_425 = arith.constant 0 : index
      %757 = arith.index_cast %756 : i32 to index
      %c21_426 = arith.constant 21 : index
      %c0_427 = arith.constant 0 : index
      %758 = vector.load %arg6[%c0_425, %757, %c21_426, %c0_427] : memref<1x46x46x128xf32, #tpu.memory_space<vmem>>, vector<1x2x16x128xf32>
      %759 = vector.shape_cast %758 : vector<1x2x16x128xf32> to vector<2x16x128xf32>
      %c19_428 = arith.constant 19 : index
      %c0_429 = arith.constant 0 : index
      %760 = vector.load %arg3[%c19_428, %c0_429] : memref<25x128xf32, #tpu.memory_space<vmem>>, vector<1x128xf32>
      %761 = vector.shape_cast %760 : vector<1x128xf32> to vector<128xf32>
      %762 = vector.shape_cast %761 : vector<128xf32> to vector<1x1x128xf32>
      %763 = vector.broadcast %762 : vector<1x1x128xf32> to vector<2x16x128xf32>
      %764 = arith.mulf %763, %759 : vector<2x16x128xf32>
      %765 = arith.addf %754, %764 : vector<2x16x128xf32>
      %c15_i32_430 = arith.constant 15 : i32
      %766 = arith.addi %3, %c15_i32_430 : i32
      %c6_i32 = arith.constant 6 : i32
      %767 = arith.addi %766, %c6_i32 : i32
      %c0_431 = arith.constant 0 : index
      %768 = arith.index_cast %767 : i32 to index
      %c9_432 = arith.constant 9 : index
      %c0_433 = arith.constant 0 : index
      %769 = vector.load %arg6[%c0_431, %768, %c9_432, %c0_433] : memref<1x46x46x128xf32, #tpu.memory_space<vmem>>, vector<1x2x16x128xf32>
      %770 = vector.shape_cast %769 : vector<1x2x16x128xf32> to vector<2x16x128xf32>
      %c20_434 = arith.constant 20 : index
      %c0_435 = arith.constant 0 : index
      %771 = vector.load %arg3[%c20_434, %c0_435] : memref<25x128xf32, #tpu.memory_space<vmem>>, vector<1x128xf32>
      %772 = vector.shape_cast %771 : vector<1x128xf32> to vector<128xf32>
      %773 = vector.shape_cast %772 : vector<128xf32> to vector<1x1x128xf32>
      %774 = vector.broadcast %773 : vector<1x1x128xf32> to vector<2x16x128xf32>
      %775 = arith.mulf %774, %770 : vector<2x16x128xf32>
      %776 = arith.addf %765, %775 : vector<2x16x128xf32>
      %c15_i32_436 = arith.constant 15 : i32
      %777 = arith.addi %3, %c15_i32_436 : i32
      %c6_i32_437 = arith.constant 6 : i32
      %778 = arith.addi %777, %c6_i32_437 : i32
      %c0_438 = arith.constant 0 : index
      %779 = arith.index_cast %778 : i32 to index
      %c12_439 = arith.constant 12 : index
      %c0_440 = arith.constant 0 : index
      %780 = vector.load %arg6[%c0_438, %779, %c12_439, %c0_440] : memref<1x46x46x128xf32, #tpu.memory_space<vmem>>, vector<1x2x16x128xf32>
      %781 = vector.shape_cast %780 : vector<1x2x16x128xf32> to vector<2x16x128xf32>
      %c21_441 = arith.constant 21 : index
      %c0_442 = arith.constant 0 : index
      %782 = vector.load %arg3[%c21_441, %c0_442] : memref<25x128xf32, #tpu.memory_space<vmem>>, vector<1x128xf32>
      %783 = vector.shape_cast %782 : vector<1x128xf32> to vector<128xf32>
      %784 = vector.shape_cast %783 : vector<128xf32> to vector<1x1x128xf32>
      %785 = vector.broadcast %784 : vector<1x1x128xf32> to vector<2x16x128xf32>
      %786 = arith.mulf %785, %781 : vector<2x16x128xf32>
      %787 = arith.addf %776, %786 : vector<2x16x128xf32>
      %c15_i32_443 = arith.constant 15 : i32
      %788 = arith.addi %3, %c15_i32_443 : i32
      %c6_i32_444 = arith.constant 6 : i32
      %789 = arith.addi %788, %c6_i32_444 : i32
      %c0_445 = arith.constant 0 : index
      %790 = arith.index_cast %789 : i32 to index
      %c15_446 = arith.constant 15 : index
      %c0_447 = arith.constant 0 : index
      %791 = vector.load %arg6[%c0_445, %790, %c15_446, %c0_447] : memref<1x46x46x128xf32, #tpu.memory_space<vmem>>, vector<1x2x16x128xf32>
      %792 = vector.shape_cast %791 : vector<1x2x16x128xf32> to vector<2x16x128xf32>
      %c22_448 = arith.constant 22 : index
      %c0_449 = arith.constant 0 : index
      %793 = vector.load %arg3[%c22_448, %c0_449] : memref<25x128xf32, #tpu.memory_space<vmem>>, vector<1x128xf32>
      %794 = vector.shape_cast %793 : vector<1x128xf32> to vector<128xf32>
      %795 = vector.shape_cast %794 : vector<128xf32> to vector<1x1x128xf32>
      %796 = vector.broadcast %795 : vector<1x1x128xf32> to vector<2x16x128xf32>
      %797 = arith.mulf %796, %792 : vector<2x16x128xf32>
      %798 = arith.addf %787, %797 : vector<2x16x128xf32>
      %c15_i32_450 = arith.constant 15 : i32
      %799 = arith.addi %3, %c15_i32_450 : i32
      %c6_i32_451 = arith.constant 6 : i32
      %800 = arith.addi %799, %c6_i32_451 : i32
      %c0_452 = arith.constant 0 : index
      %801 = arith.index_cast %800 : i32 to index
      %c18_453 = arith.constant 18 : index
      %c0_454 = arith.constant 0 : index
      %802 = vector.load %arg6[%c0_452, %801, %c18_453, %c0_454] : memref<1x46x46x128xf32, #tpu.memory_space<vmem>>, vector<1x2x16x128xf32>
      %803 = vector.shape_cast %802 : vector<1x2x16x128xf32> to vector<2x16x128xf32>
      %c23_455 = arith.constant 23 : index
      %c0_456 = arith.constant 0 : index
      %804 = vector.load %arg3[%c23_455, %c0_456] : memref<25x128xf32, #tpu.memory_space<vmem>>, vector<1x128xf32>
      %805 = vector.shape_cast %804 : vector<1x128xf32> to vector<128xf32>
      %806 = vector.shape_cast %805 : vector<128xf32> to vector<1x1x128xf32>
      %807 = vector.broadcast %806 : vector<1x1x128xf32> to vector<2x16x128xf32>
      %808 = arith.mulf %807, %803 : vector<2x16x128xf32>
      %809 = arith.addf %798, %808 : vector<2x16x128xf32>
      %c15_i32_457 = arith.constant 15 : i32
      %810 = arith.addi %3, %c15_i32_457 : i32
      %c6_i32_458 = arith.constant 6 : i32
      %811 = arith.addi %810, %c6_i32_458 : i32
      %c0_459 = arith.constant 0 : index
      %812 = arith.index_cast %811 : i32 to index
      %c21_460 = arith.constant 21 : index
      %c0_461 = arith.constant 0 : index
      %813 = vector.load %arg6[%c0_459, %812, %c21_460, %c0_461] : memref<1x46x46x128xf32, #tpu.memory_space<vmem>>, vector<1x2x16x128xf32>
      %814 = vector.shape_cast %813 : vector<1x2x16x128xf32> to vector<2x16x128xf32>
      %c24_462 = arith.constant 24 : index
      %c0_463 = arith.constant 0 : index
      %815 = vector.load %arg3[%c24_462, %c0_463] : memref<25x128xf32, #tpu.memory_space<vmem>>, vector<1x128xf32>
      %816 = vector.shape_cast %815 : vector<1x128xf32> to vector<128xf32>
      %817 = vector.shape_cast %816 : vector<128xf32> to vector<1x1x128xf32>
      %818 = vector.broadcast %817 : vector<1x1x128xf32> to vector<2x16x128xf32>
      %819 = arith.mulf %818, %814 : vector<2x16x128xf32>
      %820 = arith.addf %809, %819 : vector<2x16x128xf32>
      %cst_464 = arith.constant 0.000000e+00 : f32
      %821 = vector.broadcast %cst_464 : f32 to vector<2x16x128xf32>
      %c15_i32_465 = arith.constant 15 : i32
      %822 = arith.addi %3, %c15_i32_465 : i32
      %c-1_i32 = arith.constant -1 : i32
      %823 = arith.addi %822, %c-1_i32 : i32
      %c0_466 = arith.constant 0 : index
      %824 = arith.index_cast %823 : i32 to index
      %c14_467 = arith.constant 14 : index
      %c0_468 = arith.constant 0 : index
      %825 = vector.load %arg6[%c0_466, %824, %c14_467, %c0_468] : memref<1x46x46x128xf32, #tpu.memory_space<vmem>>, vector<1x2x16x128xf32>
      %826 = vector.shape_cast %825 : vector<1x2x16x128xf32> to vector<2x16x128xf32>
      %c0_469 = arith.constant 0 : index
      %c0_470 = arith.constant 0 : index
      %827 = vector.load %arg4[%c0_469, %c0_470] : memref<9x128xf32, #tpu.memory_space<vmem>>, vector<1x128xf32>
      %828 = vector.shape_cast %827 : vector<1x128xf32> to vector<128xf32>
      %829 = vector.shape_cast %828 : vector<128xf32> to vector<1x1x128xf32>
      %830 = vector.broadcast %829 : vector<1x1x128xf32> to vector<2x16x128xf32>
      %831 = arith.mulf %830, %826 : vector<2x16x128xf32>
      %832 = arith.addf %821, %831 : vector<2x16x128xf32>
      %c15_i32_471 = arith.constant 15 : i32
      %833 = arith.addi %3, %c15_i32_471 : i32
      %c-1_i32_472 = arith.constant -1 : i32
      %834 = arith.addi %833, %c-1_i32_472 : i32
      %c0_473 = arith.constant 0 : index
      %835 = arith.index_cast %834 : i32 to index
      %c15_474 = arith.constant 15 : index
      %c0_475 = arith.constant 0 : index
      %836 = vector.load %arg6[%c0_473, %835, %c15_474, %c0_475] : memref<1x46x46x128xf32, #tpu.memory_space<vmem>>, vector<1x2x16x128xf32>
      %837 = vector.shape_cast %836 : vector<1x2x16x128xf32> to vector<2x16x128xf32>
      %c1_476 = arith.constant 1 : index
      %c0_477 = arith.constant 0 : index
      %838 = vector.load %arg4[%c1_476, %c0_477] : memref<9x128xf32, #tpu.memory_space<vmem>>, vector<1x128xf32>
      %839 = vector.shape_cast %838 : vector<1x128xf32> to vector<128xf32>
      %840 = vector.shape_cast %839 : vector<128xf32> to vector<1x1x128xf32>
      %841 = vector.broadcast %840 : vector<1x1x128xf32> to vector<2x16x128xf32>
      %842 = arith.mulf %841, %837 : vector<2x16x128xf32>
      %843 = arith.addf %832, %842 : vector<2x16x128xf32>
      %c15_i32_478 = arith.constant 15 : i32
      %844 = arith.addi %3, %c15_i32_478 : i32
      %c-1_i32_479 = arith.constant -1 : i32
      %845 = arith.addi %844, %c-1_i32_479 : i32
      %c0_480 = arith.constant 0 : index
      %846 = arith.index_cast %845 : i32 to index
      %c16_481 = arith.constant 16 : index
      %c0_482 = arith.constant 0 : index
      %847 = vector.load %arg6[%c0_480, %846, %c16_481, %c0_482] : memref<1x46x46x128xf32, #tpu.memory_space<vmem>>, vector<1x2x16x128xf32>
      %848 = vector.shape_cast %847 : vector<1x2x16x128xf32> to vector<2x16x128xf32>
      %c2_483 = arith.constant 2 : index
      %c0_484 = arith.constant 0 : index
      %849 = vector.load %arg4[%c2_483, %c0_484] : memref<9x128xf32, #tpu.memory_space<vmem>>, vector<1x128xf32>
      %850 = vector.shape_cast %849 : vector<1x128xf32> to vector<128xf32>
      %851 = vector.shape_cast %850 : vector<128xf32> to vector<1x1x128xf32>
      %852 = vector.broadcast %851 : vector<1x1x128xf32> to vector<2x16x128xf32>
      %853 = arith.mulf %852, %848 : vector<2x16x128xf32>
      %854 = arith.addf %843, %853 : vector<2x16x128xf32>
      %c15_i32_485 = arith.constant 15 : i32
      %855 = arith.addi %3, %c15_i32_485 : i32
      %c0_i32_486 = arith.constant 0 : i32
      %856 = arith.addi %855, %c0_i32_486 : i32
      %c0_487 = arith.constant 0 : index
      %857 = arith.index_cast %856 : i32 to index
      %c14_488 = arith.constant 14 : index
      %c0_489 = arith.constant 0 : index
      %858 = vector.load %arg6[%c0_487, %857, %c14_488, %c0_489] : memref<1x46x46x128xf32, #tpu.memory_space<vmem>>, vector<1x2x16x128xf32>
      %859 = vector.shape_cast %858 : vector<1x2x16x128xf32> to vector<2x16x128xf32>
      %c3_490 = arith.constant 3 : index
      %c0_491 = arith.constant 0 : index
      %860 = vector.load %arg4[%c3_490, %c0_491] : memref<9x128xf32, #tpu.memory_space<vmem>>, vector<1x128xf32>
      %861 = vector.shape_cast %860 : vector<1x128xf32> to vector<128xf32>
      %862 = vector.shape_cast %861 : vector<128xf32> to vector<1x1x128xf32>
      %863 = vector.broadcast %862 : vector<1x1x128xf32> to vector<2x16x128xf32>
      %864 = arith.mulf %863, %859 : vector<2x16x128xf32>
      %865 = arith.addf %854, %864 : vector<2x16x128xf32>
      %c15_i32_492 = arith.constant 15 : i32
      %866 = arith.addi %3, %c15_i32_492 : i32
      %c0_i32_493 = arith.constant 0 : i32
      %867 = arith.addi %866, %c0_i32_493 : i32
      %c0_494 = arith.constant 0 : index
      %868 = arith.index_cast %867 : i32 to index
      %c15_495 = arith.constant 15 : index
      %c0_496 = arith.constant 0 : index
      %869 = vector.load %arg6[%c0_494, %868, %c15_495, %c0_496] : memref<1x46x46x128xf32, #tpu.memory_space<vmem>>, vector<1x2x16x128xf32>
      %870 = vector.shape_cast %869 : vector<1x2x16x128xf32> to vector<2x16x128xf32>
      %c4_497 = arith.constant 4 : index
      %c0_498 = arith.constant 0 : index
      %871 = vector.load %arg4[%c4_497, %c0_498] : memref<9x128xf32, #tpu.memory_space<vmem>>, vector<1x128xf32>
      %872 = vector.shape_cast %871 : vector<1x128xf32> to vector<128xf32>
      %873 = vector.shape_cast %872 : vector<128xf32> to vector<1x1x128xf32>
      %874 = vector.broadcast %873 : vector<1x1x128xf32> to vector<2x16x128xf32>
      %875 = arith.mulf %874, %870 : vector<2x16x128xf32>
      %876 = arith.addf %865, %875 : vector<2x16x128xf32>
      %c15_i32_499 = arith.constant 15 : i32
      %877 = arith.addi %3, %c15_i32_499 : i32
      %c0_i32_500 = arith.constant 0 : i32
      %878 = arith.addi %877, %c0_i32_500 : i32
      %c0_501 = arith.constant 0 : index
      %879 = arith.index_cast %878 : i32 to index
      %c16_502 = arith.constant 16 : index
      %c0_503 = arith.constant 0 : index
      %880 = vector.load %arg6[%c0_501, %879, %c16_502, %c0_503] : memref<1x46x46x128xf32, #tpu.memory_space<vmem>>, vector<1x2x16x128xf32>
      %881 = vector.shape_cast %880 : vector<1x2x16x128xf32> to vector<2x16x128xf32>
      %c5_504 = arith.constant 5 : index
      %c0_505 = arith.constant 0 : index
      %882 = vector.load %arg4[%c5_504, %c0_505] : memref<9x128xf32, #tpu.memory_space<vmem>>, vector<1x128xf32>
      %883 = vector.shape_cast %882 : vector<1x128xf32> to vector<128xf32>
      %884 = vector.shape_cast %883 : vector<128xf32> to vector<1x1x128xf32>
      %885 = vector.broadcast %884 : vector<1x1x128xf32> to vector<2x16x128xf32>
      %886 = arith.mulf %885, %881 : vector<2x16x128xf32>
      %887 = arith.addf %876, %886 : vector<2x16x128xf32>
      %c15_i32_506 = arith.constant 15 : i32
      %888 = arith.addi %3, %c15_i32_506 : i32
      %c1_i32_507 = arith.constant 1 : i32
      %889 = arith.addi %888, %c1_i32_507 : i32
      %c0_508 = arith.constant 0 : index
      %890 = arith.index_cast %889 : i32 to index
      %c14_509 = arith.constant 14 : index
      %c0_510 = arith.constant 0 : index
      %891 = vector.load %arg6[%c0_508, %890, %c14_509, %c0_510] : memref<1x46x46x128xf32, #tpu.memory_space<vmem>>, vector<1x2x16x128xf32>
      %892 = vector.shape_cast %891 : vector<1x2x16x128xf32> to vector<2x16x128xf32>
      %c6_511 = arith.constant 6 : index
      %c0_512 = arith.constant 0 : index
      %893 = vector.load %arg4[%c6_511, %c0_512] : memref<9x128xf32, #tpu.memory_space<vmem>>, vector<1x128xf32>
      %894 = vector.shape_cast %893 : vector<1x128xf32> to vector<128xf32>
      %895 = vector.shape_cast %894 : vector<128xf32> to vector<1x1x128xf32>
      %896 = vector.broadcast %895 : vector<1x1x128xf32> to vector<2x16x128xf32>
      %897 = arith.mulf %896, %892 : vector<2x16x128xf32>
      %898 = arith.addf %887, %897 : vector<2x16x128xf32>
      %c15_i32_513 = arith.constant 15 : i32
      %899 = arith.addi %3, %c15_i32_513 : i32
      %c1_i32_514 = arith.constant 1 : i32
      %900 = arith.addi %899, %c1_i32_514 : i32
      %c0_515 = arith.constant 0 : index
      %901 = arith.index_cast %900 : i32 to index
      %c15_516 = arith.constant 15 : index
      %c0_517 = arith.constant 0 : index
      %902 = vector.load %arg6[%c0_515, %901, %c15_516, %c0_517] : memref<1x46x46x128xf32, #tpu.memory_space<vmem>>, vector<1x2x16x128xf32>
      %903 = vector.shape_cast %902 : vector<1x2x16x128xf32> to vector<2x16x128xf32>
      %c7_518 = arith.constant 7 : index
      %c0_519 = arith.constant 0 : index
      %904 = vector.load %arg4[%c7_518, %c0_519] : memref<9x128xf32, #tpu.memory_space<vmem>>, vector<1x128xf32>
      %905 = vector.shape_cast %904 : vector<1x128xf32> to vector<128xf32>
      %906 = vector.shape_cast %905 : vector<128xf32> to vector<1x1x128xf32>
      %907 = vector.broadcast %906 : vector<1x1x128xf32> to vector<2x16x128xf32>
      %908 = arith.mulf %907, %903 : vector<2x16x128xf32>
      %909 = arith.addf %898, %908 : vector<2x16x128xf32>
      %c15_i32_520 = arith.constant 15 : i32
      %910 = arith.addi %3, %c15_i32_520 : i32
      %c1_i32_521 = arith.constant 1 : i32
      %911 = arith.addi %910, %c1_i32_521 : i32
      %c0_522 = arith.constant 0 : index
      %912 = arith.index_cast %911 : i32 to index
      %c16_523 = arith.constant 16 : index
      %c0_524 = arith.constant 0 : index
      %913 = vector.load %arg6[%c0_522, %912, %c16_523, %c0_524] : memref<1x46x46x128xf32, #tpu.memory_space<vmem>>, vector<1x2x16x128xf32>
      %914 = vector.shape_cast %913 : vector<1x2x16x128xf32> to vector<2x16x128xf32>
      %c8_525 = arith.constant 8 : index
      %c0_526 = arith.constant 0 : index
      %915 = vector.load %arg4[%c8_525, %c0_526] : memref<9x128xf32, #tpu.memory_space<vmem>>, vector<1x128xf32>
      %916 = vector.shape_cast %915 : vector<1x128xf32> to vector<128xf32>
      %917 = vector.shape_cast %916 : vector<128xf32> to vector<1x1x128xf32>
      %918 = vector.broadcast %917 : vector<1x1x128xf32> to vector<2x16x128xf32>
      %919 = arith.mulf %918, %914 : vector<2x16x128xf32>
      %920 = arith.addf %909, %919 : vector<2x16x128xf32>
      %921 = arith.addf %279, %544 : vector<2x16x128xf32>
      %922 = arith.addf %820, %920 : vector<2x16x128xf32>
      %923 = arith.addf %921, %922 : vector<2x16x128xf32>
      %924 = vector.shape_cast %1 : vector<128xf32> to vector<1x1x128xf32>
      %925 = vector.broadcast %924 : vector<1x1x128xf32> to vector<2x16x128xf32>
      %926 = arith.addf %923, %925 : vector<2x16x128xf32>
      %cst_527 = arith.constant 5.000000e-01 : f32
      %927 = vector.broadcast %cst_527 : f32 to vector<2x16x128xf32>
      %928 = arith.mulf %927, %926 : vector<2x16x128xf32>
      %cst_528 = arith.constant 0.707106769 : f32
      %929 = vector.broadcast %cst_528 : f32 to vector<2x16x128xf32>
      %930 = arith.mulf %926, %929 : vector<2x16x128xf32>
      %931 = math.erf %930 : vector<2x16x128xf32>
      %cst_529 = arith.constant 1.000000e+00 : f32
      %932 = vector.broadcast %cst_529 : f32 to vector<2x16x128xf32>
      %933 = arith.addf %932, %931 : vector<2x16x128xf32>
      %934 = arith.mulf %928, %933 : vector<2x16x128xf32>
      %c15_i32_530 = arith.constant 15 : i32
      %935 = arith.addi %3, %c15_i32_530 : i32
      %c0_531 = arith.constant 0 : index
      %936 = arith.index_cast %935 : i32 to index
      %c15_532 = arith.constant 15 : index
      %c0_533 = arith.constant 0 : index
      %937 = vector.load %arg6[%c0_531, %936, %c15_532, %c0_533] : memref<1x46x46x128xf32, #tpu.memory_space<vmem>>, vector<1x2x16x128xf32>
      %938 = vector.shape_cast %937 : vector<1x2x16x128xf32> to vector<2x16x128xf32>
      %939 = arith.addf %938, %934 : vector<2x16x128xf32>
      %c0_534 = arith.constant 0 : index
      %940 = arith.index_cast %3 : i32 to index
      %c0_535 = arith.constant 0 : index
      %c0_536 = arith.constant 0 : index
      %941 = vector.load %arg7[%c0_534, %940, %c0_535, %c0_536] : memref<1x16x16x128xf32, #tpu.memory_space<vmem>>, vector<1x2x16x128xf32>
      %942 = vector.shape_cast %941 : vector<1x2x16x128xf32> to vector<2x16x128xf32>
      %943 = vector.shape_cast %939 : vector<2x16x128xf32> to vector<1x2x16x128xf32>
      tpu.vector_store %arg7[%c0_534, %940, %c0_535, %c0_536], %943 {strides = array<i32>} : memref<1x16x16x128xf32, #tpu.memory_space<vmem>>, vector<1x2x16x128xf32>,
    }
    %c8_i32_1 = arith.constant 8 : i32
    return
  }
  func.func @transform_0(%arg0: i32, %arg1: i32) -> (i32, i32) {
    %c0_i32 = arith.constant 0 : i32
    %c0_i32_0 = arith.constant 0 : i32
    return %c0_i32, %arg1 : i32, i32
  }
  func.func @transform_1(%arg0: i32, %arg1: i32) -> (i32, i32) {
    %c0_i32 = arith.constant 0 : i32
    %c0_i32_0 = arith.constant 0 : i32
    return %c0_i32, %arg1 : i32, i32
  }
  func.func @transform_2(%arg0: i32, %arg1: i32) -> (i32, i32) {
    %c0_i32 = arith.constant 0 : i32
    %c0_i32_0 = arith.constant 0 : i32
    return %c0_i32, %arg1 : i32, i32
  }
  func.func @transform_3(%arg0: i32, %arg1: i32) -> (i32, i32) {
    %c0_i32 = arith.constant 0 : i32
    %c0_i32_0 = arith.constant 0 : i32
    return %c0_i32, %arg1 : i32, i32
  }
  func.func @transform_4(%arg0: i32, %arg1: i32) -> (i32, i32, i32, i32) {
    %c0_i32 = arith.constant 0 : i32
    %c0_i32_0 = arith.constant 0 : i32
    %c0_i32_1 = arith.constant 0 : i32
    return %arg0, %c0_i32, %c0_i32_0, %arg1 : i32, i32, i32, i32
  }
  func.func @transform_5(%arg0: i32, %arg1: i32) -> (i32, i32, i32, i32) {
    %c0_i32 = arith.constant 0 : i32
    %c0_i32_0 = arith.constant 0 : i32
    %c0_i32_1 = arith.constant 0 : i32
    return %arg0, %c0_i32, %c0_i32_0, %arg1 : i32, i32, i32, i32
  }
}

</mosaic_0001>

<bundles_post_ra>
// kernel: tpu_custom_call.1
= control target key start
LH: loop header
LB: loop body
LE: loop exit
PB: predicated region body
PF: predicated region fallthrough
CT: control target
= control target key end

     0   :  { %10 = vsyncpa [#allocation3], 0  ;;  %s3425_s0 = inlined_call_operand.vmem [shape: f32[49,128], index: 0, kind: input, shape index: {}]   ;;  %s3426_s1 = inlined_call_operand.vmem [shape: f32[25,128], index: 1, kind: input, shape index: {}]   ;;  %s3427_s2 = inlined_call_operand.vmem [shape: f32[9,128], index: 2, kind: input, shape index: {}]   ;;  %s3428_s3 = inlined_call_operand.vmem [shape: f32[1,128], index: 3, kind: input, shape index: {}]   ;;  %s3429_s4 = inlined_call_operand.vmem [shape: f32[2,46,46,128], index: 4, kind: input, shape index: {}]   ;;  %s3430_s5 = inlined_call_operand.hbm [shape: f32[2,16,16,128], index: 5, kind: output, shape index: {}]  }
   0x1   :  { %12 = vsyncpa [#allocation3 + $0x1], 0  ;;  %s2547_s18 = smov 0   ;;  %s2549_s19 = smov 0  }
   0x2   :  { %s2551_s20 = smov 0   ;;  %s2553_s21 = smov 0  }
   0x3   :  { %s2555_s22 = smov 0   ;;  %s2557_s23 = smov 0  }
   0x4 LB: > { %s1923_s24 = sadd.s32 4294967295, %s2509_s23   ;;  %s1924_s25 = sadd.s32 4294967294, %s2509_s23   ;;  %s2509_s23 = sphi %s2557_s23, %s18_s23   ;;  %s2505_s22 = sphi %s2555_s22, %s3443_s22   ;;  %s2501_s21 = sphi %s2553_s21, %s3442_s21   ;;  %s2497_s20 = sphi %s2551_s20, %s3441_s20   ;;  %s2493_s19 = sphi %s2549_s19, %s3440_s19   ;;  %s2489_s18 = sphi %s2547_s18, %s3439_s18  }
   0x5   : > { %s30_s26 = sadd.s32 1, %s2505_s22  ;;  %s171_s27 = sadd.s32 1, %s2497_s20 }
   0x6   : > { %p32_p0 = scmp.ge.s32.totalorder %s30_s26, 2  ;;  %p181_p1 = scmp.ne.s32.totalorder %s2497_s20, %s2493_s19 }
   0x7   : > { %p182_p2 = scmp.eq.s32.totalorder %s1923_s24, 1  ;;  %p187_p3 = scmp.ne.s32.totalorder %s2493_s19, %s2489_s18 }
   0x8   : > { %s3445_s26 = smov (%p32_p0, %s30_s26), 0  ;;  %p188_p5 = scmp.eq.s32.totalorder %s1924_s25, 1 }
   0x9   : > { %p2587_p4 = por %p182_p2, %p181_p1  ;;  %s166_s29 = ssub.s32 %s2505_s22, %s3445_s26 }
   0xa   : > { %p1931_p6 = scmp.ge.s32.totalorder %s2509_s23, 1  ;;  %p169_p7 = scmp.eq.s32.totalorder %s166_s29, 0 }
   0xb   : > { %p2594_p8 = por %p188_p5, %p187_p3  ;;  %p244_p9 = scmp.lt.s32.totalorder %s2509_s23, 3 }
   0xc   : > { %s2600_s6 = scalar_select %p169_p7, %s2497_s20, %s171_s27  }
   0xd   : > { %p245_p10 = pnand %p1931_p6, %p244_p9 }
   0xe   : > { %s287_s7 = sand.u32 (!%p245_p10), 1, %s2493_s19   ;;  %p305_p11 = scmp.lt.s32.totalorder (!%p245_p10), %s2501_s21, 1 }
   0xf   : > { %248 = sbr.rel (%p245_p10) target bundleno = 263 (0x107), region = 40  ;;  %s2611_s10 = sshll.u32 (!%p245_p10), %s287_s7, 8 }
  0x10   : > { %s289_s16 = scalar_lea.vmem (!%p245_p10), [#allocation2], %s2611_s10  ;;  %s2620_s17 = smov (!%p245_p10), 0  }
  0x14   : > { %v2607_v0 = vld [vmem:[%s3428_s3] sm:$0x1]  ;;  %s306_s11 = scalar_select %p305_p11, %s2501_s21, 1 }
  0x16   : > { %s2264_s12 = smul.u32 2208, %s306_s11 }
  0x18   : > { %s2617_s15 = scalar_lea.vmem %s3429_s4, %s2264_s12 }
  0x19 LB: >> { %s1935_s24 = smul.u32 96, %s2513_s17  ;;  %v2330_v1 = vld [vmem:[%s3425_s0] ss:$0 sm:$0xff]  ;;  %v2331_v2 = vld [vmem:[%s3425_s0 + $0x1] ss:$0 sm:$0xff]  ;;  %s2513_s17 = sphi %s2620_s17, %s319_s17  }
  0x1a   : >> { %v2332_v3 = vld [vmem:[%s3425_s0 + $0x2] ss:$0 sm:$0xff]  ;;  %v2333_v4 = vld [vmem:[%s3425_s0 + $0x3] ss:$0 sm:$0xff]  ;;  %v2334_v14 = vld [vmem:[%s3425_s0 + $0x4] ss:$0 sm:$0xff] }
  0x1b   : >> { %s2633_s9 = scalar_lea.vmem %s2617_s15, %s1935_s24  ;;  %v2335_v27 = vld [vmem:[%s3425_s0 + $0x5] ss:$0 sm:$0xff]  ;;  %v2336_v55 = vld [vmem:[%s3425_s0 + $0x6] ss:$0 sm:$0xff] }
  0x1c   : >> { %v323_v5 = vld [vmem:[%s2633_s9] sm:$0xff]  ;;  %v324_v6 = vld [vmem:[%s2633_s9 + $0x8] sm:$0xff]  ;;  %v325_v7 = vld [vmem:[%s2633_s9 + $0x30] sm:$0xff] }
  0x1d   : >> { %v326_v8 = vld [vmem:[%s2633_s9 + $0x38] sm:$0xff]  ;;  %v329_v9 = vmul.f32 %v2330_v1, %v323_v5  ;;  %v330_v10 = vmul.f32 %v2330_v1, %v324_v6  ;;  %v331_v11 = vmul.f32 %v2330_v1, %v325_v7  ;;  %v337_v12 = vld [vmem:[%s2633_s9 + $0x5] sm:$0xff]  ;;  %v338_v13 = vld [vmem:[%s2633_s9 + $0xd] sm:$0xff] }
  0x1e   : >> { %v332_v15 = vmul.f32 %v2330_v1, %v326_v8  ;;  %v339_v16 = vld [vmem:[%s2633_s9 + $0x35] sm:$0xff]  ;;  %v340_v17 = vld [vmem:[%s2633_s9 + $0x3d] sm:$0xff]  ;;  %v343_v18 = vmul.f32 %v2331_v2, %v337_v12  ;;  %v344_v19 = vmul.f32 %v2331_v2, %v338_v13  ;;  %v351_v20 = vld [vmem:[%s2633_s9 + $0xa] sm:$0xff] }
  0x1f   : >> { %v345_v21 = vmul.f32 %v2331_v2, %v339_v16  ;;  %v346_v22 = vmul.f32 %v2331_v2, %v340_v17  ;;  %v352_v23 = vld [vmem:[%s2633_s9 + $0x12] sm:$0xff]  ;;  %v353_v24 = vld [vmem:[%s2633_s9 + $0x3a] sm:$0xff]  ;;  %v354_v25 = vld [vmem:[%s2633_s9 + $0x42] sm:$0xff]  ;;  %v357_v26 = vmul.f32 %v2332_v3, %v351_v20 }
  0x20   : >> { %v347_v28 = vadd.f32 %v343_v18, %v329_v9  ;;  %v348_v29 = vadd.f32 %v344_v19, %v330_v10  ;;  %v358_v30 = vmul.f32 %v2332_v3, %v352_v23  ;;  %v359_v31 = vmul.f32 %v2332_v3, %v353_v24  ;;  %v365_v32 = vld [vmem:[%s2633_s9 + $0xf] sm:$0xff]  ;;  %v366_v33 = vld [vmem:[%s2633_s9 + $0x17] sm:$0xff]  ;;  %v367_v34 = vld [vmem:[%s2633_s9 + $0x3f] sm:$0xff] }
  0x21   : >> { %v349_v35 = vadd.f32 %v345_v21, %v331_v11  ;;  %v350_v36 = vadd.f32 %v346_v22, %v332_v15  ;;  %v360_v37 = vmul.f32 %v2332_v3, %v354_v25  ;;  %v368_v38 = vld [vmem:[%s2633_s9 + $0x47] sm:$0xff]  ;;  %v371_v39 = vmul.f32 %v2333_v4, %v365_v32  ;;  %v379_v40 = vld [vmem:[%s2633_s9 + $0x14] sm:$0xff]  ;;  %v380_v41 = vld [vmem:[%s2633_s9 + $0x1c] sm:$0xff] }
  0x22   : >> { %v361_v42 = vadd.f32 %v357_v26, %v347_v28  ;;  %v362_v43 = vadd.f32 %v358_v30, %v348_v29  ;;  %v372_v44 = vmul.f32 %v2333_v4, %v366_v33  ;;  %v373_v45 = vmul.f32 %v2333_v4, %v367_v34  ;;  %v381_v46 = vld [vmem:[%s2633_s9 + $0x44] sm:$0xff]  ;;  %v382_v47 = vld [vmem:[%s2633_s9 + $0x4c] sm:$0xff]  ;;  %v393_v48 = vld [vmem:[%s2633_s9 + $0x19] sm:$0xff] }
  0x23   : >> { %v363_v49 = vadd.f32 %v359_v31, %v349_v35  ;;  %v364_v50 = vadd.f32 %v360_v37, %v350_v36  ;;  %v374_v51 = vmul.f32 %v2333_v4, %v368_v38  ;;  %v385_v52 = vmul.f32 %v2334_v14, %v379_v40  ;;  %v394_v53 = vld [vmem:[%s2633_s9 + $0x21] sm:$0xff]  ;;  %v395_v54 = vld [vmem:[%s2633_s9 + $0x49] sm:$0xff]  ;;  %v396_v60 = vld [vmem:[%s2633_s9 + $0x51] sm:$0xff] }
  0x24   : >> { %v375_v56 = vadd.f32 %v371_v39, %v361_v42  ;;  %v376_v57 = vadd.f32 %v372_v44, %v362_v43  ;;  %v386_v58 = vmul.f32 %v2334_v14, %v380_v41  ;;  %v387_v59 = vmul.f32 %v2334_v14, %v381_v46  ;;  %v407_v61 = vld [vmem:[%s2633_s9 + $0x1e] sm:$0xff]  ;;  %v408_v3 = vld [vmem:[%s2633_s9 + $0x26] sm:$0xff]  ;;  %v409_v4 = vld [vmem:[%s2633_s9 + $0x4e] sm:$0xff] }
  0x25   : >> { %v377_v62 = vadd.f32 %v373_v45, %v363_v49  ;;  %v378_v63 = vadd.f32 %v374_v51, %v364_v50  ;;  %v388_v1 = vmul.f32 %v2334_v14, %v382_v47  ;;  %v399_v2 = vmul.f32 %v2335_v27, %v393_v48  ;;  %v410_v9 = vld [vmem:[%s2633_s9 + $0x56] sm:$0xff]  ;;  %v1940_v17 = vld [vmem:[%s2633_s9 + $0x120] sm:$0xff]  ;;  %v1941_v22 = vld [vmem:[%s2633_s9 + $0x128] sm:$0xff] }
  0x26   : >> { %v389_v5 = vadd.f32 %v385_v52, %v375_v56  ;;  %v390_v6 = vadd.f32 %v386_v58, %v376_v57  ;;  %v400_v7 = vmul.f32 %v2335_v27, %v394_v53  ;;  %v401_v8 = vmul.f32 %v2335_v27, %v395_v54  ;;  %v1938_v10 = vld [vmem:[%s2633_s9 + $0xf0] sm:$0xff]  ;;  %v1939_v16 = vld [vmem:[%s2633_s9 + $0xf8] sm:$0xff]  ;;  %v2337_v14 = vld [vmem:[%s3425_s0 + $0x7] ss:$0 sm:$0xff] }
  0x27   : >> { %v391_v11 = vadd.f32 %v387_v59, %v377_v62  ;;  %v392_v12 = vadd.f32 %v388_v1, %v378_v63  ;;  %v402_v13 = vmul.f32 %v2335_v27, %v396_v60  ;;  %v413_v15 = vmul.f32 %v2336_v55, %v407_v61  ;;  %v1942_v23 = vld [vmem:[%s2633_s9 + $0xf5] sm:$0xff]  ;;  %v1943_v28 = vld [vmem:[%s2633_s9 + $0xfd] sm:$0xff]  ;;  %v1944_v29 = vld [vmem:[%s2633_s9 + $0x125] sm:$0xff] }
  0x28   : >> { %v403_v18 = vadd.f32 %v399_v2, %v389_v5  ;;  %v404_v19 = vadd.f32 %v400_v7, %v390_v6  ;;  %v414_v20 = vmul.f32 %v2336_v55, %v408_v3  ;;  %v415_v21 = vmul.f32 %v2336_v55, %v409_v4  ;;  %v2338_v30 = vld [vmem:[%s3425_s0 + $0x8] ss:$0 sm:$0xff]  ;;  %v1945_v35 = vld [vmem:[%s2633_s9 + $0x12d] sm:$0xff]  ;;  %v1946_v36 = vld [vmem:[%s2633_s9 + $0xfa] sm:$0xff] }
  0x29   : >> { %v405_v24 = vadd.f32 %v401_v8, %v391_v11  ;;  %v406_v25 = vadd.f32 %v402_v13, %v392_v12  ;;  %v416_v26 = vmul.f32 %v2336_v55, %v410_v9  ;;  %v430_v27 = vmul.f32 %v2337_v14, %v1938_v10  ;;  %v1947_v41 = vld [vmem:[%s2633_s9 + $0x102] sm:$0xff]  ;;  %v1948_v42 = vld [vmem:[%s2633_s9 + $0x12a] sm:$0xff]  ;;  %v1949_v48 = vld [vmem:[%s2633_s9 + $0x132] sm:$0xff] }
  0x2a   : >> { %v417_v31 = vadd.f32 %v413_v15, %v403_v18  ;;  %v418_v32 = vadd.f32 %v414_v20, %v404_v19  ;;  %v431_v33 = vmul.f32 %v2337_v14, %v1939_v16  ;;  %v432_v34 = vmul.f32 %v2337_v14, %v1940_v17  ;;  %v2339_v43 = vld [vmem:[%s3425_s0 + $0x9] ss:$0 sm:$0xff]  ;;  %v1950_v49 = vld [vmem:[%s2633_s9 + $0xff] sm:$0xff]  ;;  %v1952_v55 = vld [vmem:[%s2633_s9 + $0x12f] sm:$0xff] }
  0x2b   : >> { %v419_v37 = vadd.f32 %v415_v21, %v405_v24  ;;  %v420_v38 = vadd.f32 %v416_v26, %v406_v25  ;;  %v433_v39 = vmul.f32 %v2337_v14, %v1941_v22  ;;  %v444_v40 = vmul.f32 %v2338_v30, %v1942_v23  ;;  %v1951_v54 = vld [vmem:[%s2633_s9 + $0x107] sm:$0xff]  ;;  %v1953_v61 = vld [vmem:[%s2633_s9 + $0x137] sm:$0xff] }
  0x2c   : >> { %v434_v44 = vadd.f32 %v430_v27, %v417_v31  ;;  %v435_v45 = vadd.f32 %v431_v33, %v418_v32  ;;  %v445_v46 = vmul.f32 %v2338_v30, %v1943_v28  ;;  %v446_v47 = vmul.f32 %v2338_v30, %v1944_v29  ;;  %v2340_v56 = vld [vmem:[%s3425_s0 + $0xa] ss:$0 sm:$0xff]  ;;  %v1955_v4 = vld [vmem:[%s2633_s9 + $0x10c] sm:$0xff]  ;;  %v1956_v5 = vld [vmem:[%s2633_s9 + $0x134] sm:$0xff] }
  0x2d   : >> { %v436_v50 = vadd.f32 %v432_v34, %v419_v37  ;;  %v437_v51 = vadd.f32 %v433_v39, %v420_v38  ;;  %v447_v52 = vmul.f32 %v2338_v30, %v1945_v35  ;;  %v458_v53 = vmul.f32 %v2339_v43, %v1946_v36  ;;  %v1954_v62 = vld [vmem:[%s2633_s9 + $0x104] sm:$0xff]  ;;  %v1957_v11 = vld [vmem:[%s2633_s9 + $0x13c] sm:$0xff]  ;;  %v1959_v14 = vld [vmem:[%s2633_s9 + $0x111] sm:$0xff] }
  0x2e   : >> { %v448_v57 = vadd.f32 %v444_v40, %v434_v44  ;;  %v449_v58 = vadd.f32 %v445_v46, %v435_v45  ;;  %v459_v59 = vmul.f32 %v2339_v43, %v1947_v41  ;;  %v460_v60 = vmul.f32 %v2339_v43, %v1948_v42  ;;  %v2341_v6 = vld [vmem:[%s3425_s0 + $0xb] ss:$0 sm:$0xff]  ;;  %v1960_v18 = vld [vmem:[%s2633_s9 + $0x139] sm:$0xff]  ;;  %v2342_v19 = vld [vmem:[%s3425_s0 + $0xc] ss:$0 sm:$0xff] }
  0x2f   : >> { %v450_v63 = vadd.f32 %v446_v47, %v436_v50  ;;  %v451_v1 = vadd.f32 %v447_v52, %v437_v51  ;;  %v461_v2 = vmul.f32 %v2339_v43, %v1949_v48  ;;  %v472_v3 = vmul.f32 %v2340_v56, %v1950_v49  ;;  %v1958_v12 = vld [vmem:[%s2633_s9 + $0x109] sm:$0xff]  ;;  %v1961_v24 = vld [vmem:[%s2633_s9 + $0x141] sm:$0xff]  ;;  %v1963_v30 = vld [vmem:[%s2633_s9 + $0x116] sm:$0xff] }
  0x30   : >> { %v462_v7 = vadd.f32 %v458_v53, %v448_v57  ;;  %v463_v8 = vadd.f32 %v459_v59, %v449_v58  ;;  %v473_v9 = vmul.f32 %v2340_v56, %v1951_v54  ;;  %v474_v10 = vmul.f32 %v2340_v56, %v1952_v55  ;;  %v1962_v25 = vld [vmem:[%s2633_s9 + $0x10e] sm:$0xff]  ;;  %v1964_v31 = vld [vmem:[%s2633_s9 + $0x13e] sm:$0xff]  ;;  %v2343_v32 = vld [vmem:[%s3425_s0 + $0xd] ss:$0 sm:$0xff] }
  0x31   : >> { %v464_v13 = vadd.f32 %v460_v60, %v450_v63  ;;  %v465_v15 = vadd.f32 %v461_v2, %v451_v1  ;;  %v475_v16 = vmul.f32 %v2340_v56, %v1953_v61  ;;  %v486_v17 = vmul.f32 %v2341_v6, %v1954_v62  ;;  %v1965_v37 = vld [vmem:[%s2633_s9 + $0x146] sm:$0xff]  ;;  %v1970_v44 = vld [vmem:[%s2633_s9 + $0x210] sm:$0xff]  ;;  %v2344_v45 = vld [vmem:[%s3425_s0 + $0xe] ss:$0 sm:$0xff] }
  0x32   : >> { %v476_v20 = vadd.f32 %v472_v3, %v462_v7  ;;  %v477_v21 = vadd.f32 %v473_v9, %v463_v8  ;;  %v487_v22 = vmul.f32 %v2341_v6, %v1955_v4  ;;  %v488_v23 = vmul.f32 %v2341_v6, %v1956_v5  ;;  %v1968_v38 = vld [vmem:[%s2633_s9 + $0x1e0] sm:$0xff]  ;;  %v1969_v43 = vld [vmem:[%s2633_s9 + $0x1e8] sm:$0xff]  ;;  %v1971_v50 = vld [vmem:[%s2633_s9 + $0x218] sm:$0xff] }
  0x33   : >> { %v478_v26 = vadd.f32 %v474_v10, %v464_v13  ;;  %v479_v27 = vadd.f32 %v475_v16, %v465_v15  ;;  %v489_v28 = vmul.f32 %v2341_v6, %v1957_v11  ;;  %v500_v29 = vmul.f32 %v2342_v19, %v1958_v12  ;;  %v1972_v51 = vld [vmem:[%s2633_s9 + $0x1e5] sm:$0xff]  ;;  %v1973_v56 = vld [vmem:[%s2633_s9 + $0x1ed] sm:$0xff]  ;;  %v1974_v57 = vld [vmem:[%s2633_s9 + $0x215] sm:$0xff] }
  0x34   : >> { %v490_v33 = vadd.f32 %v486_v17, %v476_v20  ;;  %v491_v34 = vadd.f32 %v487_v22, %v477_v21  ;;  %v501_v35 = vmul.f32 %v2342_v19, %v1959_v14  ;;  %v502_v36 = vmul.f32 %v2342_v19, %v1960_v18  ;;  %v2345_v58 = vld [vmem:[%s3425_s0 + $0xf] ss:$0 sm:$0xff]  ;;  %v1975_v63 = vld [vmem:[%s2633_s9 + $0x21d] sm:$0xff]  ;;  %v2743_v6 = vld [vmem:[%s2633_s9 + $0x1f2] sm:$0xff] }
  0x35   : >> { %v492_v39 = vadd.f32 %v488_v23, %v478_v26  ;;  %v493_v40 = vadd.f32 %v489_v28, %v479_v27  ;;  %v503_v41 = vmul.f32 %v2342_v19, %v1961_v24  ;;  %v514_v42 = vmul.f32 %v2343_v32, %v1962_v25  ;;  %v1976_v1 = vld [vmem:[%s2633_s9 + $0x1ea] sm:$0xff]  ;;  %v1978_v7 = vld [vmem:[%s2633_s9 + $0x21a] sm:$0xff]  ;;  %v1979_v13 = vld [vmem:[%s2633_s9 + $0x222] sm:$0xff] }
  0x36   : >> { %v504_v46 = vadd.f32 %v500_v29, %v490_v33  ;;  %v505_v47 = vadd.f32 %v501_v35, %v491_v34  ;;  %v515_v48 = vmul.f32 %v2343_v32, %v1963_v30  ;;  %v516_v49 = vmul.f32 %v2343_v32, %v1964_v31  ;;  %v2346_v8 = vld [vmem:[%s3425_s0 + $0x10] ss:$0 sm:$0xff]  ;;  %v2754_v19 = vld [vmem:[%s2633_s9 + $0x1f7] sm:$0xff]  ;;  %v1982_v20 = vld [vmem:[%s2633_s9 + $0x21f] sm:$0xff] }
  0x37   : >> { %v506_v52 = vadd.f32 %v502_v36, %v492_v39  ;;  %v507_v53 = vadd.f32 %v503_v41, %v493_v40  ;;  %v517_v54 = vmul.f32 %v2343_v32, %v1965_v37  ;;  %v531_v55 = vmul.f32 %v2344_v45, %v1968_v38  ;;  %v2751_v15 = vld [vmem:[%s2633_s9 + $0x1ef] sm:$0xff]  ;;  %v1983_v26 = vld [vmem:[%s2633_s9 + $0x227] sm:$0xff]  ;;  %v1985_v32 = vld [vmem:[%s2633_s9 + $0x1fc] sm:$0xff] }
  0x38   : >> { %v518_v59 = vadd.f32 %v514_v42, %v504_v46  ;;  %v519_v60 = vadd.f32 %v515_v48, %v505_v47  ;;  %v532_v61 = vmul.f32 %v2344_v45, %v1969_v43  ;;  %v533_v62 = vmul.f32 %v2344_v45, %v1970_v44  ;;  %v2347_v21 = vld [vmem:[%s3425_s0 + $0x11] ss:$0 sm:$0xff]  ;;  %v2763_v27 = vld [vmem:[%s2633_s9 + $0x1f4] sm:$0xff]  ;;  %v1986_v33 = vld [vmem:[%s2633_s9 + $0x224] sm:$0xff] }
  0x39   : >> { %v520_v2 = vadd.f32 %v516_v49, %v506_v52  ;;  %v521_v3 = vadd.f32 %v517_v54, %v507_v53  ;;  %v534_v4 = vmul.f32 %v2344_v45, %v1971_v50  ;;  %v545_v5 = vmul.f32 %v2345_v58, %v1972_v51  ;;  %v2348_v34 = vld [vmem:[%s3425_s0 + $0x12] ss:$0 sm:$0xff]  ;;  %v1988_v40 = vld [vmem:[%s2633_s9 + $0x1f9] sm:$0xff]  ;;  %v1989_v45 = vld [vmem:[%s2633_s9 + $0x201] sm:$0xff] }
  0x3a   : >> { %v535_v9 = vadd.f32 %v531_v55, %v518_v59  ;;  %v536_v10 = vadd.f32 %v532_v61, %v519_v60  ;;  %v546_v11 = vmul.f32 %v2345_v58, %v1973_v56  ;;  %v547_v12 = vmul.f32 %v2345_v58, %v1974_v57  ;;  %v1987_v39 = vld [vmem:[%s2633_s9 + $0x22c] sm:$0xff]  ;;  %v1992_v53 = vld [vmem:[%s2633_s9 + $0x1fe] sm:$0xff]  ;;  %v2350_v60 = vld [vmem:[%s3425_s0 + $0x14] ss:$0 sm:$0xff] }
  0x3b   : >> { %v537_v16 = vadd.f32 %v533_v62, %v520_v2  ;;  %v538_v17 = vadd.f32 %v534_v4, %v521_v3  ;;  %v548_v14 = vmul.f32 %v2345_v58, %v1975_v63  ;;  %v559_v18 = vmul.f32 %v2346_v8, %v1976_v1  ;;  %v1990_v46 = vld [vmem:[%s2633_s9 + $0x229] sm:$0xff]  ;;  %v2349_v47 = vld [vmem:[%s3425_s0 + $0x13] ss:$0 sm:$0xff]  ;;  %v1995_v2 = vld [vmem:[%s2633_s9 + $0x236] sm:$0xff] }
  0x3c   : >> { %v549_v22 = vadd.f32 %v545_v5, %v535_v9  ;;  %v550_v23 = vadd.f32 %v546_v11, %v536_v10  ;;  %v560_v24 = vmul.f32 %v2346_v8, %v2743_v6  ;;  %v561_v25 = vmul.f32 %v2346_v8, %v1978_v7  ;;  %v1991_v52 = vld [vmem:[%s2633_s9 + $0x231] sm:$0xff]  ;;  %v1993_v58 = vld [vmem:[%s2633_s9 + $0x206] sm:$0xff] }
  0x3d   : >> { %v551_v28 = vadd.f32 %v547_v12, %v537_v16  ;;  %v552_v29 = vadd.f32 %v548_v14, %v538_v17  ;;  %v562_v30 = vmul.f32 %v2346_v8, %v1979_v13  ;;  %v573_v31 = vmul.f32 %v2347_v21, %v2751_v15  ;;  %v1994_v59 = vld [vmem:[%s2633_s9 + $0x22e] sm:$0xff]  ;;  %v1999_v9 = vld [vmem:[%s2633_s9 + $0x2d8] sm:$0xff]  ;;  %v2000_v10 = vld [vmem:[%s2633_s9 + $0x300] sm:$0xff] }
  0x3e   : >> { %v563_v35 = vadd.f32 %v559_v18, %v549_v22  ;;  %v564_v36 = vadd.f32 %v560_v24, %v550_v23  ;;  %v574_v37 = vmul.f32 %v2347_v21, %v2754_v19  ;;  %v575_v38 = vmul.f32 %v2347_v21, %v1982_v20  ;;  %v1998_v3 = vld [vmem:[%s2633_s9 + $0x2d0] sm:$0xff]  ;;  %v2001_v14 = vld [vmem:[%s2633_s9 + $0x308] sm:$0xff]  ;;  %v2003_v24 = vld [vmem:[%s2633_s9 + $0x2dd] sm:$0xff] }
  0x3f   : >> { %v565_v41 = vadd.f32 %v561_v25, %v551_v28  ;;  %v566_v42 = vadd.f32 %v562_v30, %v552_v29  ;;  %v576_v43 = vmul.f32 %v2347_v21, %v1983_v26  ;;  %v587_v44 = vmul.f32 %v2348_v34, %v2763_v27  ;;  %v2351_v11 = vld [vmem:[%s3425_s0 + $0x15] ss:$0 sm:$0xff]  ;;  %v2004_v25 = vld [vmem:[%s2633_s9 + $0x305] sm:$0xff]  ;;  %v2352_v26 = vld [vmem:[%s3425_s0 + $0x16] ss:$0 sm:$0xff] }
  0x40   : >> { %v577_v48 = vadd.f32 %v573_v31, %v563_v35  ;;  %v578_v49 = vadd.f32 %v574_v37, %v564_v36  ;;  %v588_v50 = vmul.f32 %v2348_v34, %v1985_v32  ;;  %v589_v51 = vmul.f32 %v2348_v34, %v1986_v33  ;;  %v2002_v18 = vld [vmem:[%s2633_s9 + $0x2d5] sm:$0xff]  ;;  %v2005_v32 = vld [vmem:[%s2633_s9 + $0x30d] sm:$0xff] }
  0x41   : >> { %v579_v54 = vadd.f32 %v575_v38, %v565_v41  ;;  %v580_v55 = vadd.f32 %v576_v43, %v566_v42  ;;  %v590_v56 = vmul.f32 %v2348_v34, %v1987_v39  ;;  %v601_v57 = vmul.f32 %v2349_v47, %v1988_v40  ;;  %v2006_v33 = vld [vmem:[%s2633_s9 + $0x2da] sm:$0xff]  ;;  %v2007_v38 = vld [vmem:[%s2633_s9 + $0x2e2] sm:$0xff]  ;;  %v2008_v39 = vld [vmem:[%s2633_s9 + $0x30a] sm:$0xff] }
  0x42   : >> { %v591_v61 = vadd.f32 %v587_v44, %v577_v48  ;;  %v592_v62 = vadd.f32 %v588_v50, %v578_v49  ;;  %v602_v63 = vmul.f32 %v2349_v47, %v1989_v45  ;;  %v603_v1 = vmul.f32 %v2349_v47, %v1990_v46  ;;  %v2353_v40 = vld [vmem:[%s3425_s0 + $0x17] ss:$0 sm:$0xff]  ;;  %v2010_v46 = vld [vmem:[%s2633_s9 + $0x2df] sm:$0xff] }
  0x43   : >> { %v593_v4 = vadd.f32 %v589_v51, %v579_v54  ;;  %v594_v5 = vadd.f32 %v590_v56, %v580_v55  ;;  %v604_v7 = vmul.f32 %v2349_v47, %v1991_v52  ;;  %v615_v8 = vmul.f32 %v2350_v60, %v1992_v53  ;;  %v2009_v45 = vld [vmem:[%s2633_s9 + $0x312] sm:$0xff]  ;;  %v2011_v51 = vld [vmem:[%s2633_s9 + $0x2e7] sm:$0xff] }
  0x44   : >> { %v605_v12 = vadd.f32 %v601_v57, %v591_v61  ;;  %v606_v13 = vadd.f32 %v602_v63, %v592_v62  ;;  %v616_v16 = vmul.f32 %v2350_v60, %v1993_v58  ;;  %v617_v17 = vmul.f32 %v2350_v60, %v1994_v59  ;;  %v2012_v52 = vld [vmem:[%s2633_s9 + $0x30f] sm:$0xff]  ;;  %v2354_v53 = vld [vmem:[%s3425_s0 + $0x18] ss:$0 sm:$0xff]  ;;  %v2816_v54 = vld [vmem:[%s2633_s9 + $0x2e4] sm:$0xff] }
  0x45   : >> { %v607_v20 = vadd.f32 %v603_v1, %v593_v4  ;;  %v608_v21 = vadd.f32 %v604_v7, %v594_v5  ;;  %v618_v22 = vmul.f32 %v2350_v60, %v1995_v2  ;;  %v632_v23 = vmul.f32 %v2351_v11, %v1998_v3  ;;  %v2015_v55 = vld [vmem:[%s2633_s9 + $0x2ec] sm:$0xff]  ;;  %v2013_v60 = vld [vmem:[%s2633_s9 + $0x317] sm:$0xff] }
  0x46   : >> { %v619_v28 = vadd.f32 %v615_v8, %v605_v12  ;;  %v620_v29 = vadd.f32 %v616_v16, %v606_v13  ;;  %v633_v30 = vmul.f32 %v2351_v11, %v1999_v9  ;;  %v634_v31 = vmul.f32 %v2351_v11, %v2000_v10  ;;  %v2821_v61 = vld [vmem:[%s2633_s9 + $0x314] sm:$0xff]  ;;  %v2017_v62 = vld [vmem:[%s2633_s9 + $0x31c] sm:$0xff]  ;;  %v2018_v5 = vld [vmem:[%s2633_s9 + $0x2e9] sm:$0xff] }
  0x47   : >> { %v621_v34 = vadd.f32 %v617_v17, %v607_v20  ;;  %v622_v35 = vadd.f32 %v618_v22, %v608_v21  ;;  %v635_v36 = vmul.f32 %v2351_v11, %v2001_v14  ;;  %v646_v37 = vmul.f32 %v2352_v26, %v2002_v18  ;;  %v2355_v4 = vld [vmem:[%s3425_s0 + $0x19] ss:$0 sm:$0xff]  ;;  %v2019_v7 = vld [vmem:[%s2633_s9 + $0x2f1] sm:$0xff]  ;;  %v2021_v13 = vld [vmem:[%s2633_s9 + $0x321] sm:$0xff] }
  0x48   : >> { %v636_v41 = vadd.f32 %v632_v23, %v619_v28  ;;  %v637_v42 = vadd.f32 %v633_v30, %v620_v29  ;;  %v647_v43 = vmul.f32 %v2352_v26, %v2003_v24  ;;  %v648_v44 = vmul.f32 %v2352_v26, %v2004_v25  ;;  %v2020_v12 = vld [vmem:[%s2633_s9 + $0x319] sm:$0xff]  ;;  %v2022_v21 = vld [vmem:[%s2633_s9 + $0x2ee] sm:$0xff]  ;;  %v2025_v28 = vld [vmem:[%s2633_s9 + $0x326] sm:$0xff] }
  0x49   : >> { %v638_v47 = vadd.f32 %v634_v31, %v621_v34  ;;  %v639_v48 = vadd.f32 %v635_v36, %v622_v35  ;;  %v649_v49 = vmul.f32 %v2352_v26, %v2005_v32  ;;  %v660_v50 = vmul.f32 %v2353_v40, %v2006_v33  ;;  %v2356_v20 = vld [vmem:[%s3425_s0 + $0x1a] ss:$0 sm:$0xff]  ;;  %v2024_v26 = vld [vmem:[%s2633_s9 + $0x31e] sm:$0xff]  ;;  %v2357_v33 = vld [vmem:[%s3425_s0 + $0x1b] ss:$0 sm:$0xff] }
  0x4a   : >> { %v650_v56 = vadd.f32 %v646_v37, %v636_v41  ;;  %v651_v57 = vadd.f32 %v647_v43, %v637_v42  ;;  %v661_v58 = vmul.f32 %v2353_v40, %v2007_v38  ;;  %v662_v59 = vmul.f32 %v2353_v40, %v2008_v39  ;;  %v2023_v22 = vld [vmem:[%s2633_s9 + $0x2f6] sm:$0xff]  ;;  %v2028_v34 = vld [vmem:[%s2633_s9 + $0x3c0] sm:$0xff]  ;;  %v2029_v35 = vld [vmem:[%s2633_s9 + $0x3c8] sm:$0xff] }
  0x4b   : >> { %v652_v63 = vadd.f32 %v648_v44, %v638_v47  ;;  %v653_v1 = vadd.f32 %v649_v49, %v639_v48  ;;  %v663_v2 = vmul.f32 %v2353_v40, %v2009_v45  ;;  %v674_v3 = vmul.f32 %v2354_v53, %v2010_v46  ;;  %v2030_v40 = vld [vmem:[%s2633_s9 + $0x3f0] sm:$0xff]  ;;  %v2031_v41 = vld [vmem:[%s2633_s9 + $0x3f8] sm:$0xff]  ;;  %v2032_v47 = vld [vmem:[%s2633_s9 + $0x3c5] sm:$0xff] }
  0x4c   : >> { %v664_v8 = vadd.f32 %v660_v50, %v650_v56  ;;  %v665_v9 = vadd.f32 %v661_v58, %v651_v57  ;;  %v675_v10 = vmul.f32 %v2354_v53, %v2011_v51  ;;  %v676_v11 = vmul.f32 %v2354_v53, %v2012_v52  ;;  %v2358_v46 = vld [vmem:[%s3425_s0 + $0x1c] ss:$0 sm:$0xff]  ;;  %v2033_v48 = vld [vmem:[%s2633_s9 + $0x3cd] sm:$0xff] }
  0x4d   : >> { %v666_v16 = vadd.f32 %v662_v59, %v652_v63  ;;  %v667_v17 = vadd.f32 %v663_v2, %v653_v1  ;;  %v677_v14 = vmul.f32 %v2354_v53, %v2013_v60  ;;  %v688_v18 = vmul.f32 %v2355_v4, %v2816_v54  ;;  %v2034_v53 = vld [vmem:[%s2633_s9 + $0x3f5] sm:$0xff]  ;;  %v2359_v60 = vld [vmem:[%s3425_s0 + $0x1d] ss:$0 sm:$0xff] }
  0x4e   : >> { %v2837_v23 = vadd.f32 %v674_v3, %v664_v8  ;;  %v689_v24 = vmul.f32 %v2355_v4, %v2015_v55  ;;  %v690_v25 = vmul.f32 %v2355_v4, %v2821_v61  ;;  %v2842_v29 = vadd.f32 %v675_v10, %v665_v9  ;;  %v2035_v55 = vld [vmem:[%s2633_s9 + $0x3fd] sm:$0xff]  ;;  %v2037_v63 = vld [vmem:[%s2633_s9 + $0x3d2] sm:$0xff] }
  0x4f   : >> { %v2844_v30 = vadd.f32 %v676_v11, %v666_v16  ;;  %v691_v31 = vmul.f32 %v2355_v4, %v2017_v62  ;;  %v702_v32 = vmul.f32 %v2356_v20, %v2018_v5  ;;  %v2851_v36 = vadd.f32 %v677_v14, %v667_v17  ;;  %v2036_v62 = vld [vmem:[%s2633_s9 + $0x3ca] sm:$0xff]  ;;  %v2038_v5 = vld [vmem:[%s2633_s9 + $0x3fa] sm:$0xff] }
  0x50   : >> { %v703_v37 = vmul.f32 %v2356_v20, %v2019_v7  ;;  %v704_v38 = vmul.f32 %v2356_v20, %v2020_v12  ;;  %v705_v39 = vmul.f32 %v2356_v20, %v2021_v13  ;;  %v716_v43 = vmul.f32 %v2357_v33, %v2022_v21  ;;  %v2039_v7 = vld [vmem:[%s2633_s9 + $0x402] sm:$0xff]  ;;  %v2360_v12 = vld [vmem:[%s3425_s0 + $0x1e] ss:$0 sm:$0xff]  ;;  %v2040_v13 = vld [vmem:[%s2633_s9 + $0x3cf] sm:$0xff] }
  0x51   : >> { %v706_v42 = vadd.f32 %v702_v32, %v688_v18  ;;  %v717_v44 = vmul.f32 %v2357_v33, %v2023_v22  ;;  %v718_v45 = vmul.f32 %v2357_v33, %v2024_v26  ;;  %v719_v52 = vmul.f32 %v2357_v33, %v2025_v28  ;;  %v2041_v16 = vld [vmem:[%s2633_s9 + $0x3d7] sm:$0xff]  ;;  %v2042_v21 = vld [vmem:[%s2633_s9 + $0x3ff] sm:$0xff]  ;;  %v2043_v22 = vld [vmem:[%s2633_s9 + $0x407] sm:$0xff] }
  0x52   : >> { %v707_v49 = vadd.f32 %v703_v37, %v689_v24  ;;  %v708_v50 = vadd.f32 %v704_v38, %v690_v25  ;;  %v709_v51 = vadd.f32 %v705_v39, %v691_v31  ;;  %v733_v57 = vmul.f32 %v2358_v46, %v2028_v34  ;;  %v2361_v31 = vld [vmem:[%s3425_s0 + $0x1f] ss:$0 sm:$0xff]  ;;  %v2044_v32 = vld [vmem:[%s2633_s9 + $0x3d4] sm:$0xff]  ;;  %v2046_v39 = vld [vmem:[%s2633_s9 + $0x404] sm:$0xff] }
  0x53   : >> { %v720_v56 = vadd.f32 %v716_v43, %v706_v42  ;;  %v734_v58 = vmul.f32 %v2358_v46, %v2029_v35  ;;  %v735_v59 = vmul.f32 %v2358_v46, %v2030_v40  ;;  %v736_v4 = vmul.f32 %v2358_v46, %v2031_v41  ;;  %v2045_v33 = vld [vmem:[%s2633_s9 + $0x3dc] sm:$0xff]  ;;  %v2047_v40 = vld [vmem:[%s2633_s9 + $0x40c] sm:$0xff] }
  0x54   : >> { %v721_v1 = vadd.f32 %v717_v44, %v707_v49  ;;  %v722_v2 = vadd.f32 %v718_v45, %v708_v50  ;;  %v723_v3 = vadd.f32 %v719_v52, %v709_v51  ;;  %v747_v9 = vmul.f32 %v2359_v60, %v2032_v47  ;;  %v2362_v45 = vld [vmem:[%s3425_s0 + $0x20] ss:$0 sm:$0xff]  ;;  %v2049_v47 = vld [vmem:[%s2633_s9 + $0x3e1] sm:$0xff]  ;;  %v2050_v52 = vld [vmem:[%s2633_s9 + $0x409] sm:$0xff] }
  0x55   : >> { %v737_v8 = vadd.f32 %v733_v57, %v720_v56  ;;  %v748_v10 = vmul.f32 %v2359_v60, %v2033_v48  ;;  %v749_v11 = vmul.f32 %v2359_v60, %v2034_v53  ;;  %v750_v20 = vmul.f32 %v2359_v60, %v2035_v55  ;;  %v2048_v46 = vld [vmem:[%s2633_s9 + $0x3d9] sm:$0xff]  ;;  %v2051_v53 = vld [vmem:[%s2633_s9 + $0x411] sm:$0xff] }
  0x56   : >> { %v738_v17 = vadd.f32 %v734_v58, %v721_v1  ;;  %v739_v14 = vadd.f32 %v735_v59, %v722_v2  ;;  %v740_v18 = vadd.f32 %v736_v4, %v723_v3  ;;  %v761_v25 = vmul.f32 %v2360_v12, %v2036_v62  ;;  %v2363_v59 = vld [vmem:[%s3425_s0 + $0x21] ss:$0 sm:$0xff]  ;;  %v2053_v62 = vld [vmem:[%s2633_s9 + $0x3e6] sm:$0xff]  ;;  %v2054_v4 = vld [vmem:[%s2633_s9 + $0x40e] sm:$0xff] }
  0x57   : >> { %v751_v24 = vadd.f32 %v747_v9, %v737_v8  ;;  %v762_v26 = vmul.f32 %v2360_v12, %v2037_v63  ;;  %v763_v28 = vmul.f32 %v2360_v12, %v2038_v5  ;;  %v764_v38 = vmul.f32 %v2360_v12, %v2039_v7  ;;  %v2052_v60 = vld [vmem:[%s2633_s9 + $0x3de] sm:$0xff]  ;;  %v2055_v5 = vld [vmem:[%s2633_s9 + $0x416] sm:$0xff] }
  0x58   : >> { %v752_v34 = vadd.f32 %v748_v10, %v738_v17  ;;  %v753_v35 = vadd.f32 %v749_v11, %v739_v14  ;;  %v754_v37 = vadd.f32 %v750_v20, %v740_v18  ;;  %v775_v42 = vmul.f32 %v2361_v31, %v2040_v13  ;;  %v2364_v11 = vld [vmem:[%s3425_s0 + $0x22] ss:$0 sm:$0xff]  ;;  %v2058_v12 = vld [vmem:[%s2633_s9 + $0x4b0] sm:$0xff]  ;;  %v2059_v13 = vld [vmem:[%s2633_s9 + $0x4b8] sm:$0xff] }
  0x59   : >> { %v765_v41 = vadd.f32 %v761_v25, %v751_v24  ;;  %v776_v43 = vmul.f32 %v2361_v31, %v2041_v16  ;;  %v777_v44 = vmul.f32 %v2361_v31, %v2042_v21  ;;  %v778_v51 = vmul.f32 %v2361_v31, %v2043_v22  ;;  %v2060_v20 = vld [vmem:[%s2633_s9 + $0x4e0] sm:$0xff]  ;;  %v2061_v21 = vld [vmem:[%s2633_s9 + $0x4e8] sm:$0xff]  ;;  %v2062_v31 = vld [vmem:[%s2633_s9 + $0x4b5] sm:$0xff] }
  0x5a   : >> { %v766_v48 = vadd.f32 %v762_v26, %v752_v34  ;;  %v767_v49 = vadd.f32 %v763_v28, %v753_v35  ;;  %v768_v50 = vadd.f32 %v764_v38, %v754_v37  ;;  %v789_v56 = vmul.f32 %v2362_v45, %v2044_v32  ;;  %v2365_v28 = vld [vmem:[%s3425_s0 + $0x23] ss:$0 sm:$0xff]  ;;  %v2064_v38 = vld [vmem:[%s2633_s9 + $0x4e5] sm:$0xff] }
  0x5b   : >> { %v779_v55 = vadd.f32 %v775_v42, %v765_v41  ;;  %v790_v57 = vmul.f32 %v2362_v45, %v2045_v33  ;;  %v791_v58 = vmul.f32 %v2362_v45, %v2046_v39  ;;  %v792_v3 = vmul.f32 %v2362_v45, %v2047_v40  ;;  %v2063_v32 = vld [vmem:[%s2633_s9 + $0x4bd] sm:$0xff]  ;;  %v2065_v39 = vld [vmem:[%s2633_s9 + $0x4ed] sm:$0xff] }
  0x5c   : >> { %v780_v63 = vadd.f32 %v776_v43, %v766_v48  ;;  %v781_v1 = vadd.f32 %v777_v44, %v767_v49  ;;  %v782_v2 = vadd.f32 %v778_v51, %v768_v50  ;;  %v803_v8 = vmul.f32 %v2363_v59, %v2048_v46  ;;  %v2366_v44 = vld [vmem:[%s3425_s0 + $0x24] ss:$0 sm:$0xff]  ;;  %v2066_v45 = vld [vmem:[%s2633_s9 + $0x4ba] sm:$0xff]  ;;  %v2068_v51 = vld [vmem:[%s2633_s9 + $0x4ea] sm:$0xff] }
  0x5d   : >> { %v793_v7 = vadd.f32 %v789_v56, %v779_v55  ;;  %v804_v9 = vmul.f32 %v2363_v59, %v2049_v47  ;;  %v805_v10 = vmul.f32 %v2363_v59, %v2050_v52  ;;  %v806_v18 = vmul.f32 %v2363_v59, %v2051_v53  ;;  %v2067_v46 = vld [vmem:[%s2633_s9 + $0x4c2] sm:$0xff]  ;;  %v2069_v52 = vld [vmem:[%s2633_s9 + $0x4f2] sm:$0xff] }
  0x5e   : >> { %v794_v16 = vadd.f32 %v790_v57, %v780_v63  ;;  %v795_v17 = vadd.f32 %v791_v58, %v781_v1  ;;  %v796_v14 = vadd.f32 %v792_v3, %v782_v2  ;;  %v817_v24 = vmul.f32 %v2364_v11, %v2052_v60  ;;  %v2367_v58 = vld [vmem:[%s3425_s0 + $0x25] ss:$0 sm:$0xff]  ;;  %v2071_v60 = vld [vmem:[%s2633_s9 + $0x4c7] sm:$0xff]  ;;  %v2072_v3 = vld [vmem:[%s2633_s9 + $0x4ef] sm:$0xff] }
  0x5f   : >> { %v807_v22 = vadd.f32 %v803_v8, %v793_v7  ;;  %v818_v25 = vmul.f32 %v2364_v11, %v2053_v62  ;;  %v819_v26 = vmul.f32 %v2364_v11, %v2054_v4  ;;  %v820_v37 = vmul.f32 %v2364_v11, %v2055_v5  ;;  %v2070_v59 = vld [vmem:[%s2633_s9 + $0x4bf] sm:$0xff]  ;;  %v2073_v4 = vld [vmem:[%s2633_s9 + $0x4f7] sm:$0xff] }
  0x60   : >> { %v808_v33 = vadd.f32 %v804_v9, %v794_v16  ;;  %v809_v34 = vadd.f32 %v805_v10, %v795_v17  ;;  %v810_v35 = vadd.f32 %v806_v18, %v796_v14  ;;  %v834_v41 = vmul.f32 %v2365_v28, %v2058_v12  ;;  %v2368_v10 = vld [vmem:[%s3425_s0 + $0x26] ss:$0 sm:$0xff]  ;;  %v2075_v12 = vld [vmem:[%s2633_s9 + $0x4cc] sm:$0xff]  ;;  %v2076_v18 = vld [vmem:[%s2633_s9 + $0x4f4] sm:$0xff] }
  0x61   : >> { %v821_v40 = vadd.f32 %v817_v24, %v807_v22  ;;  %v835_v42 = vmul.f32 %v2365_v28, %v2059_v13  ;;  %v836_v43 = vmul.f32 %v2365_v28, %v2060_v20  ;;  %v837_v50 = vmul.f32 %v2365_v28, %v2061_v21  ;;  %v2074_v11 = vld [vmem:[%s2633_s9 + $0x4c4] sm:$0xff]  ;;  %v2077_v20 = vld [vmem:[%s2633_s9 + $0x4fc] sm:$0xff] }
  0x62   : >> { %v822_v47 = vadd.f32 %v818_v25, %v808_v33  ;;  %v823_v48 = vadd.f32 %v819_v26, %v809_v34  ;;  %v824_v49 = vadd.f32 %v820_v37, %v810_v35  ;;  %v848_v55 = vmul.f32 %v2366_v44, %v2062_v31  ;;  %v2369_v26 = vld [vmem:[%s3425_s0 + $0x27] ss:$0 sm:$0xff]  ;;  %v2078_v28 = vld [vmem:[%s2633_s9 + $0x4c9] sm:$0xff]  ;;  %v2079_v31 = vld [vmem:[%s2633_s9 + $0x4d1] sm:$0xff] }
  0x63   : >> { %v838_v53 = vadd.f32 %v834_v41, %v821_v40  ;;  %v849_v56 = vmul.f32 %v2366_v44, %v2063_v32  ;;  %v850_v57 = vmul.f32 %v2366_v44, %v2064_v38  ;;  %v851_v2 = vmul.f32 %v2366_v44, %v2065_v39  ;;  %v2080_v37 = vld [vmem:[%s2633_s9 + $0x4f9] sm:$0xff]  ;;  %v2081_v38 = vld [vmem:[%s2633_s9 + $0x501] sm:$0xff]  ;;  %v2082_v44 = vld [vmem:[%s2633_s9 + $0x4ce] sm:$0xff] }
  0x64   : >> { %v839_v62 = vadd.f32 %v835_v42, %v822_v47  ;;  %v840_v63 = vadd.f32 %v836_v43, %v823_v48  ;;  %v841_v1 = vadd.f32 %v837_v50, %v824_v49  ;;  %v862_v7 = vmul.f32 %v2367_v58, %v2066_v45  ;;  %v2370_v43 = vld [vmem:[%s3425_s0 + $0x28] ss:$0 sm:$0xff]  ;;  %v2083_v45 = vld [vmem:[%s2633_s9 + $0x4d6] sm:$0xff]  ;;  %v2084_v50 = vld [vmem:[%s2633_s9 + $0x4fe] sm:$0xff] }
  0x65   : >> { %v852_v5 = vadd.f32 %v848_v55, %v838_v53  ;;  %v863_v8 = vmul.f32 %v2367_v58, %v2067_v46  ;;  %v864_v9 = vmul.f32 %v2367_v58, %v2068_v51  ;;  %v865_v14 = vmul.f32 %v2367_v58, %v2069_v52  ;;  %v2085_v51 = vld [vmem:[%s2633_s9 + $0x506] sm:$0xff] }
  0x66   : >> { %v853_v13 = vadd.f32 %v849_v56, %v839_v62  ;;  %v854_v16 = vadd.f32 %v850_v57, %v840_v63  ;;  %v855_v17 = vadd.f32 %v851_v2, %v841_v1  ;;  %v876_v22 = vmul.f32 %v2368_v10, %v2070_v59  ;;  %v2371_v57 = vld [vmem:[%s3425_s0 + $0x29] ss:$0 sm:$0xff]  ;;  %v2088_v58 = vld [vmem:[%s2633_s9 + $0x5a0] sm:$0xff]  ;;  %v2090_v2 = vld [vmem:[%s2633_s9 + $0x5d0] sm:$0xff] }
  0x67   : >> { %v866_v21 = vadd.f32 %v862_v7, %v852_v5  ;;  %v877_v24 = vmul.f32 %v2368_v10, %v2071_v60  ;;  %v878_v25 = vmul.f32 %v2368_v10, %v2072_v3  ;;  %v879_v35 = vmul.f32 %v2368_v10, %v2073_v4  ;;  %v2089_v59 = vld [vmem:[%s2633_s9 + $0x5a8] sm:$0xff]  ;;  %v2091_v3 = vld [vmem:[%s2633_s9 + $0x5d8] sm:$0xff] }
  0x68   : >> { %v867_v32 = vadd.f32 %v863_v8, %v853_v13  ;;  %v868_v33 = vadd.f32 %v864_v9, %v854_v16  ;;  %v869_v34 = vadd.f32 %v865_v14, %v855_v17  ;;  %v890_v40 = vmul.f32 %v2369_v26, %v2074_v11  ;;  %v2372_v9 = vld [vmem:[%s3425_s0 + $0x2a] ss:$0 sm:$0xff]  ;;  %v2093_v11 = vld [vmem:[%s2633_s9 + $0x5ad] sm:$0xff]  ;;  %v2094_v14 = vld [vmem:[%s2633_s9 + $0x5d5] sm:$0xff] }
  0x69   : >> { %v880_v39 = vadd.f32 %v876_v22, %v866_v21  ;;  %v891_v41 = vmul.f32 %v2369_v26, %v2075_v12  ;;  %v892_v42 = vmul.f32 %v2369_v26, %v2076_v18  ;;  %v893_v49 = vmul.f32 %v2369_v26, %v2077_v20  ;;  %v2092_v10 = vld [vmem:[%s2633_s9 + $0x5a5] sm:$0xff]  ;;  %v2095_v18 = vld [vmem:[%s2633_s9 + $0x5dd] sm:$0xff] }
  0x6a   : >> { %v881_v46 = vadd.f32 %v877_v24, %v867_v32  ;;  %v882_v47 = vadd.f32 %v878_v25, %v868_v33  ;;  %v883_v48 = vadd.f32 %v879_v35, %v869_v34  ;;  %v904_v53 = vmul.f32 %v2370_v43, %v2078_v28  ;;  %v2373_v25 = vld [vmem:[%s3425_s0 + $0x2b] ss:$0 sm:$0xff]  ;;  %v2097_v28 = vld [vmem:[%s2633_s9 + $0x5b2] sm:$0xff]  ;;  %v2098_v35 = vld [vmem:[%s2633_s9 + $0x5da] sm:$0xff] }
  0x6b   : >> { %v894_v52 = vadd.f32 %v890_v40, %v880_v39  ;;  %v905_v55 = vmul.f32 %v2370_v43, %v2079_v31  ;;  %v906_v56 = vmul.f32 %v2370_v43, %v2080_v37  ;;  %v907_v1 = vmul.f32 %v2370_v43, %v2081_v38  ;;  %v2096_v26 = vld [vmem:[%s2633_s9 + $0x5aa] sm:$0xff]  ;;  %v2099_v37 = vld [vmem:[%s2633_s9 + $0x5e2] sm:$0xff] }
  0x6c   : >> { %v895_v60 = vadd.f32 %v891_v41, %v881_v46  ;;  %v896_v62 = vadd.f32 %v892_v42, %v882_v47  ;;  %v897_v63 = vadd.f32 %v893_v49, %v883_v48  ;;  %v918_v5 = vmul.f32 %v2371_v57, %v2082_v44  ;;  %v2374_v42 = vld [vmem:[%s3425_s0 + $0x2c] ss:$0 sm:$0xff]  ;;  %v2100_v43 = vld [vmem:[%s2633_s9 + $0x5af] sm:$0xff]  ;;  %v2101_v44 = vld [vmem:[%s2633_s9 + $0x5b7] sm:$0xff] }
  0x6d   : >> { %v908_v4 = vadd.f32 %v904_v53, %v894_v52  ;;  %v919_v7 = vmul.f32 %v2371_v57, %v2083_v45  ;;  %v920_v8 = vmul.f32 %v2371_v57, %v2084_v50  ;;  %v921_v17 = vmul.f32 %v2371_v57, %v2085_v51  ;;  %v2102_v49 = vld [vmem:[%s2633_s9 + $0x5df] sm:$0xff]  ;;  %v2103_v50 = vld [vmem:[%s2633_s9 + $0x5e7] sm:$0xff]  ;;  %v2104_v57 = vld [vmem:[%s2633_s9 + $0x5b4] sm:$0xff] }
  0x6e   : >> { %v909_v12 = vadd.f32 %v905_v55, %v895_v60  ;;  %v910_v13 = vadd.f32 %v906_v56, %v896_v62  ;;  %v911_v16 = vadd.f32 %v907_v1, %v897_v63  ;;  %v935_v21 = vmul.f32 %v2372_v9, %v2088_v58  ;;  %v2375_v56 = vld [vmem:[%s3425_s0 + $0x2d] ss:$0 sm:$0xff]  ;;  %v2105_v58 = vld [vmem:[%s2633_s9 + $0x5bc] sm:$0xff]  ;;  %v2106_v1 = vld [vmem:[%s2633_s9 + $0x5e4] sm:$0xff] }
  0x6f   : >> { %v922_v20 = vadd.f32 %v918_v5, %v908_v4  ;;  %v936_v22 = vmul.f32 %v2372_v9, %v2089_v59  ;;  %v937_v24 = vmul.f32 %v2372_v9, %v2090_v2  ;;  %v938_v34 = vmul.f32 %v2372_v9, %v2091_v3  ;;  %v2107_v2 = vld [vmem:[%s2633_s9 + $0x5ec] sm:$0xff]  ;;  %v2108_v9 = vld [vmem:[%s2633_s9 + $0x5b9] sm:$0xff] }
  0x70   : >> { %v923_v31 = vadd.f32 %v919_v7, %v909_v12  ;;  %v924_v32 = vadd.f32 %v920_v8, %v910_v13  ;;  %v925_v33 = vadd.f32 %v921_v17, %v911_v16  ;;  %v949_v39 = vmul.f32 %v2373_v25, %v2092_v10  ;;  %v2376_v8 = vld [vmem:[%s3425_s0 + $0x2e] ss:$0 sm:$0xff]  ;;  %v2109_v10 = vld [vmem:[%s2633_s9 + $0x5c1] sm:$0xff] }
  0x71   : >> { %v939_v38 = vadd.f32 %v935_v21, %v922_v20  ;;  %v950_v40 = vmul.f32 %v2373_v25, %v2093_v11  ;;  %v951_v41 = vmul.f32 %v2373_v25, %v2094_v14  ;;  %v952_v48 = vmul.f32 %v2373_v25, %v2095_v18  ;;  %v2110_v17 = vld [vmem:[%s2633_s9 + $0x5e9] sm:$0xff]  ;;  %v2111_v14 = vld [vmem:[%s2633_s9 + $0x5f1] sm:$0xff]  ;;  %v2112_v25 = vld [vmem:[%s2633_s9 + $0x5be] sm:$0xff] }
  0x72   : >> { %v940_v45 = vadd.f32 %v936_v22, %v923_v31  ;;  %v941_v46 = vadd.f32 %v937_v24, %v924_v32  ;;  %v942_v47 = vadd.f32 %v938_v34, %v925_v33  ;;  %v963_v52 = vmul.f32 %v2374_v42, %v2096_v26  ;;  %v2377_v24 = vld [vmem:[%s3425_s0 + $0x2f] ss:$0 sm:$0xff]  ;;  %v2113_v26 = vld [vmem:[%s2633_s9 + $0x5c6] sm:$0xff] }
  0x73   : >> { %v953_v51 = vadd.f32 %v949_v39, %v939_v38  ;;  %v964_v53 = vmul.f32 %v2374_v42, %v2097_v28  ;;  %v965_v55 = vmul.f32 %v2374_v42, %v2098_v35  ;;  %v966_v63 = vmul.f32 %v2374_v42, %v2099_v37  ;;  %v2114_v34 = vld [vmem:[%s2633_s9 + $0x5ee] sm:$0xff]  ;;  %v2115_v35 = vld [vmem:[%s2633_s9 + $0x5f6] sm:$0xff] }
  0x74   : >> { %v954_v59 = vadd.f32 %v950_v40, %v940_v45  ;;  %v955_v60 = vadd.f32 %v951_v41, %v941_v46  ;;  %v956_v62 = vadd.f32 %v952_v48, %v942_v47  ;;  %v977_v4 = vmul.f32 %v2375_v56, %v2100_v43  ;;  %v2378_v41 = vld [vmem:[%s3425_s0 + $0x30] ss:$0 sm:$0xff]  ;;  %v2118_v42 = vld [vmem:[%s2633_s9 + $0x1b9] sm:$0xff]  ;;  %v2119_v43 = vld [vmem:[%s2633_s9 + $0x1c1] sm:$0xff] }
  0x75   : >> { %v967_v3 = vadd.f32 %v963_v52, %v953_v51  ;;  %v978_v5 = vmul.f32 %v2375_v56, %v2101_v44  ;;  %v979_v7 = vmul.f32 %v2375_v56, %v2102_v49  ;;  %v980_v16 = vmul.f32 %v2375_v56, %v2103_v50  ;;  %v2120_v48 = vld [vmem:[%s2633_s9 + $0x1e9] sm:$0xff]  ;;  %v2121_v49 = vld [vmem:[%s2633_s9 + $0x1f1] sm:$0xff]  ;;  %v2122_v56 = vld [vmem:[%s2633_s9 + $0x1bc] sm:$0xff] }
  0x76   : >> { %v968_v11 = vadd.f32 %v964_v53, %v954_v59  ;;  %v969_v12 = vadd.f32 %v965_v55, %v955_v60  ;;  %v970_v13 = vadd.f32 %v966_v63, %v956_v62  ;;  %v991_v20 = vmul.f32 %v2376_v8, %v2104_v57  ;;  %v2379_v55 = vld [vmem:[%s3426_s1] ss:$0 sm:$0xff]  ;;  %v2123_v57 = vld [vmem:[%s2633_s9 + $0x1c4] sm:$0xff]  ;;  %v2124_v63 = vld [vmem:[%s2633_s9 + $0x1ec] sm:$0xff] }
  0x77   : >> { %v981_v18 = vadd.f32 %v977_v4, %v967_v3  ;;  %v992_v21 = vmul.f32 %v2376_v8, %v2105_v58  ;;  %v993_v22 = vmul.f32 %v2376_v8, %v2106_v1  ;;  %v994_v33 = vmul.f32 %v2376_v8, %v2107_v2  ;;  %v2380_v1 = vld [vmem:[%s3426_s1 + $0x1] ss:$0 sm:$0xff]  ;;  %v2127_v8 = vld [vmem:[%s2633_s9 + $0x1c7] sm:$0xff] }
  0x78   : >> { %v982_v28 = vadd.f32 %v978_v5, %v968_v11  ;;  %v983_v31 = vadd.f32 %v979_v7, %v969_v12  ;;  %v984_v32 = vadd.f32 %v980_v16, %v970_v13  ;;  %v1005_v38 = vmul.f32 %v2377_v24, %v2108_v9  ;;  %v2126_v7 = vld [vmem:[%s2633_s9 + $0x1bf] sm:$0xff] }
  0x79   : >> { %v995_v37 = vadd.f32 %v991_v20, %v981_v18  ;;  %v1006_v39 = vmul.f32 %v2377_v24, %v2109_v10  ;;  %v1007_v40 = vmul.f32 %v2377_v24, %v2110_v17  ;;  %v1008_v47 = vmul.f32 %v2377_v24, %v2111_v14  ;;  %v2381_v13 = vld [vmem:[%s3426_s1 + $0x2] ss:$0 sm:$0xff]  ;;  %v2131_v17 = vld [vmem:[%s2633_s9 + $0x1ca] sm:$0xff]  ;;  %v2382_v24 = vld [vmem:[%s3426_s1 + $0x3] ss:$0 sm:$0xff] }
  0x7a   : >> { %v996_v44 = vadd.f32 %v992_v21, %v982_v28  ;;  %v997_v45 = vadd.f32 %v993_v22, %v983_v31  ;;  %v998_v46 = vadd.f32 %v994_v33, %v984_v32  ;;  %v1019_v51 = vmul.f32 %v2378_v41, %v2112_v25  ;;  %v2130_v16 = vld [vmem:[%s2633_s9 + $0x1c2] sm:$0xff]  ;;  %v2133_v22 = vld [vmem:[%s2633_s9 + $0x1fa] sm:$0xff]  ;;  %v2135_v33 = vld [vmem:[%s2633_s9 + $0x1cd] sm:$0xff] }
  0x7b   : >> { %v1009_v50 = vadd.f32 %v1005_v38, %v995_v37  ;;  %v1020_v52 = vmul.f32 %v2378_v41, %v2113_v26  ;;  %v1021_v53 = vmul.f32 %v2378_v41, %v2114_v34  ;;  %v1022_v62 = vmul.f32 %v2378_v41, %v2115_v35  ;;  %v2134_v32 = vld [vmem:[%s2633_s9 + $0x1c5] sm:$0xff]  ;;  %v2136_v34 = vld [vmem:[%s2633_s9 + $0x1f5] sm:$0xff] }
  0x7c   : >> { %v1010_v58 = vadd.f32 %v1006_v39, %v996_v44  ;;  %v1011_v59 = vadd.f32 %v1007_v40, %v997_v45  ;;  %v1012_v60 = vadd.f32 %v1008_v47, %v998_v46  ;;  %v1036_v3 = vmul.f32 %v2379_v55, %v2118_v42  ;;  %v2137_v39 = vld [vmem:[%s2633_s9 + $0x1fd] sm:$0xff]  ;;  %v2141_v44 = vld [vmem:[%s2633_s9 + $0x251] sm:$0xff] }
  0x7d   : >> { %v3011_v2 = vadd.f32 %v1019_v51, %v1009_v50  ;;  %v1037_v4 = vmul.f32 %v2379_v55, %v2119_v43  ;;  %v1038_v5 = vmul.f32 %v2379_v55, %v2120_v48  ;;  %v1039_v12 = vmul.f32 %v2379_v55, %v2121_v49  ;;  %v2383_v40 = vld [vmem:[%s3426_s1 + $0x4] ss:$0 sm:$0xff]  ;;  %v2140_v43 = vld [vmem:[%s2633_s9 + $0x249] sm:$0xff]  ;;  %v2142_v45 = vld [vmem:[%s2633_s9 + $0x279] sm:$0xff] }
  0x7e   : >> { %v3015_v9 = vadd.f32 %v1020_v52, %v1010_v58  ;;  %v3017_v10 = vadd.f32 %v1021_v53, %v1011_v59  ;;  %v3019_v11 = vadd.f32 %v1022_v62, %v1012_v60  ;;  %v1050_v14 = vmul.f32 %v2380_v1, %v2122_v56  ;;  %v2143_v50 = vld [vmem:[%s2633_s9 + $0x281] sm:$0xff]  ;;  %v2144_v56 = vld [vmem:[%s2633_s9 + $0x24c] sm:$0xff] }
  0x7f   : >> { %v1051_v18 = vmul.f32 %v2380_v1, %v2123_v57  ;;  %v1052_v20 = vmul.f32 %v2380_v1, %v2124_v63  ;;  %v1053_v21 = vmul.f32 %v2380_v1, %v2763_v27  ;;  %v1064_v25 = vmul.f32 %v2381_v13, %v2126_v7  ;;  %v2384_v51 = vld [vmem:[%s3426_s1 + $0x5] ss:$0 sm:$0xff]  ;;  %v2145_v57 = vld [vmem:[%s2633_s9 + $0x254] sm:$0xff]  ;;  %v2146_v58 = vld [vmem:[%s2633_s9 + $0x27c] sm:$0xff] }
  0x80   : >> { %v1065_v26 = vmul.f32 %v2381_v13, %v2127_v8  ;;  %v1066_v28 = vmul.f32 %v2381_v13, %v2751_v15  ;;  %v1067_v31 = vmul.f32 %v2381_v13, %v2754_v19  ;;  %v1054_v35 = vadd.f32 %v1050_v14, %v1036_v3  ;;  %v2147_v1 = vld [vmem:[%s2633_s9 + $0x284] sm:$0xff]  ;;  %v2149_v13 = vld [vmem:[%s2633_s9 + $0x257] sm:$0xff] }
  0x81   : >> { %v1055_v37 = vadd.f32 %v1051_v18, %v1037_v4  ;;  %v1056_v27 = vadd.f32 %v1052_v20, %v1038_v5  ;;  %v1057_v38 = vadd.f32 %v1053_v21, %v1039_v12  ;;  %v1078_v41 = vmul.f32 %v2382_v24, %v2130_v16  ;;  %v2385_v3 = vld [vmem:[%s3426_s1 + $0x6] ss:$0 sm:$0xff]  ;;  %v2148_v12 = vld [vmem:[%s2633_s9 + $0x24f] sm:$0xff]  ;;  %v2151_v21 = vld [vmem:[%s2633_s9 + $0x287] sm:$0xff] }
  0x82   : >> { %v1079_v42 = vmul.f32 %v2382_v24, %v2131_v17  ;;  %v1080_v15 = vmul.f32 %v2382_v24, %v2743_v6  ;;  %v1081_v19 = vmul.f32 %v2382_v24, %v2133_v22  ;;  %v1068_v46 = vadd.f32 %v1064_v25, %v1054_v35  ;;  %v2150_v16 = vld [vmem:[%s2633_s9 + $0x27f] sm:$0xff]  ;;  %v2386_v22 = vld [vmem:[%s3426_s1 + $0x7] ss:$0 sm:$0xff] }
  0x83   : >> { %v1069_v47 = vadd.f32 %v1065_v26, %v1055_v37  ;;  %v1070_v48 = vadd.f32 %v1066_v28, %v1056_v27  ;;  %v1071_v49 = vadd.f32 %v1067_v31, %v1057_v38  ;;  %v1092_v52 = vmul.f32 %v2383_v40, %v2134_v32  ;;  %v2152_v31 = vld [vmem:[%s2633_s9 + $0x252] sm:$0xff]  ;;  %v2153_v32 = vld [vmem:[%s2633_s9 + $0x25a] sm:$0xff]  ;;  %v2155_v38 = vld [vmem:[%s2633_s9 + $0x28a] sm:$0xff] }
  0x84   : >> { %v1093_v53 = vmul.f32 %v2383_v40, %v2135_v33  ;;  %v1094_v6 = vmul.f32 %v2383_v40, %v2136_v34  ;;  %v1095_v55 = vmul.f32 %v2383_v40, %v2137_v39  ;;  %v1082_v59 = vadd.f32 %v1078_v41, %v1068_v46  ;;  %v2154_v33 = vld [vmem:[%s2633_s9 + $0x282] sm:$0xff] }
  0x85   : >> { %v1083_v60 = vadd.f32 %v1079_v42, %v1069_v47  ;;  %v1084_v62 = vadd.f32 %v1080_v15, %v1070_v48  ;;  %v1085_v63 = vadd.f32 %v1081_v19, %v1071_v49  ;;  %v1109_v4 = vmul.f32 %v2384_v51, %v2140_v43  ;;  %v2387_v39 = vld [vmem:[%s3426_s1 + $0x8] ss:$0 sm:$0xff]  ;;  %v2156_v19 = vld [vmem:[%s2633_s9 + $0x255] sm:$0xff]  ;;  %v2157_v43 = vld [vmem:[%s2633_s9 + $0x25d] sm:$0xff] }
  0x86   : >> { %v1110_v5 = vmul.f32 %v2384_v51, %v2141_v44  ;;  %v1111_v7 = vmul.f32 %v2384_v51, %v2142_v45  ;;  %v1112_v8 = vmul.f32 %v2384_v51, %v2143_v50  ;;  %v1096_v17 = vadd.f32 %v1092_v52, %v1082_v59  ;;  %v2158_v44 = vld [vmem:[%s2633_s9 + $0x285] sm:$0xff]  ;;  %v2159_v49 = vld [vmem:[%s2633_s9 + $0x28d] sm:$0xff] }
  0x87   : >> { %v1097_v14 = vadd.f32 %v1093_v53, %v1083_v60  ;;  %v1098_v18 = vadd.f32 %v1094_v6, %v1084_v62  ;;  %v1099_v20 = vadd.f32 %v1095_v55, %v1085_v63  ;;  %v1123_v24 = vmul.f32 %v2385_v3, %v2144_v56  ;;  %v2388_v50 = vld [vmem:[%s3426_s1 + $0x9] ss:$0 sm:$0xff]  ;;  %v2160_v55 = vld [vmem:[%s2633_s9 + $0x2d9] sm:$0xff]  ;;  %v2161_v56 = vld [vmem:[%s2633_s9 + $0x2e1] sm:$0xff] }
  0x88   : >> { %v1124_v25 = vmul.f32 %v2385_v3, %v2145_v57  ;;  %v1125_v26 = vmul.f32 %v2385_v3, %v2146_v58  ;;  %v1126_v28 = vmul.f32 %v2385_v3, %v2147_v1  ;;  %v1113_v34 = vadd.f32 %v1109_v4, %v1096_v17  ;;  %v2162_v57 = vld [vmem:[%s2633_s9 + $0x309] sm:$0xff]  ;;  %v2163_v63 = vld [vmem:[%s2633_s9 + $0x311] sm:$0xff] }
  0x89   : >> { %v1114_v35 = vadd.f32 %v1110_v5, %v1097_v14  ;;  %v1115_v37 = vadd.f32 %v1111_v7, %v1098_v18  ;;  %v1116_v27 = vadd.f32 %v1112_v8, %v1099_v20  ;;  %v1137_v40 = vmul.f32 %v2386_v22, %v2148_v12  ;;  %v2389_v1 = vld [vmem:[%s3426_s1 + $0xa] ss:$0 sm:$0xff]  ;;  %v2164_v8 = vld [vmem:[%s2633_s9 + $0x2dc] sm:$0xff]  ;;  %v2165_v14 = vld [vmem:[%s2633_s9 + $0x30c] sm:$0xff] }
  0x8a   : >> { %v1138_v41 = vmul.f32 %v2386_v22, %v2149_v13  ;;  %v1139_v42 = vmul.f32 %v2386_v22, %v2150_v16  ;;  %v1140_v15 = vmul.f32 %v2386_v22, %v2151_v21  ;;  %v1127_v45 = vadd.f32 %v1123_v24, %v1113_v34  ;;  %v2390_v18 = vld [vmem:[%s3426_s1 + $0xb] ss:$0 sm:$0xff] }
  0x8b   : >> { %v1128_v46 = vadd.f32 %v1124_v25, %v1114_v35  ;;  %v1129_v47 = vadd.f32 %v1125_v26, %v1115_v37  ;;  %v1130_v48 = vadd.f32 %v1126_v28, %v1116_v27  ;;  %v1151_v51 = vmul.f32 %v2387_v39, %v2152_v31  ;;  %v2391_v25 = vld [vmem:[%s3426_s1 + $0xc] ss:$0 sm:$0xff] }
  0x8c   : >> { %v1152_v52 = vmul.f32 %v2387_v39, %v2153_v32  ;;  %v1153_v53 = vmul.f32 %v2387_v39, %v2154_v33  ;;  %v1154_v6 = vmul.f32 %v2387_v39, %v2155_v38  ;;  %v1141_v58 = vadd.f32 %v1137_v40, %v1127_v45  ;;  %v2166_v33 = vld [vmem:[%s2633_s9 + $0x2ea] sm:$0xff]  ;;  %v2167_v38 = vld [vmem:[%s2633_s9 + $0x31a] sm:$0xff] }
  0x8d   : >> { %v1142_v59 = vadd.f32 %v1138_v41, %v1128_v46  ;;  %v1143_v60 = vadd.f32 %v1139_v42, %v1129_v47  ;;  %v1144_v62 = vadd.f32 %v1140_v15, %v1130_v48  ;;  %v1165_v3 = vmul.f32 %v2388_v50, %v2156_v19  ;;  %v2392_v39 = vld [vmem:[%s3426_s1 + $0xd] ss:$0 sm:$0xff]  ;;  %v2168_v19 = vld [vmem:[%s2633_s9 + $0x2e5] sm:$0xff]  ;;  %v3110_v47 = vld [vmem:[%s2633_s9 + $0x30f] sm:$0xff] }
  0x8e   : >> { %v1166_v4 = vmul.f32 %v2388_v50, %v2157_v43  ;;  %v1167_v5 = vmul.f32 %v2388_v50, %v2158_v44  ;;  %v1168_v7 = vmul.f32 %v2388_v50, %v2159_v49  ;;  %v1155_v12 = vadd.f32 %v1151_v51, %v1141_v58  ;;  %v2169_v43 = vld [vmem:[%s2633_s9 + $0x2ed] sm:$0xff]  ;;  %v2170_v44 = vld [vmem:[%s2633_s9 + $0x315] sm:$0xff]  ;;  %v2171_v51 = vld [vmem:[%s2633_s9 + $0x31d] sm:$0xff] }
  0x8f   : >> { %v1156_v13 = vadd.f32 %v1152_v52, %v1142_v59  ;;  %v1157_v16 = vadd.f32 %v1153_v53, %v1143_v60  ;;  %v1158_v17 = vadd.f32 %v1154_v6, %v1144_v62  ;;  %v1179_v20 = vmul.f32 %v2389_v1, %v2160_v55  ;;  %v3106_v45 = vld [vmem:[%s2633_s9 + $0x2e7] sm:$0xff]  ;;  %v3114_v49 = vld [vmem:[%s2633_s9 + $0x317] sm:$0xff] }
  0x90   : >> { %v1180_v21 = vmul.f32 %v2389_v1, %v2161_v56  ;;  %v1181_v22 = vmul.f32 %v2389_v1, %v2162_v57  ;;  %v1182_v24 = vmul.f32 %v2389_v1, %v2163_v63  ;;  %v1169_v26 = vadd.f32 %v1165_v3, %v1155_v12  ;;  %v2393_v52 = vld [vmem:[%s3426_s1 + $0xe] ss:$0 sm:$0xff]  ;;  %v2175_v58 = vld [vmem:[%s2633_s9 + $0x371] sm:$0xff]  ;;  %v2176_v59 = vld [vmem:[%s2633_s9 + $0x399] sm:$0xff] }
  0x91   : >> { %v1170_v28 = vadd.f32 %v1166_v4, %v1156_v13  ;;  %v1171_v31 = vadd.f32 %v1167_v5, %v1157_v16  ;;  %v1172_v32 = vadd.f32 %v1168_v7, %v1158_v17  ;;  %v1191_v34 = vmul.f32 %v2390_v18, %v2164_v8  ;;  %v2174_v57 = vld [vmem:[%s2633_s9 + $0x369] sm:$0xff]  ;;  %v2426_v1 = vld [vmem:[%s2633_s9 + $0x312] sm:$0xff]  ;;  %v2177_v5 = vld [vmem:[%s2633_s9 + $0x3a1] sm:$0xff] }
  0x92   : >> { %v1192_v35 = vmul.f32 %v2390_v18, %v2816_v54  ;;  %v1193_v37 = vmul.f32 %v2390_v18, %v2165_v14  ;;  %v1194_v27 = vmul.f32 %v2390_v18, %v2821_v61  ;;  %v1183_v40 = vadd.f32 %v1179_v20, %v1169_v26  ;;  %v3102_v54 = vld [vmem:[%s2633_s9 + $0x2df] sm:$0xff]  ;;  %v2394_v7 = vld [vmem:[%s3426_s1 + $0xf] ss:$0 sm:$0xff]  ;;  %v2179_v14 = vld [vmem:[%s2633_s9 + $0x374] sm:$0xff] }
  0x93   : >> { %v1184_v41 = vadd.f32 %v1180_v21, %v1170_v28  ;;  %v1185_v42 = vadd.f32 %v1181_v22, %v1171_v31  ;;  %v1186_v15 = vadd.f32 %v1182_v24, %v1172_v32  ;;  %v1201_v61 = vmul.f32 %v3102_v54, %v2391_v25  ;;  %v2425_v60 = vld [vmem:[%s2633_s9 + $0x2e2] sm:$0xff]  ;;  %v2178_v17 = vld [vmem:[%s2633_s9 + $0x36c] sm:$0xff] }
  0x94   : >> { %v1202_v46 = vmul.f32 %v3106_v45, %v2391_v25  ;;  %v1203_v48 = vmul.f32 %v3110_v47, %v2391_v25  ;;  %v1204_v50 = vmul.f32 %v3114_v49, %v2391_v25  ;;  %v1195_v53 = vadd.f32 %v1191_v34, %v1183_v40  ;;  %v2180_v18 = vld [vmem:[%s2633_s9 + $0x39c] sm:$0xff]  ;;  %v2181_v25 = vld [vmem:[%s2633_s9 + $0x3a4] sm:$0xff]  ;;  %v2395_v26 = vld [vmem:[%s3426_s1 + $0x10] ss:$0 sm:$0xff] }
  0x95   : >> { %v1196_v6 = vadd.f32 %v1192_v35, %v1184_v41  ;;  %v1197_v55 = vadd.f32 %v1193_v37, %v1185_v42  ;;  %v1198_v56 = vadd.f32 %v1194_v27, %v1186_v15  ;;  %v1213_v62 = vmul.f32 %v2425_v60, %v2392_v39  ;;  %v2182_v34 = vld [vmem:[%s2633_s9 + $0x36f] sm:$0xff]  ;;  %v2183_v35 = vld [vmem:[%s2633_s9 + $0x377] sm:$0xff]  ;;  %v2184_v37 = vld [vmem:[%s2633_s9 + $0x39f] sm:$0xff] }
  0x96   : >> { %v1214_v63 = vmul.f32 %v2392_v39, %v2166_v33  ;;  %v1215_v3 = vmul.f32 %v2426_v1, %v2392_v39  ;;  %v1216_v4 = vmul.f32 %v2392_v39, %v2167_v38  ;;  %v1205_v8 = vadd.f32 %v1201_v61, %v1195_v53  ;;  %v2185_v41 = vld [vmem:[%s2633_s9 + $0x3a7] sm:$0xff]  ;;  %v2396_v42 = vld [vmem:[%s3426_s1 + $0x11] ss:$0 sm:$0xff]  ;;  %v2186_v61 = vld [vmem:[%s2633_s9 + $0x372] sm:$0xff] }
  0x97   : >> { %v1206_v12 = vadd.f32 %v1202_v46, %v1196_v6  ;;  %v1207_v13 = vadd.f32 %v1203_v48, %v1197_v55  ;;  %v1208_v16 = vadd.f32 %v1204_v50, %v1198_v56  ;;  %v1227_v20 = vmul.f32 %v2393_v52, %v2168_v19  ;;  %v2187_v46 = vld [vmem:[%s2633_s9 + $0x37a] sm:$0xff]  ;;  %v2188_v48 = vld [vmem:[%s2633_s9 + $0x3a2] sm:$0xff]  ;;  %v2189_v6 = vld [vmem:[%s2633_s9 + $0x3aa] sm:$0xff] }
  0x98   : >> { %v1228_v21 = vmul.f32 %v2393_v52, %v2169_v43  ;;  %v1229_v22 = vmul.f32 %v2393_v52, %v2170_v44  ;;  %v1230_v24 = vmul.f32 %v2393_v52, %v2171_v51  ;;  %v1217_v28 = vadd.f32 %v1213_v62, %v1205_v8  ;;  %v2397_v55 = vld [vmem:[%s3426_s1 + $0x12] ss:$0 sm:$0xff]  ;;  %v2190_v60 = vld [vmem:[%s2633_s9 + $0x375] sm:$0xff]  ;;  %v2191_v62 = vld [vmem:[%s2633_s9 + $0x37d] sm:$0xff] }
  0x99   : >> { %v1218_v31 = vadd.f32 %v1214_v63, %v1206_v12  ;;  %v1219_v32 = vadd.f32 %v1215_v3, %v1207_v13  ;;  %v1220_v33 = vadd.f32 %v1216_v4, %v1208_v16  ;;  %v1244_v27 = vmul.f32 %v2394_v7, %v2174_v57  ;;  %v2192_v63 = vld [vmem:[%s2633_s9 + $0x3a5] sm:$0xff]  ;;  %v2398_v8 = vld [vmem:[%s3426_s1 + $0x13] ss:$0 sm:$0xff] }
  0x9a   : >> { %v1245_v38 = vmul.f32 %v2394_v7, %v2175_v58  ;;  %v1246_v39 = vmul.f32 %v2394_v7, %v2176_v59  ;;  %v1247_v40 = vmul.f32 %v2394_v7, %v2177_v5  ;;  %v1231_v15 = vadd.f32 %v1227_v20, %v1217_v28  ;;  %v2193_v7 = vld [vmem:[%s2633_s9 + $0x3ad] sm:$0xff] }
  0x9b   : >> { %v1232_v19 = vadd.f32 %v1228_v21, %v1218_v31  ;;  %v1233_v43 = vadd.f32 %v1229_v22, %v1219_v32  ;;  %v1234_v44 = vadd.f32 %v1230_v24, %v1220_v33  ;;  %v1258_v50 = vmul.f32 %v2395_v26, %v2178_v17  ;;  %v2198_v20 = vld [vmem:[%s2633_s9 + $0x429] sm:$0xff]  ;;  %v2399_v28 = vld [vmem:[%s3426_s1 + $0x14] ss:$0 sm:$0xff] }
  0x9c   : >> { %v1259_v51 = vmul.f32 %v2395_v26, %v2179_v14  ;;  %v1260_v52 = vmul.f32 %v2395_v26, %v2180_v18  ;;  %v1261_v53 = vmul.f32 %v2395_v26, %v2181_v25  ;;  %v1248_v56 = vadd.f32 %v1244_v27, %v1231_v15  ;;  %v2196_v14 = vld [vmem:[%s2633_s9 + $0x3f9] sm:$0xff]  ;;  %v2197_v18 = vld [vmem:[%s2633_s9 + $0x401] sm:$0xff]  ;;  %v2199_v26 = vld [vmem:[%s2633_s9 + $0x431] sm:$0xff] }
  0x9d   : >> { %v1249_v57 = vadd.f32 %v1245_v38, %v1232_v19  ;;  %v1250_v58 = vadd.f32 %v1246_v39, %v1233_v43  ;;  %v1251_v59 = vadd.f32 %v1247_v40, %v1234_v44  ;;  %v1272_v1 = vmul.f32 %v2396_v42, %v2182_v34  ;;  %v2202_v27 = vld [vmem:[%s2633_s9 + $0x42c] sm:$0xff]  ;;  %v2400_v15 = vld [vmem:[%s3426_s1 + $0x15] ss:$0 sm:$0xff] }
  0x9e   : >> { %v1273_v3 = vmul.f32 %v2396_v42, %v2183_v35  ;;  %v1274_v4 = vmul.f32 %v2396_v42, %v2184_v37  ;;  %v1275_v5 = vmul.f32 %v2396_v42, %v2185_v41  ;;  %v1262_v12 = vadd.f32 %v1258_v50, %v1248_v56  ;;  %v2200_v35 = vld [vmem:[%s2633_s9 + $0x3fc] sm:$0xff]  ;;  %v2201_v37 = vld [vmem:[%s2633_s9 + $0x404] sm:$0xff]  ;;  %v2203_v42 = vld [vmem:[%s2633_s9 + $0x434] sm:$0xff] }
  0x9f   : >> { %v1263_v13 = vadd.f32 %v1259_v51, %v1249_v57  ;;  %v1264_v16 = vadd.f32 %v1260_v52, %v1250_v58  ;;  %v1265_v17 = vadd.f32 %v1261_v53, %v1251_v59  ;;  %v1286_v21 = vmul.f32 %v2397_v55, %v2186_v61  ;;  %v2206_v50 = vld [vmem:[%s2633_s9 + $0x42f] sm:$0xff] }
  0xa0   : >> { %v1287_v22 = vmul.f32 %v2397_v55, %v2187_v46  ;;  %v1288_v24 = vmul.f32 %v2397_v55, %v2188_v48  ;;  %v1289_v25 = vmul.f32 %v2397_v55, %v2189_v6  ;;  %v1276_v31 = vadd.f32 %v1272_v1, %v1262_v12  ;;  %v2204_v46 = vld [vmem:[%s2633_s9 + $0x3ff] sm:$0xff]  ;;  %v2205_v48 = vld [vmem:[%s2633_s9 + $0x407] sm:$0xff]  ;;  %v2207_v55 = vld [vmem:[%s2633_s9 + $0x437] sm:$0xff] }
  0xa1   : >> { %v1277_v32 = vadd.f32 %v1273_v3, %v1263_v13  ;;  %v1278_v33 = vadd.f32 %v1274_v4, %v1264_v16  ;;  %v1279_v34 = vadd.f32 %v1275_v5, %v1265_v17  ;;  %v1300_v38 = vmul.f32 %v2398_v8, %v2190_v60  ;;  %v2401_v56 = vld [vmem:[%s3426_s1 + $0x16] ss:$0 sm:$0xff]  ;;  %v2402_v12 = vld [vmem:[%s3426_s1 + $0x17] ss:$0 sm:$0xff] }
  0xa2   : >> { %v1301_v39 = vmul.f32 %v2398_v8, %v2191_v62  ;;  %v1302_v40 = vmul.f32 %v2398_v8, %v2192_v63  ;;  %v1303_v41 = vmul.f32 %v2398_v8, %v2193_v7  ;;  %v1290_v19 = vadd.f32 %v1286_v21, %v1276_v31  ;;  %v2208_v62 = vld [vmem:[%s2633_s9 + $0x402] sm:$0xff]  ;;  %v2209_v63 = vld [vmem:[%s2633_s9 + $0x40a] sm:$0xff]  ;;  %v2210_v1 = vld [vmem:[%s2633_s9 + $0x432] sm:$0xff] }
  0xa3   : >> { %v1291_v43 = vadd.f32 %v1287_v22, %v1277_v32  ;;  %v1292_v44 = vadd.f32 %v1288_v24, %v1278_v33  ;;  %v1293_v61 = vadd.f32 %v1289_v25, %v1279_v34  ;;  %v1317_v51 = vmul.f32 %v2399_v28, %v2196_v14  ;;  %v2211_v8 = vld [vmem:[%s2633_s9 + $0x43a] sm:$0xff]  ;;  %v2403_v31 = vld [vmem:[%s3426_s1 + $0x18] ss:$0 sm:$0xff] }
  0xa4   : >> { %v1318_v52 = vmul.f32 %v2399_v28, %v2197_v18  ;;  %v1319_v53 = vmul.f32 %v2399_v28, %v2198_v20  ;;  %v1320_v6 = vmul.f32 %v2399_v28, %v2199_v26  ;;  %v1304_v57 = vadd.f32 %v1300_v38, %v1290_v19  ;;  %v2212_v18 = vld [vmem:[%s2633_s9 + $0x405] sm:$0xff]  ;;  %v2213_v20 = vld [vmem:[%s2633_s9 + $0x40d] sm:$0xff]  ;;  %v2214_v21 = vld [vmem:[%s2633_s9 + $0x435] sm:$0xff] }
  0xa5   : >> { %v1305_v58 = vadd.f32 %v1301_v39, %v1291_v43  ;;  %v1306_v59 = vadd.f32 %v1302_v40, %v1292_v44  ;;  %v1307_v60 = vadd.f32 %v1303_v41, %v1293_v61  ;;  %v1331_v3 = vmul.f32 %v2400_v15, %v2200_v35  ;;  %v2215_v28 = vld [vmem:[%s2633_s9 + $0x43d] sm:$0xff] }
  0xa6   : >> { %v1332_v4 = vmul.f32 %v2400_v15, %v2201_v37  ;;  %v1333_v5 = vmul.f32 %v2400_v15, %v2202_v27  ;;  %v1334_v7 = vmul.f32 %v2400_v15, %v2203_v42  ;;  %v1321_v13 = vadd.f32 %v1317_v51, %v1304_v57  ;;  %v2218_v37 = vld [vmem:[%s2633_s9 + $0x2ae] sm:$0xff]  ;;  %v2219_v27 = vld [vmem:[%s2633_s9 + $0x2b6] sm:$0xff]  ;;  %v2220_v38 = vld [vmem:[%s2633_s9 + $0x2de] sm:$0xff] }
  0xa7   : >> { %v1322_v16 = vadd.f32 %v1318_v52, %v1305_v58  ;;  %v1323_v17 = vadd.f32 %v1319_v53, %v1306_v59  ;;  %v1324_v14 = vadd.f32 %v1320_v6, %v1307_v60  ;;  %v1345_v22 = vmul.f32 %v2401_v56, %v2204_v46  ;;  %v2221_v15 = vld [vmem:[%s2633_s9 + $0x2e6] sm:$0xff]  ;;  %v2404_v19 = vld [vmem:[%s3427_s2] ss:$0 sm:$0xff]  ;;  %v2405_v57 = vld [vmem:[%s3427_s2 + $0x1] ss:$0 sm:$0xff] }
  0xa8   : >> { %v1346_v24 = vmul.f32 %v2401_v56, %v2205_v48  ;;  %v1347_v25 = vmul.f32 %v2401_v56, %v2206_v50  ;;  %v1348_v26 = vmul.f32 %v2401_v56, %v2207_v55  ;;  %v1335_v32 = vadd.f32 %v1331_v3, %v1321_v13  ;;  %v2222_v48 = vld [vmem:[%s2633_s9 + $0x2af] sm:$0xff]  ;;  %v2223_v50 = vld [vmem:[%s2633_s9 + $0x2b7] sm:$0xff]  ;;  %v2224_v51 = vld [vmem:[%s2633_s9 + $0x2df] sm:$0xff] }
  0xa9   : >> { %v1336_v33 = vadd.f32 %v1332_v4, %v1322_v16  ;;  %v1337_v34 = vadd.f32 %v1333_v5, %v1323_v17  ;;  %v1338_v35 = vadd.f32 %v1334_v7, %v1324_v14  ;;  %v1359_v39 = vmul.f32 %v2402_v12, %v2208_v62  ;;  %v2225_v52 = vld [vmem:[%s2633_s9 + $0x2e7] sm:$0xff]  ;;  %v2226_v58 = vld [vmem:[%s2633_s9 + $0x2b0] sm:$0xff]  ;;  %v2406_v4 = vld [vmem:[%s3427_s2 + $0x2] ss:$0 sm:$0xff] }
  0xaa   : >> { %v1360_v40 = vmul.f32 %v2402_v12, %v2209_v63  ;;  %v1361_v41 = vmul.f32 %v2402_v12, %v2210_v1  ;;  %v1362_v42 = vmul.f32 %v2402_v12, %v2211_v8  ;;  %v1349_v43 = vadd.f32 %v1345_v22, %v1335_v32  ;;  %v2227_v1 = vld [vmem:[%s2633_s9 + $0x2b8] sm:$0xff]  ;;  %v2228_v3 = vld [vmem:[%s2633_s9 + $0x2e0] sm:$0xff]  ;;  %v2229_v13 = vld [vmem:[%s2633_s9 + $0x2e8] sm:$0xff] }
  0xab   : >> { %v1350_v44 = vadd.f32 %v1346_v24, %v1336_v33  ;;  %v1351_v61 = vadd.f32 %v1347_v25, %v1337_v34  ;;  %v1352_v46 = vadd.f32 %v1348_v26, %v1338_v35  ;;  %v1373_v53 = vmul.f32 %v2403_v31, %v2212_v18  ;;  %v2232_v26 = vld [vmem:[%s2633_s9 + $0x30e] sm:$0xff]  ;;  %v2408_v35 = vld [vmem:[%s3427_s2 + $0x4] ss:$0 sm:$0xff] }
  0xac   : >> { %v1374_v6 = vmul.f32 %v2403_v31, %v2213_v20  ;;  %v1375_v55 = vmul.f32 %v2403_v31, %v2214_v21  ;;  %v1376_v56 = vmul.f32 %v2403_v31, %v2215_v28  ;;  %v1363_v59 = vadd.f32 %v1359_v39, %v1349_v43  ;;  %v2407_v20 = vld [vmem:[%s3427_s2 + $0x3] ss:$0 sm:$0xff]  ;;  %v2233_v28 = vld [vmem:[%s2633_s9 + $0x316] sm:$0xff] }
  0xad   : >> { %v1364_v60 = vadd.f32 %v1360_v40, %v1350_v44  ;;  %v1365_v62 = vadd.f32 %v1361_v41, %v1351_v61  ;;  %v1366_v63 = vadd.f32 %v1362_v42, %v1352_v46  ;;  %v1390_v5 = vmul.f32 %v2404_v19, %v2218_v37  ;;  %v2409_v44 = vld [vmem:[%s3427_s2 + $0x5] ss:$0 sm:$0xff] }
  0xae   : >> { %v1391_v7 = vmul.f32 %v2404_v19, %v2219_v27  ;;  %v1392_v8 = vmul.f32 %v2404_v19, %v2220_v38  ;;  %v1393_v12 = vmul.f32 %v2404_v19, %v2221_v15  ;;  %v3214_v16 = vadd.f32 %v1373_v53, %v1363_v59 }
  0xaf   : >> { %v3216_v17 = vadd.f32 %v1374_v6, %v1364_v60  ;;  %v3218_v14 = vadd.f32 %v1375_v55, %v1365_v62  ;;  %v3220_v18 = vadd.f32 %v1376_v56, %v1366_v63  ;;  %v1404_v21 = vmul.f32 %v2405_v57, %v2222_v48  ;;  %v2410_v55 = vld [vmem:[%s3427_s2 + $0x6] ss:$0 sm:$0xff]  ;;  %v2242_v60 = vld [vmem:[%s2633_s9 + $0x33e] sm:$0xff] }
  0xb0   : >> { %v1405_v22 = vmul.f32 %v2405_v57, %v2223_v50  ;;  %v1406_v24 = vmul.f32 %v2405_v57, %v2224_v51  ;;  %v1407_v25 = vmul.f32 %v2405_v57, %v2225_v52  ;;  %v1418_v31 = vmul.f32 %v2406_v4, %v2226_v58  ;;  %v2236_v51 = vld [vmem:[%s2633_s9 + $0x310] sm:$0xff]  ;;  %v2237_v52 = vld [vmem:[%s2633_s9 + $0x318] sm:$0xff]  ;;  %v2243_v62 = vld [vmem:[%s2633_s9 + $0x346] sm:$0xff] }
  0xb1   : >> { %v1419_v32 = vmul.f32 %v2406_v4, %v2227_v1  ;;  %v1420_v33 = vmul.f32 %v2406_v4, %v2228_v3  ;;  %v1421_v34 = vmul.f32 %v2406_v4, %v2229_v13  ;;  %v1408_v37 = vadd.f32 %v1404_v21, %v1390_v5 }
  0xb2   : >> { %v1409_v27 = vadd.f32 %v1405_v22, %v1391_v7  ;;  %v1410_v39 = vadd.f32 %v1406_v24, %v1392_v8  ;;  %v1411_v40 = vadd.f32 %v1407_v25, %v1393_v12  ;;  %v1432_v41 = vmul.f32 %v2407_v20, %v2220_v38  ;;  %v2244_v7 = vld [vmem:[%s2633_s9 + $0x30f] sm:$0xff]  ;;  %v2411_v8 = vld [vmem:[%s3427_s2 + $0x7] ss:$0 sm:$0xff]  ;;  %v2245_v24 = vld [vmem:[%s2633_s9 + $0x317] sm:$0xff] }
  0xb3   : >> { %v1433_v42 = vmul.f32 %v2407_v20, %v2221_v15  ;;  %v1434_v19 = vmul.f32 %v2407_v20, %v2232_v26  ;;  %v1435_v43 = vmul.f32 %v2407_v20, %v2233_v28  ;;  %v1422_v61 = vadd.f32 %v1418_v31, %v1408_v37  ;;  %v2246_v25 = vld [vmem:[%s2633_s9 + $0x33f] sm:$0xff]  ;;  %v2247_v31 = vld [vmem:[%s2633_s9 + $0x347] sm:$0xff] }
  0xb4   : >> { %v1423_v46 = vadd.f32 %v1419_v32, %v1409_v27  ;;  %v1424_v48 = vadd.f32 %v1420_v33, %v1410_v39  ;;  %v1425_v50 = vadd.f32 %v1421_v34, %v1411_v40  ;;  %v1442_v53 = vmul.f32 %v3102_v54, %v2408_v35  ;;  %v2412_v34 = vld [vmem:[%s3427_s2 + $0x8] ss:$0 sm:$0xff]  ;;  %v2250_v40 = vld [vmem:[%s2633_s9 + $0x340] sm:$0xff] }
  0xb5   : >> { %v1443_v38 = vmul.f32 %v3106_v45, %v2408_v35  ;;  %v1444_v15 = vmul.f32 %v3110_v47, %v2408_v35  ;;  %v1445_v6 = vmul.f32 %v3114_v49, %v2408_v35  ;;  %v1436_v56 = vadd.f32 %v1432_v41, %v1422_v61  ;;  %v2251_v41 = vld [vmem:[%s2633_s9 + $0x348] sm:$0xff]  ;;  %s2262_s9 = sshll.u32 %s2513_s17, 5  ;;  %s319_s17 = sadd.s32 1, %s2513_s17  }
  0xb6   : >> { %v1437_v57 = vadd.f32 %v1433_v42, %v1423_v46  ;;  %v1438_v58 = vadd.f32 %v1434_v19, %v1424_v48  ;;  %v1439_v59 = vadd.f32 %v1435_v43, %v1425_v50  ;;  %v1456_v63 = vmul.f32 %v2409_v44, %v2228_v3  ;;  %s1709_s11 = scalar_lea.vmem %s289_s16, %s2262_s9 [#allocation2]  ;;  %p316_p12 = scmp.ge.s32.totalorder %s319_s17, 8  }
  0xb7   : >> { %v1457_v1 = vmul.f32 %v2409_v44, %v2229_v13  ;;  %v1458_v4 = vmul.f32 %v2409_v44, %v2236_v51  ;;  %v1459_v5 = vmul.f32 %v2409_v44, %v2237_v52  ;;  %v1446_v12 = vadd.f32 %v1442_v53, %v1436_v56  ;;  %s2263_s12 = sshll.u32 (%p316_p12), %s2501_s21, 8  ;;  %s1728_s25 = sshll.u32 (%p316_p12), %s289_s16, 4  ;;  %s1729_s25 = int_to_ptr.vmem [resolvable:$true] %s1728_s25 }
  0xb8   : >> { %v1447_v20 = vadd.f32 %v1443_v38, %v1437_v57  ;;  %v1448_v21 = vadd.f32 %v1444_v15, %v1438_v58  ;;  %v1449_v22 = vadd.f32 %v1445_v6, %v1439_v59  ;;  %v1473_v32 = vmul.f32 %v2410_v55, %v2232_v26  ;;  %s1727_s24 = scalar_lea.hbm (%p316_p12), %s3430_s5, %s2263_s12  ;;  %s1715_s29 = scalar_lea.sflag (%p316_p12), [#allocation3], %s287_s7 }
  0xb9   : >> { %v1474_v33 = vmul.f32 %v2410_v55, %v2233_v28  ;;  %v1475_v3 = vmul.f32 %v2410_v55, %v2242_v60  ;;  %v1476_v13 = vmul.f32 %v2410_v55, %v2243_v62  ;;  %v1460_v35 = vadd.f32 %v1456_v63, %v1446_v12  ;;  %s1730_s27 = sshll.u32 (%p316_p12), %s1727_s24, 4  ;;  %s2447_s9 = scalar_lea.hbm (%p316_p12), %s3430_s5, 512  ;;  %s1731_s27 = int_to_ptr.hbm [resolvable:$true] %s1730_s27 }
  0xba   : >> { %v1461_v37 = vadd.f32 %v1457_v1, %v1447_v20  ;;  %v1462_v27 = vadd.f32 %v1458_v4, %v1448_v21  ;;  %v1463_v39 = vadd.f32 %v1459_v5, %v1449_v22  ;;  %v1487_v42 = vmul.f32 %v2411_v8, %v2244_v7  ;;  %s2441_s8 = sshra.s32 (%p316_p12), %s1731_s27, 4  ;;  %s2442_s8 = int_to_ptr.hbm [resolvable:$true] %s2441_s8 }
  0xbb   : >> { %v1488_v19 = vmul.f32 %v2411_v8, %v2245_v24  ;;  %v1489_v43 = vmul.f32 %v2411_v8, %v2246_v25  ;;  %v1490_v44 = vmul.f32 %v2411_v8, %v2247_v31  ;;  %v1477_v61 = vadd.f32 %v1473_v32, %v1460_v35  ;;  %s2443_s17 = scalar_lea.hbm (%p316_p12), %s2442_s8, 256  ;;  %p2448_p2 = scmp.lt.s32.totalorder (%p316_p12), %s2442_s8, %s3430_s5 }
  0xbc   : >> { %v1478_v46 = vadd.f32 %v1474_v33, %v1461_v37  ;;  %v1479_v26 = vadd.f32 %v1475_v3, %v1462_v27  ;;  %v1480_v28 = vadd.f32 %v1476_v13, %v1463_v39  ;;  %v1501_v48 = vmul.f32 %v2412_v34, %v2236_v51  ;;  %p2444_p13 = scmp.ne.s32.totalorder (%p316_p12), %s2442_s8, %s2443_s17  ;;  %p2449_p3 = scmp.lt.s32.totalorder (%p316_p12), %s2447_s9, %s2443_s17 }
  0xbd   : >> { %v1502_v50 = vmul.f32 %v2412_v34, %v2237_v52  ;;  %v1503_v53 = vmul.f32 %v2412_v34, %v2250_v40  ;;  %v1504_v38 = vmul.f32 %v2412_v34, %v2251_v41  ;;  %v1491_v15 = vadd.f32 %v1487_v42, %v1477_v61 }
  0xbe   : >> { %v1492_v6 = vadd.f32 %v1488_v19, %v1478_v46  ;;  %v1493_v55 = vadd.f32 %v1489_v43, %v1479_v26  ;;  %v1494_v56 = vadd.f32 %v1490_v44, %v1480_v28  ;;  %v1509_v57 = vadd.f32 %v3011_v2, %v2837_v23  ;;  %p2445_p0 = pnand (%p316_p12), %p2444_p13, %p2587_p4  ;;  %p2450_p5 = por (%p316_p12), %p2449_p3, %p2448_p2 }
  0xbf   : >> { %v1510_v58 = vadd.f32 %v3015_v9, %v2842_v29  ;;  %v1511_v59 = vadd.f32 %v3017_v10, %v2844_v30  ;;  %v1512_v60 = vadd.f32 %v3019_v11, %v2851_v36  ;;  %v1505_v51 = vadd.f32 %v1501_v48, %v1491_v15 }
  0xc0   : >> { %v1506_v52 = vadd.f32 %v1502_v50, %v1492_v6  ;;  %v1507_v62 = vadd.f32 %v1503_v53, %v1493_v55  ;;  %v1508_v63 = vadd.f32 %v1504_v38, %v1494_v56  ;;  %v1522_v1 = vperm.slane %v2607_v0, 0  ;;  %p2446_p1 = pneg (%p316_p12), %p2445_p0 }
  0xc1   : >> { %v1513_v4 = vadd.f32 %v1505_v51, %v3214_v16 }
  0xc2   : >> { %v1514_v5 = vadd.f32 %v1506_v52, %v3216_v17  ;;  %v1515_v23 = vadd.f32 %v1507_v62, %v3218_v14  ;;  %v1516_v29 = vadd.f32 %v1508_v63, %v3220_v18  ;;  %p2451_p6 = pnand (%p316_p12), %p2450_p5, %p2446_p1 }
  0xc3   : >> { %v1517_v2 = vadd.f32 %v1513_v4, %v1509_v57 }
  0xc4   : >> { %v1518_v9 = vadd.f32 %v1514_v5, %v1510_v58  ;;  %v1519_v30 = vadd.f32 %v1515_v23, %v1511_v59  ;;  %v1520_v10 = vadd.f32 %v1516_v29, %v1512_v60 }
  0xc5   : >> { %v3269_v7 = vadd.f32 %v1522_v1, %v1517_v2 }
  0xc6   : >> { %v3271_v36 = vadd.f32 %v1522_v1, %v1518_v9  ;;  %v3273_v11 = vadd.f32 %v1522_v1, %v1519_v30  ;;  %v3275_v8 = vadd.f32 %v1522_v1, %v1520_v10 }
  0xc7   : >> { %v3278_v16 = vmul.f32 0.70710677, %v3269_v7 }
  0xc8   : >> { %v3281_v17 = vmul.f32 0.70710677, %v3271_v36  ;;  %v3284_v14 = vmul.f32 0.70710677, %v3273_v11  ;;  %v3287_v18 = vmul.f32 0.70710677, %v3275_v8 }
  0xc9   : >> { %v1536_v12 = vmul.f32 %v3278_v16, %v3278_v16 }
  0xca   : >> { %v1576_v20 = vmul.f32 %v3281_v17, %v3281_v17  ;;  %v1616_v21 = vmul.f32 %v3284_v14, %v3284_v14  ;;  %v1656_v22 = vmul.f32 %v3287_v18, %v3287_v18 }
  0xcb   : >> { %v3297_v24 = vmin.f32 %v1536_v12, 16.0 }
  0xcc   : >> { %v3299_v25 = vmin.f32 %v1576_v20, 16.0  ;;  %v3301_v31 = vmin.f32 %v1616_v21, 16.0  ;;  %v3303_v32 = vmin.f32 %v1656_v22, 16.0 }
  0xcd   : >> { %v1538_v33 = vmul.f32 2.1237322e-06, %v3297_v24  ;;  %v1549_v3 = vmul.f32 3.8918573e-05, %v3297_v24 }
  0xce   : >> { %v1578_v13 = vmul.f32 2.1237322e-06, %v3299_v25  ;;  %v1589_v34 = vmul.f32 3.8918573e-05, %v3299_v25  ;;  %v1618_v35 = vmul.f32 2.1237322e-06, %v3301_v31 }
  0xcf   : >> { %v1629_v37 = vmul.f32 3.8918573e-05, %v3301_v31  ;;  %v1539_v27 = vadd.f32 0.00028619796, %v1538_v33  ;;  %v1550_v39 = vadd.f32 0.001143296, %v1549_v3 }
  0xd0   : >> { %v1579_v40 = vadd.f32 0.00028619796, %v1578_v13  ;;  %v1590_v41 = vadd.f32 0.001143296, %v1589_v34  ;;  %v1619_v42 = vadd.f32 0.00028619796, %v1618_v35 }
  0xd1   : >> { %v1630_v19 = vadd.f32 0.001143296, %v1629_v37  ;;  %v1540_v43 = vmul.f32 %v1539_v27, %v3297_v24  ;;  %v1551_v44 = vmul.f32 %v1550_v39, %v3297_v24  ;;  %v1658_v46 = vmul.f32 2.1237322e-06, %v3303_v32 }
  0xd2   : >> { %v1580_v61 = vmul.f32 %v1579_v40, %v3299_v25  ;;  %v1591_v26 = vmul.f32 %v1590_v41, %v3299_v25  ;;  %v1620_v28 = vmul.f32 %v1619_v42, %v3301_v31  ;;  %v1669_v50 = vmul.f32 3.8918573e-05, %v3303_v32 }
  0xd3   : >> { %v1631_v48 = vmul.f32 %v1630_v19, %v3301_v31  ;;  %v1541_v53 = vadd.f32 0.0036580483, %v1540_v43  ;;  %v1552_v38 = vadd.f32 0.014752088, %v1551_v44  ;;  %v1659_v60 = vadd.f32 0.00028619796, %v1658_v46 }
  0xd4   : >> { %v1581_v15 = vadd.f32 0.0036580483, %v1580_v61  ;;  %v1592_v6 = vadd.f32 0.014752088, %v1591_v26  ;;  %v1621_v55 = vadd.f32 0.0036580483, %v1620_v28 }
  0xd5   : >> { %v1632_v56 = vadd.f32 0.014752088, %v1631_v48  ;;  %v1542_v57 = vmul.f32 %v1541_v53, %v3297_v24  ;;  %v1553_v58 = vmul.f32 %v1552_v38, %v3297_v24  ;;  %v1670_v63 = vadd.f32 0.001143296, %v1669_v50 }
  0xd6   : >> { %v1582_v59 = vmul.f32 %v1581_v15, %v3299_v25  ;;  %v1593_v51 = vmul.f32 %v1592_v6, %v3299_v25  ;;  %v1622_v52 = vmul.f32 %v1621_v55, %v3301_v31  ;;  %v1660_v23 = vmul.f32 %v1659_v60, %v3303_v32 }
  0xd7   : >> { %v1633_v62 = vmul.f32 %v1632_v56, %v3301_v31  ;;  %v1543_v1 = vadd.f32 0.05243302, %v1542_v57  ;;  %v1554_v4 = vadd.f32 0.112945676, %v1553_v58  ;;  %v1671_v30 = vmul.f32 %v1670_v63, %v3303_v32 }
  0xd8   : >> { %v1583_v5 = vadd.f32 0.05243302, %v1582_v59  ;;  %v1594_v29 = vadd.f32 0.112945676, %v1593_v51  ;;  %v1623_v2 = vadd.f32 0.05243302, %v1622_v52 }
  0xd9   : >> { %v1634_v9 = vadd.f32 0.112945676, %v1633_v62  ;;  %v1544_v10 = vmul.f32 %v1543_v1, %v3297_v24  ;;  %v1555_v12 = vmul.f32 %v1554_v4, %v3297_v24  ;;  %v1661_v22 = vadd.f32 0.0036580483, %v1660_v23 }
  0xda   : >> { %v1595_v20 = vmul.f32 %v1594_v29, %v3299_v25  ;;  %v1672_v33 = vadd.f32 0.014752088, %v1671_v30  ;;  %v1584_v34 = vmul.f32 %v1583_v5, %v3299_v25  ;;  %v1624_v35 = vmul.f32 %v1623_v2, %v3301_v31 }
  0xdb   : >> { %v1635_v21 = vmul.f32 %v1634_v9, %v3301_v31  ;;  %v1545_v3 = vadd.f32 0.18741608, %v1544_v10  ;;  %v1556_v13 = vadd.f32 0.4994258, %v1555_v12  ;;  %v1662_v19 = vmul.f32 %v1661_v22, %v3303_v32 }
  0xdc   : >> { %v1596_v37 = vadd.f32 0.4994258, %v1595_v20  ;;  %v1673_v39 = vmul.f32 %v1672_v33, %v3303_v32  ;;  %v1585_v46 = vadd.f32 0.18741608, %v1584_v34  ;;  %v1625_v26 = vadd.f32 0.18741608, %v1624_v35 }
  0xdd   : >> { %v1636_v27 = vadd.f32 0.4994258, %v1635_v21  ;;  %v1557_v40 = vmul.f32 %v1556_v13, %v3297_v24  ;;  %v1546_v44 = vmul.f32 %v1545_v3, %v3297_v24  ;;  %v1663_v50 = vadd.f32 0.05243302, %v1662_v19 }
  0xde   : >> { %v1597_v41 = vmul.f32 %v1596_v37, %v3299_v25  ;;  %v1674_v43 = vadd.f32 0.112945676, %v1673_v39  ;;  %v1586_v15 = vmul.f32 %v1585_v46, %v3299_v25  ;;  %v1626_v6 = vmul.f32 %v1625_v26, %v3301_v31 }
  0xdf   : >> { %v1637_v42 = vmul.f32 %v1636_v27, %v3301_v31  ;;  %v1558_v61 = vadd.f32 1.0, %v1557_v40  ;;  %v1547_v38 = vadd.f32 1.1283791, %v1546_v44  ;;  %v1664_v55 = vmul.f32 %v1663_v50, %v3303_v32 }
  0xe0   : >> { %v1598_v28 = vadd.f32 1.0, %v1597_v41  ;;  %v1675_v53 = vmul.f32 %v1674_v43, %v3303_v32  ;;  %v1587_v59 = vadd.f32 1.1283791, %v1586_v15  ;;  %v1627_v60 = vadd.f32 1.1283791, %v1626_v6 }
  0xe1   : >> { %v1638_v48 = vadd.f32 1.0, %v1637_v42  ;;  %2413 = vrcp.f32 %v1558_v61  ;;  %v1548_v57 = vmul.f32 %v1547_v38, %v3278_v16  ;;  %v1570_v58 = vand.u32 2147483648, %v1558_v61 }
  0xe2   : >> { %2415 = vrcp.f32 %v1598_v28  ;;  %v1676_v56 = vadd.f32 0.4994258, %v1675_v53  ;;  %vm1564_vm0 = vweird.f32 %v1558_v61  ;;  %v1568_v62 = vand.u32 2147483647, %v1558_v61 }
  0xe3   : >> { %2417 = vrcp.f32 %v1638_v48  ;;  %vm1604_vm1 = vweird.f32 %v1598_v28  ;;  %v1608_v25 = vand.u32 2147483647, %v1598_v28  ;;  %v1610_v31 = vand.u32 2147483648, %v1598_v28 }
  0xe4   : >> { %v1677_v63 = vmul.f32 %v1676_v56, %v3303_v32  ;;  %v1665_v23 = vadd.f32 0.18741608, %v1664_v55  ;;  %v1571_v2 = vor.u32 1.1754944e-38, %v1570_v58  ;;  %vm1644_vm4 = vweird.f32 %v1638_v48 }
  0xe5   : >> { %v1650_v10 = vand.u32 2147483648, %v1638_v48  ;;  %v1648_v22 = vand.u32 2147483647, %v1638_v48  ;;  %vm1569_vm7 = vcmp.eq.f32.partialorder %v1568_v62, 8.507059e+37  ;;  %v1611_v13 = vor.u32 1.1754944e-38, %v1610_v31 }
  0xe6   : >> { %v1678_v29 = vadd.f32 1.0, %v1677_v63  ;;  %v1666_v34 = vmul.f32 %v1665_v23, %v3303_v32  ;;  %v1588_v35 = vmul.f32 %v1587_v59, %v3281_v17  ;;  %vm1609_vm9 = vcmp.eq.f32.partialorder %v1608_v25, 8.507059e+37 }
  0xe7   : >> { %v2414_v24 = vpop.eup %2413  ;;  %v1528_v39 = vmul.f32 0.5, %v3269_v7  ;;  %v1628_v41 = vmul.f32 %v1627_v60, %v3284_v14  ;;  %v1651_v19 = vor.u32 1.1754944e-38, %v1650_v10  ;;  %vm1649_vm11 = vcmp.eq.f32.partialorder %v1648_v22, 8.507059e+37 }
  0xe8   : >> { %v2416_v51 = vpop.eup %2415  ;;  %v1560_v52 = vmul.f32 %v2414_v24, %v1558_v61  ;;  %vm1565_vm2 = vweird.f32 %v2414_v24  ;;  %2419 = vrcp.f32 %v1678_v29  ;;  %v1529_v7 = vmul.f32 0.5, %v3271_v36 }
  0xe9   : >> { %v1600_v1 = vmul.f32 %v2416_v51, %v1598_v28  ;;  %v2418_v4 = vpop.eup %2417  ;;  %vm1605_vm3 = vweird.f32 %v2416_v51  ;;  %vm3346_vm5 = vmor %vm1564_vm0, %vm1565_vm2  ;;  %v1667_v26 = vadd.f32 1.1283791, %v1666_v34  ;;  %vm1684_vm12 = vweird.f32 %v1678_v29 }
  0xea   : >> { %v1561_v5 = vsub.f32 1.0, %v1560_v52  ;;  %v1640_v9 = vmul.f32 %v2418_v4, %v1638_v48  ;;  %vm1645_vm6 = vweird.f32 %v2418_v4  ;;  %vm3351_vm8 = vmor %vm1604_vm1, %vm1605_vm3  ;;  %v1688_v38 = vand.u32 2147483647, %v1678_v29 }
  0xeb   : >> { %v1601_v16 = vsub.f32 1.0, %v1600_v1  ;;  %vm3362_vm10 = vmor %vm1644_vm4, %vm1645_vm6  ;;  %v1690_v15 = vand.u32 2147483648, %v1678_v29  ;;  %v1668_v60 = vmul.f32 %v1667_v26, %v3287_v18 }
  0xec   : >> { %v1562_v30 = vmul.f32 %v2414_v24, %v1561_v5  ;;  %v1641_v21 = vsub.f32 1.0, %v1640_v9  ;;  %vm1689_vm15 = vcmp.eq.f32.partialorder %v1688_v38, 8.507059e+37 }
  0xed   : >> { %v1602_v20 = vmul.f32 %v2416_v51, %v1601_v16 }
  0xee   : >> { %v1563_v33 = vadd.f32 %v2414_v24, %v1562_v30  ;;  %v1642_v27 = vmul.f32 %v2418_v4, %v1641_v21  ;;  %v2420_v44 = vpop.eup %2419 }
  0xef   : >> { %v1603_v37 = vadd.f32 %v2416_v51, %v1602_v20  ;;  %v1680_v48 = vmul.f32 %v2420_v44, %v1678_v29  ;;  %vm1685_vm13 = vweird.f32 %v2420_v44  ;;  %v1531_v29 = vmul.f32 0.5, %v3275_v8 }
  0xf0   : >> { %v1567_v40 = vsel %vm3346_vm5, %v2414_v24, %v1563_v33  ;;  %v1643_v32 = vadd.f32 %v2418_v4, %v1642_v27  ;;  %v1530_v24 = vmul.f32 0.5, %v3273_v11  ;;  %vm1686_vm14 = vmor %vm1684_vm12, %vm1685_vm13 }
  0xf1   : >> { %v1572_v43 = vsel %vm1569_vm7, %v1571_v2, %v1567_v40  ;;  %v1607_v17 = vsel %vm3351_vm8, %v2416_v51, %v1603_v37  ;;  %v1681_v56 = vsub.f32 1.0, %v1680_v48  ;;  %v1691_v51 = vor.u32 1.1754944e-38, %v1690_v15 }
  0xf2   : >> { %v1573_v61 = vmul.f32 %v1572_v43, %v1548_v57  ;;  %v1612_v46 = vsel %vm1609_vm9, %v1611_v13, %v1607_v17  ;;  %v1647_v28 = vsel %vm3362_vm10, %v2418_v4, %v1643_v32 }
  0xf3   : >> { %v1613_v14 = vmul.f32 %v1612_v46, %v1588_v35  ;;  %v1652_v53 = vsel %vm1649_vm11, %v1651_v19, %v1647_v28  ;;  %v1682_v58 = vmul.f32 %v2420_v44, %v1681_v56 }
  0xf4   : >> { %v2252_v50 = vclamps-f32 %v1573_v61, 1.0  ;;  %v1653_v55 = vmul.f32 %v1652_v53, %v1628_v41 }
  0xf5   : >> { %v2253_v6 = vclamps-f32 %v1613_v14, 1.0  ;;  %v1683_v62 = vadd.f32 %v2420_v44, %v1682_v58 }
  0xf6   : >> { %v1696_v36 = vadd.f32 1.0, %v2252_v50  ;;  %v2254_v57 = vclamps-f32 %v1653_v55, 1.0 }
  0xf7   : >> { %v1697_v59 = vadd.f32 1.0, %v2253_v6  ;;  %v1687_v31 = vsel %vm1686_vm14, %v2420_v44, %v1683_v62 }
  0xf8   : >> { %v1700_v52 = vmul.f32 %v1696_v36, %v1528_v39  ;;  %v1698_v63 = vadd.f32 1.0, %v2254_v57  ;;  %v1692_v5 = vsel %vm1689_vm15, %v1691_v51, %v1687_v31 }
  0xf9   : >> { %v1701_v1 = vmul.f32 %v1697_v59, %v1529_v7  ;;  %v1693_v23 = vmul.f32 %v1692_v5, %v1668_v60 }
  0xfa   : >> { %v1704_v25 = vadd.f32 %v3102_v54, %v1700_v52  ;;  %v1702_v4 = vmul.f32 %v1698_v63, %v1530_v24 }
  0xfb   : >> { %v1705_v11 = vadd.f32 %v3106_v45, %v1701_v1  ;;  %v2255_v2 = vclamps-f32 %v1693_v23, 1.0 }
  0xfc   : >> { %1710 = vst [vmem:[%s1709_s11] sm:$0xff] %v1704_v25  ;;  %v1706_v18 = vadd.f32 %v3110_v47, %v1702_v4 }
  0xfd   : >> { %1711 = vst [vmem:[%s1709_s11 + $0x8] sm:$0xff] %v1705_v11  ;;  %v1699_v16 = vadd.f32 1.0, %v2255_v2 }
  0xfe   : >> { %1712 = vst [vmem:[%s1709_s11 + $0x10] sm:$0xff] %v1706_v18 }
  0xff   : >> { %v1703_v9 = vmul.f32 %v1699_v16, %v1531_v29  ;;  %318 = sbr.rel (!%p316_p12) target bundleno = 25 (0x19), region = 108 }
 0x101   : >> { %v1707_v30 = vadd.f32 %v3114_v49, %v1703_v9 }
 0x103   : >> { %1713 = vst [vmem:[%s1709_s11 + $0x18] sm:$0xff] %v1707_v30 }
 0x104   : > { %2454 = shalt.err (!%p2451_p6)
}
 0x105   : > { %s2515_s7 = smov 128   ;;  %s2516_s10 = smov 8  }
 0x106   : > { %2265 = dma.vmem_to_hbm [thread:$0]  (%p2587_p4), %s1729_s25, 4096, %s1731_s27, %s1715_s29, %s2515_s7, %s2515_s7, %s2516_s10  }
 0x107 PF: > { %p2271_p7 = scmp.ge.s32.totalorder %s2509_s23, 2  ;;  %s1745_s16 = sand.u32 1, %s2489_s18  }
 0x108   : > { %s1746_s13 = scalar_lea.sflag [#allocation3], %s1745_s16 }
 0x109   : > { %p2268_p9 = pnand %p2271_p7, %p2594_p8 }
 0x10b   : > { %p2269_p10 = pneg %p2268_p9 }
 0x10d   : > { %2484 = dma.done.wait (%p2269_p10), %s1746_s13, 4096  }
 0x10e   : > { %2486 = vsyncadd (%p2269_p10), %s1746_s13, 4294963200  ;;  %s18_s23 = sadd.s32 1, %s2509_s23   ;;  %s3439_s18 = smov %s2493_s19 }
 0x10f   : > { %p15_p11 = scmp.ge.s32.totalorder %s18_s23, 4   ;;  %s3440_s19 = smov %s2497_s20 }
 0x110   : > { %s3441_s20 = smov %s2600_s6  ;;  %s3442_s21 = smov %s2505_s22 }
 0x111   : > { %s3443_s22 = smov %s3445_s26  ;;  %17 = sbr.rel (!%p15_p11) target bundleno = 4 (0x4), region = 119 }
 0x116   :  { %1752 = vsyncpa [#allocation3], 1 }
 0x117   :  { %1754 = vsyncpa [#allocation3 + $0x1], 1 }

</bundles_post_ra>
